<compile_context>
chip_gen: v5e
topology: v5e:2x2
jax: 0.10.0
libtpu: 0.0.40
codegen_flags: <defaults>
</compile_context>

<pallas_src>
import functools

import jax
import jax.numpy as jnp
from jax.experimental import pallas as pl
from jax.experimental.pallas import tpu as pltpu


# --------------------------------------------------------------------------
# Pallas kernel: fused direct-conv (stride 1) + bias + ClipQuan
# --------------------------------------------------------------------------
def _conv_cq_kernel(x_ref, w_ref, b_ref, o_ref, *, gamma, kh, kw, out_h, out_w):
    """One (batch, N-tile) grid cell.

    x_ref: (1, Hp, Wp, Cin)   spatially padded NHWC image (bf16)
    w_ref: (kh*kw, Cin, TN)   BN-folded weight tile (bf16)
    b_ref: (1, TN)            BN-folded, sleep-rescaled bias tile (f32)
    o_ref: (1, out_h, out_w, TN)
    """
    cin = x_ref.shape[-1]
    n = w_ref.shape[-1]

    acc = jnp.zeros((out_h * out_w, n), jnp.float32)
    # im2col fused in VMEM: KH*KW shifted windows, each an MXU dot with the
    # matching (Cin, TN) weight slice, accumulated in f32.
    for di in range(kh):
        for dj in range(kw):
            slab = x_ref[0, di:di + out_h, dj:dj + out_w, :]      # (H, W, Cin)
            slab = slab.reshape(out_h * out_w, cin)               # (H*W, Cin)
            acc = acc + jnp.dot(slab, w_ref[di * kw + dj],
                                preferred_element_type=jnp.float32)

    acc = acc + b_ref[...]                                        # (1, TN) bcast

    # ClipQuan: clamp to [0,1], quantize to `gamma` levels.
    y = jnp.clip(acc, 0.0, 1.0)
    y = jnp.floor(y * gamma + 0.5) * (1.0 / gamma)
    # Output kept f32 (already lane-dense TN=128); could be bf16 for gamma<=256.
    o_ref[...] = y.reshape(1, out_h, out_w, n).astype(o_ref.dtype)


def conv_cq_pallas(x_pad, w_mat, b_mat, *, gamma, out_h, out_w, kh, kw, tn=128):
    """x_pad: (B, Hp, Wp, Cin) bf16; w_mat: (kh*kw, Cin, Npad) bf16;
    b_mat: (1, Npad) f32.  Returns (B, out_h, out_w, Npad) f32."""
    B, Hp, Wp, Cin = x_pad.shape
    _, _, Npad = w_mat.shape
    assert Npad % tn == 0

    kernel = functools.partial(_conv_cq_kernel, gamma=float(gamma),
                               kh=kh, kw=kw, out_h=out_h, out_w=out_w)

    return pl.pallas_call(
        kernel,
        out_shape=jax.ShapeDtypeStruct((B, out_h, out_w, Npad), jnp.float32),
        grid_spec=pltpu.PrefetchScalarGridSpec(
            num_scalar_prefetch=0,
            grid=(B, Npad // tn),          # N-tiles innermost: x block reused
            in_specs=[
                # whole padded image for this batch element (halo included)
                pl.BlockSpec((1, Hp, Wp, Cin), lambda b, j: (b, 0, 0, 0)),
                # weight N-tile (all taps, all Cin)
                pl.BlockSpec((kh * kw, Cin, tn), lambda b, j: (0, 0, j)),
                # bias N-tile
                pl.BlockSpec((1, tn), lambda b, j: (0, j)),
            ],
            out_specs=pl.BlockSpec((1, out_h, out_w, tn),
                                   lambda b, j: (b, 0, 0, j)),
        ),
        compiler_params=pltpu.CompilerParams(
            dimension_semantics=("parallel", "parallel")),
    )(x_pad, w_mat, b_mat)


# --------------------------------------------------------------------------
# Plain-JAX glue: mergeConvBN, change_beta, layout/padding plumbing
# --------------------------------------------------------------------------
def merge_conv_bn(w, b, bn_gamma, bn_beta, bn_mean, bn_var, eps=1e-5):
    """Fold BN into conv weight/bias. w: [Cout, Cin, KH, KW] (PyTorch layout)."""
    scale = bn_gamma / jnp.sqrt(bn_var + eps)            # [Cout]
    w_f = w * scale[:, None, None, None]
    b_f = (b - bn_mean) * scale + bn_beta
    return w_f, b_f


def change_beta(bias, sleep_time):
    """CQConvertor.change_beta: bias *= sleep_time[0] / sleep_time[1]."""
    return bias * (sleep_time[0] / sleep_time[1])


def prepare_folded_params(x_nchw, w, b, bn_params, sleep_time):
    """NCHW->NHWC + spatial pad (bf16), BN-fold + rescale weights/bias,
    pad Cout to a lane-dense multiple of 128."""
    B, Cin, H, W = x_nchw.shape
    Cout, _, KH, KW = w.shape
    pad_h, pad_w = KH // 2, KW // 2

    # --- CQConvertor graph surgery realized as parameter transforms ---
    w_f, b_f = merge_conv_bn(w, b, *bn_params)            # mergeConvBN
    b_f = change_beta(b_f, sleep_time)                    # change_beta

    # layout: NCHW -> NHWC, spatial halo pad once, bf16 for DMA/MXU
    x_nhwc = jnp.transpose(x_nchw, (0, 2, 3, 1))
    x_pad = jnp.pad(x_nhwc, ((0, 0), (pad_h, pad_h), (pad_w, pad_w), (0, 0)))
    x_pad = x_pad.astype(jnp.bfloat16)

    # weight: [Cout,Cin,KH,KW] -> [KH*KW, Cin, Cout] -> pad Cout to Npad (lane-dense)
    Npad = ((Cout + 127) // 128) * 128
    w_mat = jnp.transpose(w_f, (2, 3, 1, 0)).reshape(KH * KW, Cin, Cout)
    w_mat = jnp.pad(w_mat, ((0, 0), (0, 0), (0, Npad - Cout))).astype(jnp.bfloat16)
    b_mat = jnp.pad(b_f, (0, Npad - Cout)).reshape(1, Npad).astype(jnp.float32)

    return x_pad, w_mat, b_mat, (B, H, W, Cout, KH, KW)


@functools.partial(jax.jit, static_argnames=("gamma", "sleep_time"))
def converted_block_forward(x_nchw, w, b, bn_params, *, gamma, sleep_time):
    """Forward of one CQ-converted block: BN-merged conv -> Hookoutput(ClipQuan)."""
    x_pad, w_mat, b_mat, meta = prepare_folded_params(x_nchw, w, b, bn_params,
                                                      sleep_time)
    B, H, W, Cout, KH, KW = meta
    out_pad = conv_cq_pallas(x_pad, w_mat, b_mat, gamma=gamma,
                             out_h=H, out_w=W, kh=KH, kw=KW)   # (B,H,W,Npad)
    out_nhwc = out_pad[..., :Cout]
    out_nchw = jnp.transpose(out_nhwc, (0, 3, 1, 2))
    activation = out_nchw                                  # Hookoutput.activation
    return out_nchw, activation


# --------------------------------------------------------------------------
if __name__ == "__main__":
    key = jax.random.PRNGKey(0)
    kx, kw_, kb, kg, kbe, km, kv = jax.random.split(key, 7)

    B, Cin, H, W = 2, 4, 16, 16
    Cout, KH, KW = 8, 3, 3
    gamma = 8                      # ClipQuan levels (CQConvertor gamma)
    sleep_time = (16, 16)          # CQConvertor default kwargs

    x = jax.random.normal(kx, (B, Cin, H, W), jnp.float32)
    w = jax.random.normal(kw_, (Cout, Cin, KH, KW), jnp.float32) * 0.2
    b = jax.random.normal(kb, (Cout,), jnp.float32) * 0.1
    bn_gamma = 1.0 + 0.1 * jax.random.normal(kg, (Cout,), jnp.float32)
    bn_beta = 0.1 * jax.random.normal(kbe, (Cout,), jnp.float32)
    bn_mean = 0.1 * jax.random.normal(km, (Cout,), jnp.float32)
    bn_var = jnp.abs(jax.random.normal(kv, (Cout,), jnp.float32)) + 0.5

    out, act = converted_block_forward(
        x, w, b, (bn_gamma, bn_beta, bn_mean, bn_var),
        gamma=gamma, sleep_time=sleep_time)
    out = jax.block_until_ready(out)

    # ---------------- reference (pure JAX, same bf16 inputs, f32 accumulate) ---
    x_pad, w_mat, b_mat, meta = prepare_folded_params(
        x, w, b, (bn_gamma, bn_beta, bn_mean, bn_var), sleep_time)
    _, _, _, _, _, _ = meta
    Npad = w_mat.shape[-1]
    xr = x_pad.astype(jnp.float32)
    wr = w_mat.astype(jnp.float32)
    ref = jnp.zeros((B, H, W, Npad), jnp.float32)
    for di in range(KH):
        for dj in range(KW):
            slab = xr[:, di:di + H, dj:dj + W, :]
            ref = ref + jnp.einsum('bhwc,cn->bhwn', slab, wr[di * KW + dj])
    ref = ref + b_mat
    ref = jnp.floor(jnp.clip(ref, 0.0, 1.0) * gamma + 0.5) / gamma
    ref = jnp.transpose(ref[..., :Cout], (0, 3, 1, 2))

    # Tolerant check: values must match exactly except possibly a one-quant-step
    # flip at bin boundaries (accumulation-order rounding between MXU and XLA).
    step = 1.0 / gamma
    err = jnp.abs(out - ref)
    frac_exact = float(jnp.mean(err <= 1e-4))
    all_ok = bool(jnp.all((err <= 1e-4) | (jnp.abs(err - step) <= 1e-4)))
    assert all_ok and frac_exact > 0.98, (
        f"mismatch vs reference: frac_exact={frac_exact}, max_err={float(err.max())}")

    print("KERNEL_OK")
</pallas_src>

<mosaic_0001>
module attributes {stable_mosaic.version = 11 : i64} {
  func.func @_conv_cq_kernel(%arg0: i32, %arg1: i32, %arg2: memref<1x18x18x4xbf16, #tpu.memory_space<vmem>>, %arg3: memref<9x4x128xbf16, #tpu.memory_space<vmem>>, %arg4: memref<1x128xf32, #tpu.memory_space<vmem>>, %arg5: memref<1x16x16x128xf32, #tpu.memory_space<vmem>>) attributes {dimension_semantics = [#tpu.dimension_semantics<parallel>, #tpu.dimension_semantics<parallel>], iteration_bounds = array<i64: 2, 1>, scalar_prefetch = 0 : i64, scratch_operands = 0 : i64, tpu.core_type = #tpu.core_type<tc>, window_params = [{transform_indices = @transform_0, window_bounds = array<i64: 1, 18, 18, 4>}, {transform_indices = @transform_1, window_bounds = array<i64: 9, 4, 128>}, {transform_indices = @transform_2, window_bounds = array<i64: 1, 128>}, {transform_indices = @transform_3, window_bounds = array<i64: 1, 16, 16, 128>}]} {
    %cst = arith.constant 0.000000e+00 : f32
    %0 = vector.broadcast %cst : f32 to vector<256x128xf32>
    %c0 = arith.constant 0 : index
    %c0_0 = arith.constant 0 : index
    %c0_1 = arith.constant 0 : index
    %c0_2 = arith.constant 0 : index
    %1 = vector.load %arg2[%c0, %c0_0, %c0_1, %c0_2] : memref<1x18x18x4xbf16, #tpu.memory_space<vmem>>, vector<1x16x16x4xbf16>
    %2 = vector.shape_cast %1 : vector<1x16x16x4xbf16> to vector<16x16x4xbf16>
    %3 = vector.shape_cast %2 : vector<16x16x4xbf16> to vector<256x4xbf16>
    %c0_3 = arith.constant 0 : index
    %c0_4 = arith.constant 0 : index
    %c0_5 = arith.constant 0 : index
    %4 = vector.load %arg3[%c0_3, %c0_4, %c0_5] : memref<9x4x128xbf16, #tpu.memory_space<vmem>>, vector<1x4x128xbf16>
    %5 = vector.shape_cast %4 : vector<1x4x128xbf16> to vector<4x128xbf16>
    %cst_6 = arith.constant dense<0.000000e+00> : vector<256x128xf32>
    %6 = tpu.matmul %3, %5, %cst_6 {dimension_numbers = #tpu.dot_dimension_numbers<[1], [0], [0], [1], [0, 0, 1, 1], [], []>} : vector<256x4xbf16>, vector<4x128xbf16>, vector<256x128xf32> -> vector<256x128xf32>
    %7 = arith.addf %0, %6 : vector<256x128xf32>
    %c0_7 = arith.constant 0 : index
    %c0_8 = arith.constant 0 : index
    %c1 = arith.constant 1 : index
    %c0_9 = arith.constant 0 : index
    %8 = vector.load %arg2[%c0_7, %c0_8, %c1, %c0_9] : memref<1x18x18x4xbf16, #tpu.memory_space<vmem>>, vector<1x16x16x4xbf16>
    %9 = vector.shape_cast %8 : vector<1x16x16x4xbf16> to vector<16x16x4xbf16>
    %10 = vector.shape_cast %9 : vector<16x16x4xbf16> to vector<256x4xbf16>
    %c1_10 = arith.constant 1 : index
    %c0_11 = arith.constant 0 : index
    %c0_12 = arith.constant 0 : index
    %11 = vector.load %arg3[%c1_10, %c0_11, %c0_12] : memref<9x4x128xbf16, #tpu.memory_space<vmem>>, vector<1x4x128xbf16>
    %12 = vector.shape_cast %11 : vector<1x4x128xbf16> to vector<4x128xbf16>
    %cst_13 = arith.constant dense<0.000000e+00> : vector<256x128xf32>
    %13 = tpu.matmul %10, %12, %cst_13 {dimension_numbers = #tpu.dot_dimension_numbers<[1], [0], [0], [1], [0, 0, 1, 1], [], []>} : vector<256x4xbf16>, vector<4x128xbf16>, vector<256x128xf32> -> vector<256x128xf32>
    %14 = arith.addf %7, %13 : vector<256x128xf32>
    %c0_14 = arith.constant 0 : index
    %c0_15 = arith.constant 0 : index
    %c2 = arith.constant 2 : index
    %c0_16 = arith.constant 0 : index
    %15 = vector.load %arg2[%c0_14, %c0_15, %c2, %c0_16] : memref<1x18x18x4xbf16, #tpu.memory_space<vmem>>, vector<1x16x16x4xbf16>
    %16 = vector.shape_cast %15 : vector<1x16x16x4xbf16> to vector<16x16x4xbf16>
    %17 = vector.shape_cast %16 : vector<16x16x4xbf16> to vector<256x4xbf16>
    %c2_17 = arith.constant 2 : index
    %c0_18 = arith.constant 0 : index
    %c0_19 = arith.constant 0 : index
    %18 = vector.load %arg3[%c2_17, %c0_18, %c0_19] : memref<9x4x128xbf16, #tpu.memory_space<vmem>>, vector<1x4x128xbf16>
    %19 = vector.shape_cast %18 : vector<1x4x128xbf16> to vector<4x128xbf16>
    %cst_20 = arith.constant dense<0.000000e+00> : vector<256x128xf32>
    %20 = tpu.matmul %17, %19, %cst_20 {dimension_numbers = #tpu.dot_dimension_numbers<[1], [0], [0], [1], [0, 0, 1, 1], [], []>} : vector<256x4xbf16>, vector<4x128xbf16>, vector<256x128xf32> -> vector<256x128xf32>
    %21 = arith.addf %14, %20 : vector<256x128xf32>
    %c0_21 = arith.constant 0 : index
    %c1_22 = arith.constant 1 : index
    %c0_23 = arith.constant 0 : index
    %c0_24 = arith.constant 0 : index
    %22 = vector.load %arg2[%c0_21, %c1_22, %c0_23, %c0_24] : memref<1x18x18x4xbf16, #tpu.memory_space<vmem>>, vector<1x16x16x4xbf16>
    %23 = vector.shape_cast %22 : vector<1x16x16x4xbf16> to vector<16x16x4xbf16>
    %24 = vector.shape_cast %23 : vector<16x16x4xbf16> to vector<256x4xbf16>
    %c3 = arith.constant 3 : index
    %c0_25 = arith.constant 0 : index
    %c0_26 = arith.constant 0 : index
    %25 = vector.load %arg3[%c3, %c0_25, %c0_26] : memref<9x4x128xbf16, #tpu.memory_space<vmem>>, vector<1x4x128xbf16>
    %26 = vector.shape_cast %25 : vector<1x4x128xbf16> to vector<4x128xbf16>
    %cst_27 = arith.constant dense<0.000000e+00> : vector<256x128xf32>
    %27 = tpu.matmul %24, %26, %cst_27 {dimension_numbers = #tpu.dot_dimension_numbers<[1], [0], [0], [1], [0, 0, 1, 1], [], []>} : vector<256x4xbf16>, vector<4x128xbf16>, vector<256x128xf32> -> vector<256x128xf32>
    %28 = arith.addf %21, %27 : vector<256x128xf32>
    %c0_28 = arith.constant 0 : index
    %c1_29 = arith.constant 1 : index
    %c1_30 = arith.constant 1 : index
    %c0_31 = arith.constant 0 : index
    %29 = vector.load %arg2[%c0_28, %c1_29, %c1_30, %c0_31] : memref<1x18x18x4xbf16, #tpu.memory_space<vmem>>, vector<1x16x16x4xbf16>
    %30 = vector.shape_cast %29 : vector<1x16x16x4xbf16> to vector<16x16x4xbf16>
    %31 = vector.shape_cast %30 : vector<16x16x4xbf16> to vector<256x4xbf16>
    %c4 = arith.constant 4 : index
    %c0_32 = arith.constant 0 : index
    %c0_33 = arith.constant 0 : index
    %32 = vector.load %arg3[%c4, %c0_32, %c0_33] : memref<9x4x128xbf16, #tpu.memory_space<vmem>>, vector<1x4x128xbf16>
    %33 = vector.shape_cast %32 : vector<1x4x128xbf16> to vector<4x128xbf16>
    %cst_34 = arith.constant dense<0.000000e+00> : vector<256x128xf32>
    %34 = tpu.matmul %31, %33, %cst_34 {dimension_numbers = #tpu.dot_dimension_numbers<[1], [0], [0], [1], [0, 0, 1, 1], [], []>} : vector<256x4xbf16>, vector<4x128xbf16>, vector<256x128xf32> -> vector<256x128xf32>
    %35 = arith.addf %28, %34 : vector<256x128xf32>
    %c0_35 = arith.constant 0 : index
    %c1_36 = arith.constant 1 : index
    %c2_37 = arith.constant 2 : index
    %c0_38 = arith.constant 0 : index
    %36 = vector.load %arg2[%c0_35, %c1_36, %c2_37, %c0_38] : memref<1x18x18x4xbf16, #tpu.memory_space<vmem>>, vector<1x16x16x4xbf16>
    %37 = vector.shape_cast %36 : vector<1x16x16x4xbf16> to vector<16x16x4xbf16>
    %38 = vector.shape_cast %37 : vector<16x16x4xbf16> to vector<256x4xbf16>
    %c5 = arith.constant 5 : index
    %c0_39 = arith.constant 0 : index
    %c0_40 = arith.constant 0 : index
    %39 = vector.load %arg3[%c5, %c0_39, %c0_40] : memref<9x4x128xbf16, #tpu.memory_space<vmem>>, vector<1x4x128xbf16>
    %40 = vector.shape_cast %39 : vector<1x4x128xbf16> to vector<4x128xbf16>
    %cst_41 = arith.constant dense<0.000000e+00> : vector<256x128xf32>
    %41 = tpu.matmul %38, %40, %cst_41 {dimension_numbers = #tpu.dot_dimension_numbers<[1], [0], [0], [1], [0, 0, 1, 1], [], []>} : vector<256x4xbf16>, vector<4x128xbf16>, vector<256x128xf32> -> vector<256x128xf32>
    %42 = arith.addf %35, %41 : vector<256x128xf32>
    %c0_42 = arith.constant 0 : index
    %c2_43 = arith.constant 2 : index
    %c0_44 = arith.constant 0 : index
    %c0_45 = arith.constant 0 : index
    %43 = vector.load %arg2[%c0_42, %c2_43, %c0_44, %c0_45] : memref<1x18x18x4xbf16, #tpu.memory_space<vmem>>, vector<1x16x16x4xbf16>
    %44 = vector.shape_cast %43 : vector<1x16x16x4xbf16> to vector<16x16x4xbf16>
    %45 = vector.shape_cast %44 : vector<16x16x4xbf16> to vector<256x4xbf16>
    %c6 = arith.constant 6 : index
    %c0_46 = arith.constant 0 : index
    %c0_47 = arith.constant 0 : index
    %46 = vector.load %arg3[%c6, %c0_46, %c0_47] : memref<9x4x128xbf16, #tpu.memory_space<vmem>>, vector<1x4x128xbf16>
    %47 = vector.shape_cast %46 : vector<1x4x128xbf16> to vector<4x128xbf16>
    %cst_48 = arith.constant dense<0.000000e+00> : vector<256x128xf32>
    %48 = tpu.matmul %45, %47, %cst_48 {dimension_numbers = #tpu.dot_dimension_numbers<[1], [0], [0], [1], [0, 0, 1, 1], [], []>} : vector<256x4xbf16>, vector<4x128xbf16>, vector<256x128xf32> -> vector<256x128xf32>
    %49 = arith.addf %42, %48 : vector<256x128xf32>
    %c0_49 = arith.constant 0 : index
    %c2_50 = arith.constant 2 : index
    %c1_51 = arith.constant 1 : index
    %c0_52 = arith.constant 0 : index
    %50 = vector.load %arg2[%c0_49, %c2_50, %c1_51, %c0_52] : memref<1x18x18x4xbf16, #tpu.memory_space<vmem>>, vector<1x16x16x4xbf16>
    %51 = vector.shape_cast %50 : vector<1x16x16x4xbf16> to vector<16x16x4xbf16>
    %52 = vector.shape_cast %51 : vector<16x16x4xbf16> to vector<256x4xbf16>
    %c7 = arith.constant 7 : index
    %c0_53 = arith.constant 0 : index
    %c0_54 = arith.constant 0 : index
    %53 = vector.load %arg3[%c7, %c0_53, %c0_54] : memref<9x4x128xbf16, #tpu.memory_space<vmem>>, vector<1x4x128xbf16>
    %54 = vector.shape_cast %53 : vector<1x4x128xbf16> to vector<4x128xbf16>
    %cst_55 = arith.constant dense<0.000000e+00> : vector<256x128xf32>
    %55 = tpu.matmul %52, %54, %cst_55 {dimension_numbers = #tpu.dot_dimension_numbers<[1], [0], [0], [1], [0, 0, 1, 1], [], []>} : vector<256x4xbf16>, vector<4x128xbf16>, vector<256x128xf32> -> vector<256x128xf32>
    %56 = arith.addf %49, %55 : vector<256x128xf32>
    %c0_56 = arith.constant 0 : index
    %c2_57 = arith.constant 2 : index
    %c2_58 = arith.constant 2 : index
    %c0_59 = arith.constant 0 : index
    %57 = vector.load %arg2[%c0_56, %c2_57, %c2_58, %c0_59] : memref<1x18x18x4xbf16, #tpu.memory_space<vmem>>, vector<1x16x16x4xbf16>
    %58 = vector.shape_cast %57 : vector<1x16x16x4xbf16> to vector<16x16x4xbf16>
    %59 = vector.shape_cast %58 : vector<16x16x4xbf16> to vector<256x4xbf16>
    %c8 = arith.constant 8 : index
    %c0_60 = arith.constant 0 : index
    %c0_61 = arith.constant 0 : index
    %60 = vector.load %arg3[%c8, %c0_60, %c0_61] : memref<9x4x128xbf16, #tpu.memory_space<vmem>>, vector<1x4x128xbf16>
    %61 = vector.shape_cast %60 : vector<1x4x128xbf16> to vector<4x128xbf16>
    %cst_62 = arith.constant dense<0.000000e+00> : vector<256x128xf32>
    %62 = tpu.matmul %59, %61, %cst_62 {dimension_numbers = #tpu.dot_dimension_numbers<[1], [0], [0], [1], [0, 0, 1, 1], [], []>} : vector<256x4xbf16>, vector<4x128xbf16>, vector<256x128xf32> -> vector<256x128xf32>
    %63 = arith.addf %56, %62 : vector<256x128xf32>
    %c0_63 = arith.constant 0 : index
    %c0_64 = arith.constant 0 : index
    %64 = vector.load %arg4[%c0_63, %c0_64] : memref<1x128xf32, #tpu.memory_space<vmem>>, vector<1x128xf32>
    %65 = vector.broadcast %64 : vector<1x128xf32> to vector<256x128xf32>
    %66 = arith.addf %63, %65 : vector<256x128xf32>
    %cst_65 = arith.constant 0.000000e+00 : f32
    %cst_66 = arith.constant 1.000000e+00 : f32
    %67 = vector.broadcast %cst_65 : f32 to vector<256x128xf32>
    %68 = arith.maximumf %67, %66 : vector<256x128xf32>
    %69 = vector.broadcast %cst_66 : f32 to vector<256x128xf32>
    %70 = arith.minimumf %69, %68 : vector<256x128xf32>
    %cst_67 = arith.constant 8.000000e+00 : f32
    %71 = vector.broadcast %cst_67 : f32 to vector<256x128xf32>
    %72 = arith.mulf %70, %71 : vector<256x128xf32>
    %cst_68 = arith.constant 5.000000e-01 : f32
    %73 = vector.broadcast %cst_68 : f32 to vector<256x128xf32>
    %74 = arith.addf %72, %73 : vector<256x128xf32>
    %75 = math.floor %74 : vector<256x128xf32>
    %cst_69 = arith.constant 1.250000e-01 : f32
    %76 = vector.broadcast %cst_69 : f32 to vector<256x128xf32>
    %77 = arith.mulf %75, %76 : vector<256x128xf32>
    %78 = vector.shape_cast %77 : vector<256x128xf32> to vector<1x16x16x128xf32>
    %c0_70 = arith.constant 0 : index
    %c0_71 = arith.constant 0 : index
    %c0_72 = arith.constant 0 : index
    %c0_73 = arith.constant 0 : index
    %79 = vector.load %arg5[%c0_70, %c0_71, %c0_72, %c0_73] : memref<1x16x16x128xf32, #tpu.memory_space<vmem>>, vector<1x16x16x128xf32>
    tpu.vector_store %arg5[%c0_70, %c0_71, %c0_72, %c0_73], %78 {strides = array<i32>} : memref<1x16x16x128xf32, #tpu.memory_space<vmem>>, vector<1x16x16x128xf32>,
    return
  }
  func.func @transform_0(%arg0: i32, %arg1: i32) -> (i32, i32, i32, i32) {
    %c0_i32 = arith.constant 0 : i32
    %c0_i32_0 = arith.constant 0 : i32
    %c0_i32_1 = arith.constant 0 : i32
    %c0_i32_2 = arith.constant 0 : i32
    return %arg0, %c0_i32, %c0_i32_0, %c0_i32_1 : i32, i32, i32, i32
  }
  func.func @transform_1(%arg0: i32, %arg1: i32) -> (i32, i32, i32) {
    %c0_i32 = arith.constant 0 : i32
    %c0_i32_0 = arith.constant 0 : i32
    %c0_i32_1 = arith.constant 0 : i32
    return %c0_i32, %c0_i32_0, %arg1 : i32, i32, i32
  }
  func.func @transform_2(%arg0: i32, %arg1: i32) -> (i32, i32) {
    %c0_i32 = arith.constant 0 : i32
    %c0_i32_0 = arith.constant 0 : i32
    return %c0_i32, %arg1 : i32, i32
  }
  func.func @transform_3(%arg0: i32, %arg1: i32) -> (i32, i32, i32, i32) {
    %c0_i32 = arith.constant 0 : i32
    %c0_i32_0 = arith.constant 0 : i32
    %c0_i32_1 = arith.constant 0 : i32
    return %arg0, %c0_i32, %c0_i32_0, %arg1 : i32, i32, i32, i32
  }
}

</mosaic_0001>

<bundles_post_ra>
// kernel: converted_block_forward.1
= control target key start
LH: loop header
LB: loop body
LE: loop exit
PB: predicated region body
PF: predicated region fallthrough
CT: control target
= control target key end

     0   :  { %s5268_s12 = smov 0   ;;  %s5270_s13 = smov 0   ;;  %s6702_s0 = inlined_call_operand.vmem [shape: bf16[2,18,18,4], index: 0, kind: input, shape index: {}]   ;;  %s6703_s1 = inlined_call_operand.vmem [shape: bf16[9,4,128], index: 1, kind: input, shape index: {}]   ;;  %s6704_s2 = inlined_call_operand.vmem [shape: f32[1,128], index: 2, kind: input, shape index: {}]   ;;  %s6705_s3 = inlined_call_operand.vmem [shape: f32[2,16,16,128], index: 3, kind: output, shape index: {}]  }
   0x1   :  { %s5272_s14 = smov 0  }
   0x2 LB: > { %s25_s15 = sadd.s32 1, %s5242_s13  ;;  %p4505_p0 = scmp.ge.s32.totalorder %s5246_s14, 1  ;;  %s5246_s14 = sphi %s5272_s14, %s13_s14   ;;  %s5242_s13 = sphi %s5270_s13, %s6719_s13   ;;  %s5238_s12 = sphi %s5268_s12, %s6718_s12  }
   0x3   : > { %p27_p1 = scmp.ge.s32.totalorder %s25_s15, 2  ;;  %p168_p2 = scmp.lt.s32.totalorder %s5246_s14, 3 }
   0x5   : > { %s6721_s15 = smov (%p27_p1, %s25_s15), 0  ;;  %p169_p3 = pnand %p4505_p0, %p168_p2 }
   0x7   : > { %172 = sbr.rel (%p169_p3) target bundleno = 769 (0x301), region = 32 }
   0xc   : > { %v4509_v0 = vld [vmem:[%s6703_s1 + $0x2] sm:$0x3]  ;;  %vm758_vm0 = vcmask 1041408   ;;  %p202_p4 = scmp.lt.s32.totalorder %s5238_s12, 1  ;;  %v4622_v2 = vld [vmem:[%s6703_s1 + $0x4] sm:$0x3] }
   0xd   : > { %v760_v1 = vsel %vm758_vm0, %v4509_v0, 0  ;;  %v1333_v3 = vsel %vm758_vm0, %v4622_v2, 0  ;;  %v4671_v4 = vld [vmem:[%s6703_s1 + $0x6] sm:$0x3]  ;;  %v255_v5 = vld [vmem:[%s6703_s1] sm:$0x3] }
   0xe   : > { %5144 = vmatpush.bf16.msra.mxu1 %v760_v1  ;;  %5145 = vmatpush.bf16.msra.mxu2 %v760_v1  ;;  %s6723_s12 = smov (!%p202_p4, %s5238_s12), 1  ;;  %v4800_v6 = vld [vmem:[%s6703_s1 + $0x8] sm:$0x3]  ;;  %v1620_v7 = vsel %vm758_vm0, %v4671_v4, 0  ;;  %v980_v8 = vsel %vm758_vm0, %v255_v5, 0  ;;  %vm709_vm4 = vcmask 31744  }
   0xf   : > { %5146 = vmatpush.bf16.msra.mxu3 %v760_v1  ;;  %769 = vmatpush.bf16.msra.mxu0 %v760_v1  ;;  %s5147_s26 = smul.u32 216, %s6723_s12  ;;  %v2274_v9 = vsel %vm758_vm0, %v4800_v6, 0  ;;  %vm272_vm1 = vsmask.f32 3328  ;;  %vm273_vm2 = vsmask.f32 7440 }
  0x10   : > { %vm5324_vm3 = vmor %vm272_vm1, %vm273_vm2  ;;  %vm1119_vm5 = vcmask 1042432   ;;  %vm1120_vm6 = vcmask 1046532   ;;  %s5095_s17 = sshll.u32 %s6723_s12, 8 }
  0x11   : > { %s5312_s29 = scalar_lea.vmem %s6702_s0, %s5147_s26  ;;  %vm5498_vm7 = vmor %vm1119_vm5, %vm1120_vm6  ;;  %s6399_s19 = scalar_lea.vmem %s6705_s3, %s5095_s17 }
  0x12   : > { %1342 = vmatpush.bf16.msrb.mxu2 %v1333_v3  ;;  %989 = vmatpush.bf16.msrb.mxu1 %v980_v8  ;;  %v231_v10 = vld [vmem:[%s5312_s29 + $0x30] sm:$0xf]  ;;  %v232_v11 = vld [vmem:[%s5312_s29 + $0x34] sm:$0xf]  ;;  %v260_v12 = vld [vmem:[%s5312_s29 + $0x38] sm:$0x1] }
  0x13   : > { %1629 = vmatpush.bf16.msrb.mxu3 %v1620_v7  ;;  %2283 = vmatpush.bf16.msrb.mxu0 %v2274_v9  ;;  %v372_v13 = vshrl.u32 %v231_v10, 16  ;;  %v375_v14 = vshll.u32 %v231_v10, 16  ;;  %v381_v15 = vshll.u32 %v232_v11, 16  ;;  %v385_v16 = vshrl.u32 %v232_v11, 16  ;;  %v239_v17 = vld [vmem:[%s5312_s29 + $0x60] sm:$0xf] }
  0x14   : > { %v391_v18 = vshll.u32 %v260_v12, 16  ;;  %v240_v19 = vld [vmem:[%s5312_s29 + $0x64] sm:$0xf]  ;;  %v264_v20 = vld [vmem:[%s5312_s29 + $0x68] sm:$0x1]  ;;  %v468_v21 = vshrl.u32 %v239_v17, 16 }
  0x15   : > { %v374_v22 = vrot.slane %v372_v13, 4  ;;  %v377_v23 = vrot.slane %v375_v14, 5  ;;  %v383_v24 = vrot.slane %v381_v15, 5  ;;  %v387_v25 = vrot.slane %v385_v16, 4  ;;  %v247_v26 = vld [vmem:[%s5312_s29 + $0x90] sm:$0xf] }
  0x16   : > { %v393_v27 = vrot.slane %v391_v18, 5  ;;  %v470_v28 = vrot.slane %v468_v21, 4  ;;  %v471_v29 = vshll.u32 %v239_v17, 16  ;;  %v477_v30 = vshll.u32 %v240_v19, 16  ;;  %v248_v35 = vld [vmem:[%s5312_s29 + $0x94] sm:$0xf] }
  0x17   : > { %v378_v31 = vor.u32 %v377_v23, %v374_v22  ;;  %v388_v32 = vor.u32 %v387_v25, %v383_v24  ;;  %v481_v33 = vshrl.u32 %v240_v19, 16  ;;  %v487_v34 = vshll.u32 %v264_v20, 16  ;;  %v268_v45 = vld [vmem:[%s5312_s29 + $0x98] sm:$0x1]  ;;  %v223_v61 = vld [vmem:[%s5312_s29] sm:$0xf] }
  0x18   : > { %v473_v37 = vrot.slane %v471_v29, 5  ;;  %v479_v38 = vrot.slane %v477_v30, 5  ;;  %v564_v39 = vshrl.u32 %v247_v26, 16  ;;  %v567_v47 = vshll.u32 %v247_v26, 16  ;;  %v5337_v1 = vld [vmem:[%s5312_s29 + $0x4] sm:$0xf] }
  0x19   : > { %v379_v40 = vrot.slane %v378_v31, 4  ;;  %v389_v41 = vrot.slane %v388_v32, 4  ;;  %v483_v42 = vrot.slane %v481_v33, 4  ;;  %v489_v43 = vrot.slane %v487_v34, 5  ;;  %v5340_v2 = vld [vmem:[%s5312_s29 + $0x8] sm:$0x1] }
  0x1a   : > { %v474_v44 = vor.u32 %v473_v37, %v470_v28  ;;  %v566_v46 = vrot.slane %v564_v39, 4  ;;  %v573_v48 = vshll.u32 %v248_v35, 16  ;;  %v577_v52 = vshrl.u32 %v248_v35, 16  ;;  %v233_v19 = vld [vmem:[%s5312_s29 + $0x3c] sm:$0xf] }
  0x1b   : > { %v384_v49 = vsel %vm5324_vm3, %v379_v40, %v383_v24  ;;  %v394_v50 = vsel %vm5324_vm3, %v389_v41, %v393_v27  ;;  %v484_v51 = vor.u32 %v483_v42, %v479_v38  ;;  %v569_v56 = vrot.slane %v567_v47, 5  ;;  %v5352_v20 = vld [vmem:[%s5312_s29 + $0x40] sm:$0xf]  ;;  %v5357_v25 = vld [vmem:[%s5312_s29 + $0x44] sm:$0x1] }
  0x1c   : > { %v669_v53 = vunpack.c.l.b16 %v384_v49  ;;  %v670_v54 = vunpack.c.l.b16 %v394_v50  ;;  %v475_v55 = vrot.slane %v474_v44, 4  ;;  %v575_v58 = vrot.slane %v573_v48, 5  ;;  %v241_v33 = vld [vmem:[%s5312_s29 + $0x6c] sm:$0xf]  ;;  %v265_v47 = vld [vmem:[%s5312_s29 + $0x74] sm:$0x1] }
  0x1d   : > { %v485_v57 = vrot.slane %v484_v51, 4  ;;  %v579_v59 = vrot.slane %v577_v52, 4  ;;  %v583_v60 = vshll.u32 %v268_v45, 16  ;;  %v570_v0 = vor.u32 %v569_v56, %v566_v46 }
  0x1e   : > { %v697_v62 = vpack.c.b16 %v670_v54, %v669_v53  ;;  %v480_v63 = vsel %vm5324_vm3, %v475_v55, %v479_v38  ;;  %v276_v9 = vshrl.u32 %v223_v61, 16  ;;  %v279_v10 = vshll.u32 %v223_v61, 16  ;;  %v249_v61 = vld [vmem:[%s5312_s29 + $0x9c] sm:$0xf] }
  0x1f   : > { %v490_v3 = vsel %vm5324_vm3, %v485_v57, %v489_v43  ;;  %v677_v4 = vunpack.c.l.b16 %v480_v63  ;;  %v580_v5 = vor.u32 %v579_v59, %v575_v58  ;;  %v585_v6 = vrot.slane %v583_v60, 5  ;;  %v242_v43 = vld [vmem:[%s5312_s29 + $0x70] sm:$0xf] }
  0x20   : > { %4514 = vmatmul.msk.bf16.vlgmr.msra.gmra.mxu1 %vm709_vm4, %v697_v62  ;;  %v678_v7 = vunpack.c.l.b16 %v490_v3  ;;  %v571_v8 = vrot.slane %v570_v0, 4  ;;  %v285_v12 = vshll.u32 %v5337_v1, 16  ;;  %v289_v13 = vshrl.u32 %v5337_v1, 16  ;;  %v250_v3 = vld [vmem:[%s5312_s29 + $0xa0] sm:$0xf] }
  0x21   : > { %v581_v11 = vrot.slane %v580_v5, 4  ;;  %v295_v14 = vshll.u32 %v5340_v2, 16  ;;  %v278_v17 = vrot.slane %v276_v9, 4  ;;  %v281_v18 = vrot.slane %v279_v10, 5 }
  0x22   : > { %v701_v15 = vpack.c.b16 %v678_v7, %v677_v4  ;;  %v576_v16 = vsel %vm5324_vm3, %v571_v8, %v575_v58  ;;  %v287_v23 = vrot.slane %v285_v12, 5  ;;  %v291_v24 = vrot.slane %v289_v13, 4  ;;  %v269_v8 = vld [vmem:[%s5312_s29 + $0xa4] sm:$0x1] }
  0x23   : > { %v586_v21 = vsel %vm5324_vm3, %v581_v11, %v585_v6  ;;  %v685_v22 = vunpack.c.l.b16 %v576_v16  ;;  %v282_v27 = vor.u32 %v281_v18, %v278_v17  ;;  %v297_v28 = vrot.slane %v295_v14, 5 }
  0x24   : > { %4518 = vmatmul.msk.bf16.vlgmr.msra.gmra.mxu2 %vm709_vm4, %v701_v15  ;;  %v686_v26 = vunpack.c.l.b16 %v586_v21  ;;  %v292_v29 = vor.u32 %v291_v24, %v287_v23  ;;  %v396_v30 = vshrl.u32 %v233_v19, 16  ;;  %v399_v31 = vshll.u32 %v233_v19, 16 }
  0x25   : > { %v405_v32 = vshll.u32 %v5352_v20, 16  ;;  %v283_v35 = vrot.slane %v282_v27, 4  ;;  %v409_v37 = vshrl.u32 %v5352_v20, 16  ;;  %v415_v38 = vshll.u32 %v5357_v25, 16 }
  0x26   : > { %v705_v34 = vpack.c.b16 %v686_v26, %v685_v22  ;;  %v293_v39 = vrot.slane %v292_v29, 4  ;;  %v398_v40 = vrot.slane %v396_v30, 4  ;;  %v401_v41 = vrot.slane %v399_v31, 5  ;;  %v225_v22 = vld [vmem:[%s5312_s29 + $0xc] sm:$0xf] }
  0x27   : > { %v407_v42 = vrot.slane %v405_v32, 5  ;;  %v288_v44 = vsel %vm5324_vm3, %v283_v35, %v287_v23  ;;  %v411_v45 = vrot.slane %v409_v37, 4  ;;  %v417_v46 = vrot.slane %v415_v38, 5  ;;  %v5386_v32 = vld [vmem:[%s5312_s29 + $0x14] sm:$0x1] }
  0x28   : > { %4522 = vmatmul.msk.bf16.vlgmr.msra.gmra.mxu3 %vm709_vm4, %v705_v34  ;;  %v492_v48 = vshrl.u32 %v241_v33, 16  ;;  %v298_v49 = vsel %vm5324_vm3, %v293_v39, %v297_v28  ;;  %v661_v50 = vunpack.c.l.b16 %v288_v44  ;;  %v402_v51 = vor.u32 %v401_v41, %v398_v40  ;;  %v5383_v28 = vld [vmem:[%s5312_s29 + $0x10] sm:$0xf] }
  0x29   : > { %v495_v52 = vshll.u32 %v241_v33, 16  ;;  %v662_v53 = vunpack.c.l.b16 %v298_v49  ;;  %v412_v54 = vor.u32 %v411_v45, %v407_v42  ;;  %v501_v56 = vshll.u32 %v242_v43, 16 }
  0x2a   : > { %v494_v55 = vrot.slane %v492_v48, 4  ;;  %v403_v57 = vrot.slane %v402_v51, 4  ;;  %v505_v59 = vshrl.u32 %v242_v43, 16  ;;  %v511_v60 = vshll.u32 %v265_v47, 16  ;;  %v5396_v47 = vld [vmem:[%s5312_s29 + $0x4c] sm:$0xf] }
  0x2b   : > { %v497_v58 = vrot.slane %v495_v52, 5  ;;  %v693_v62 = vpack.c.b16 %v662_v53, %v661_v50  ;;  %v413_v63 = vrot.slane %v412_v54, 4  ;;  %v503_v0 = vrot.slane %v501_v56, 5  ;;  %v5401_v56 = vld [vmem:[%s5312_s29 + $0x50] sm:$0x1] }
  0x2c   : > { %v408_v4 = vsel %vm5324_vm3, %v403_v57, %v407_v42  ;;  %v507_v6 = vrot.slane %v505_v59, 4  ;;  %v513_v7 = vrot.slane %v511_v60, 5  ;;  %v588_v11 = vshrl.u32 %v249_v61, 16  ;;  %v235_v42 = vld [vmem:[%s5312_s29 + $0x48] sm:$0xf] }
  0x2d   : > { %v498_v5 = vor.u32 %v497_v58, %v494_v55  ;;  %4510 = vmatmul.msk.bf16.vlgmr.msra.gmra.mxu0 %vm709_vm4, %v693_v62  ;;  %v418_v9 = vsel %vm5324_vm3, %v413_v63, %v417_v46  ;;  %v671_v10 = vunpack.c.l.b16 %v408_v4  ;;  %v591_v12 = vshll.u32 %v249_v61, 16 }
  0x2e   : > { %v672_v13 = vunpack.c.l.b16 %v418_v9  ;;  %v508_v15 = vor.u32 %v507_v6, %v503_v0  ;;  %v597_v16 = vshll.u32 %v250_v3, 16  ;;  %v590_v17 = vrot.slane %v588_v11, 4 }
  0x2f   : > { %v499_v14 = vrot.slane %v498_v5, 4  ;;  %v593_v18 = vrot.slane %v591_v12, 5  ;;  %v601_v19 = vshrl.u32 %v250_v3, 16  ;;  %v607_v21 = vshll.u32 %v269_v8, 16  ;;  %v243_v3 = vld [vmem:[%s5312_s29 + $0x78] sm:$0xf] }
  0x30   : > { %v698_v23 = vpack.c.b16 %v672_v13, %v671_v10  ;;  %v509_v26 = vrot.slane %v508_v15, 4  ;;  %v599_v27 = vrot.slane %v597_v16, 5  ;;  %v300_v35 = vshrl.u32 %v225_v22, 16  ;;  %v244_v8 = vld [vmem:[%s5312_s29 + $0x7c] sm:$0xf] }
  0x31   : > { %v504_v24 = vsel %vm5324_vm3, %v499_v14, %v503_v0  ;;  %v594_v30 = vor.u32 %v593_v18, %v590_v17  ;;  %v603_v31 = vrot.slane %v601_v19, 4  ;;  %v609_v34 = vrot.slane %v607_v21, 5  ;;  %v266_v16 = vld [vmem:[%s5312_s29 + $0x80] sm:$0x1] }
  0x32   : > { %v679_v29 = vunpack.c.l.b16 %v504_v24  ;;  %4515 = vmatmul.msk.bf16.gmra.mxu1 %vm709_vm4, %v698_v23  ;;  %v514_v33 = vsel %vm5324_vm3, %v509_v26, %v513_v7  ;;  %v303_v37 = vshll.u32 %v225_v22, 16  ;;  %v309_v41 = vshll.u32 %v5383_v28, 16 }
  0x33   : > { %v680_v38 = vunpack.c.l.b16 %v514_v33  ;;  %v595_v39 = vrot.slane %v594_v30, 4  ;;  %v604_v40 = vor.u32 %v603_v31, %v599_v27  ;;  %v302_v43 = vrot.slane %v300_v35, 4 }
  0x34   : > { %v305_v44 = vrot.slane %v303_v37, 5  ;;  %v313_v45 = vshrl.u32 %v5383_v28, 16  ;;  %v319_v46 = vshll.u32 %v5386_v32, 16  ;;  %v311_v51 = vrot.slane %v309_v41, 5 }
  0x35   : > { %v702_v48 = vpack.c.b16 %v680_v38, %v679_v29  ;;  %v600_v49 = vsel %vm5324_vm3, %v595_v39, %v599_v27  ;;  %v605_v50 = vrot.slane %v604_v40, 4  ;;  %v420_v58 = vshrl.u32 %v235_v42, 16  ;;  %v252_v39 = vld [vmem:[%s5312_s29 + $0xac] sm:$0xf]  ;;  %v270_v40 = vld [vmem:[%s5312_s29 + $0xb0] sm:$0x1] }
  0x36   : > { %v687_v52 = vunpack.c.l.b16 %v600_v49  ;;  %v306_v53 = vor.u32 %v305_v44, %v302_v43  ;;  %v315_v54 = vrot.slane %v313_v45, 4  ;;  %v321_v55 = vrot.slane %v319_v46, 5 }
  0x37   : > { %4519 = vmatmul.msk.bf16.gmra.mxu2 %vm709_vm4, %v702_v48  ;;  %v610_v57 = vsel %vm5324_vm3, %v605_v50, %v609_v34  ;;  %v423_v59 = vshll.u32 %v235_v42, 16  ;;  %v429_v60 = vshll.u32 %v5396_v47, 16  ;;  %v433_v0 = vshrl.u32 %v5396_v47, 16  ;;  %v251_v34 = vld [vmem:[%s5312_s29 + $0xa8] sm:$0xf] }
  0x38   : > { %v688_v61 = vunpack.c.l.b16 %v610_v57  ;;  %v307_v62 = vrot.slane %v306_v53, 4  ;;  %v316_v63 = vor.u32 %v315_v54, %v311_v51  ;;  %v422_v4 = vrot.slane %v420_v58, 4 }
  0x39   : > { %v425_v5 = vrot.slane %v423_v59, 5  ;;  %v431_v6 = vrot.slane %v429_v60, 5  ;;  %v439_v7 = vshll.u32 %v5401_v56, 16  ;;  %v435_v12 = vrot.slane %v433_v0, 4  ;;  %v227_v59 = vld [vmem:[%s5312_s29 + $0x18] sm:$0xf] }
  0x3a   : > { %v706_v9 = vpack.c.b16 %v688_v61, %v687_v52  ;;  %v312_v10 = vsel %vm5324_vm3, %v307_v62, %v311_v51  ;;  %v317_v11 = vrot.slane %v316_v63, 4  ;;  %v516_v17 = vshrl.u32 %v243_v3, 16  ;;  %v5429_v63 = vld [vmem:[%s5312_s29 + $0x1c] sm:$0xf]  ;;  %v5432_v0 = vld [vmem:[%s5312_s29 + $0x20] sm:$0x1] }
  0x3b   : > { %v663_v13 = vunpack.c.l.b16 %v312_v10  ;;  %v426_v14 = vor.u32 %v425_v5, %v422_v4  ;;  %v441_v15 = vrot.slane %v439_v7, 5  ;;  %v436_v19 = vor.u32 %v435_v12, %v431_v6 }
  0x3c   : > { %4523 = vmatmul.msk.bf16.gmra.mxu3 %vm709_vm4, %v706_v9  ;;  %v322_v18 = vsel %vm5324_vm3, %v317_v11, %v321_v55  ;;  %v519_v21 = vshll.u32 %v243_v3, 16  ;;  %v525_v22 = vshll.u32 %v244_v8, 16  ;;  %v518_v26 = vrot.slane %v516_v17, 4 }
  0x3d   : > { %v664_v23 = vunpack.c.l.b16 %v322_v18  ;;  %v427_v24 = vrot.slane %v426_v14, 4  ;;  %v529_v27 = vshrl.u32 %v244_v8, 16  ;;  %v437_v29 = vrot.slane %v436_v19, 4 }
  0x3e   : > { %v521_v30 = vrot.slane %v519_v21, 5  ;;  %v527_v31 = vrot.slane %v525_v22, 5  ;;  %v535_v33 = vshll.u32 %v266_v16, 16  ;;  %v612_v48 = vshrl.u32 %v251_v34, 16  ;;  %v5442_v21 = vld [vmem:[%s5312_s29 + $0x58] sm:$0xf] }
  0x3f   : > { %v694_v35 = vpack.c.b16 %v664_v23, %v663_v13  ;;  %v432_v37 = vsel %vm5324_vm3, %v427_v24, %v431_v6  ;;  %v531_v38 = vrot.slane %v529_v27, 4  ;;  %v442_v41 = vsel %vm5324_vm3, %v437_v29, %v441_v15  ;;  %v237_v15 = vld [vmem:[%s5312_s29 + $0x54] sm:$0xf]  ;;  %v5447_v27 = vld [vmem:[%s5312_s29 + $0x5c] sm:$0x1] }
  0x40   : > { %v673_v42 = vunpack.c.l.b16 %v432_v37  ;;  %v522_v43 = vor.u32 %v521_v30, %v518_v26  ;;  %v537_v44 = vrot.slane %v535_v33, 5  ;;  %v674_v45 = vunpack.c.l.b16 %v442_v41 }
  0x41   : > { %4511 = vmatmul.msk.bf16.gmra.mxu0 %vm709_vm4, %v694_v35  ;;  %v532_v46 = vor.u32 %v531_v38, %v527_v31  ;;  %v615_v49 = vshll.u32 %v251_v34, 16  ;;  %v621_v51 = vshll.u32 %v252_v39, 16  ;;  %v625_v52 = vshrl.u32 %v252_v39, 16  ;;  %v245_v39 = vld [vmem:[%s5312_s29 + $0x84] sm:$0xf] }
  0x42   : > { %v523_v50 = vrot.slane %v522_v43, 4  ;;  %v631_v53 = vshll.u32 %v270_v40, 16  ;;  %v699_v54 = vpack.c.b16 %v674_v45, %v673_v42  ;;  %v614_v57 = vrot.slane %v612_v48, 4 }
  0x43   : > { %v533_v55 = vrot.slane %v532_v46, 4  ;;  %v617_v58 = vrot.slane %v615_v49, 5  ;;  %v623_v61 = vrot.slane %v621_v51, 5  ;;  %v627_v62 = vrot.slane %v625_v52, 4  ;;  %v246_v49 = vld [vmem:[%s5312_s29 + $0x88] sm:$0xf] }
  0x44   : > { %v528_v60 = vsel %vm5324_vm3, %v523_v50, %v527_v31  ;;  %4516 = vmatmul.msk.bf16.gmra.mxu1 %vm709_vm4, %v699_v54  ;;  %v633_v6 = vrot.slane %v631_v53, 5  ;;  %v324_v9 = vshrl.u32 %v227_v59, 16  ;;  %v327_v10 = vshll.u32 %v227_v59, 16  ;;  %v267_v53 = vld [vmem:[%s5312_s29 + $0x8c] sm:$0x1] }
  0x45   : > { %v538_v3 = vsel %vm5324_vm3, %v533_v55, %v537_v44  ;;  %v681_v4 = vunpack.c.l.b16 %v528_v60  ;;  %v618_v5 = vor.u32 %v617_v58, %v614_v57  ;;  %v628_v8 = vor.u32 %v627_v62, %v623_v61 }
  0x46   : > { %v682_v7 = vunpack.c.l.b16 %v538_v3  ;;  %v333_v12 = vshll.u32 %v5429_v63, 16  ;;  %v337_v13 = vshrl.u32 %v5429_v63, 16  ;;  %v343_v14 = vshll.u32 %v5432_v0, 16 }
  0x47   : > { %v619_v11 = vrot.slane %v618_v5, 4  ;;  %v629_v17 = vrot.slane %v628_v8, 4  ;;  %v326_v18 = vrot.slane %v324_v9, 4  ;;  %v329_v19 = vrot.slane %v327_v10, 5  ;;  %v253_v8 = vld [vmem:[%s5312_s29 + $0xb4] sm:$0xf] }
  0x48   : > { %v703_v16 = vpack.c.b16 %v682_v7, %v681_v4  ;;  %v335_v23 = vrot.slane %v333_v12, 5  ;;  %v339_v24 = vrot.slane %v337_v13, 4  ;;  %v345_v26 = vrot.slane %v343_v14, 5  ;;  %v254_v12 = vld [vmem:[%s5312_s29 + $0xb8] sm:$0xf] }
  0x49   : > { %v624_v22 = vsel %vm5324_vm3, %v619_v11, %v623_v61  ;;  %v634_v29 = vsel %vm5324_vm3, %v629_v17, %v633_v6  ;;  %v330_v31 = vor.u32 %v329_v19, %v326_v18  ;;  %v444_v33 = vshrl.u32 %v237_v15, 16  ;;  %v271_v17 = vld [vmem:[%s5312_s29 + $0xbc] sm:$0x1] }
  0x4a   : > { %4520 = vmatmul.msk.bf16.gmra.mxu2 %vm709_vm4, %v703_v16  ;;  %v689_v30 = vunpack.c.l.b16 %v624_v22  ;;  %v690_v34 = vunpack.c.l.b16 %v634_v29  ;;  %v340_v35 = vor.u32 %v339_v24, %v335_v23  ;;  %v447_v37 = vshll.u32 %v237_v15, 16 }
  0x4b   : > { %v453_v38 = vshll.u32 %v5442_v21, 16  ;;  %v331_v40 = vrot.slane %v330_v31, 4  ;;  %v446_v41 = vrot.slane %v444_v33, 4  ;;  %v457_v42 = vshrl.u32 %v5442_v21, 16 }
  0x4c   : > { %v463_v43 = vshll.u32 %v5447_v27, 16  ;;  %v707_v44 = vpack.c.b16 %v690_v34, %v689_v30  ;;  %v341_v45 = vrot.slane %v340_v35, 4  ;;  %v449_v46 = vrot.slane %v447_v37, 5  ;;  %v229_v37 = vld [vmem:[%s5312_s29 + $0x24] sm:$0xf] }
  0x4d   : > { %v455_v48 = vrot.slane %v453_v38, 5  ;;  %v336_v50 = vsel %vm5324_vm3, %v331_v40, %v335_v23  ;;  %v459_v51 = vrot.slane %v457_v42, 4  ;;  %v540_v54 = vshrl.u32 %v245_v39, 16  ;;  %v5475_v42 = vld [vmem:[%s5312_s29 + $0x28] sm:$0xf] }
  0x4e   : > { %v465_v52 = vrot.slane %v463_v43, 5  ;;  %4524 = vmatmul.msk.bf16.gmra.mxu3 %vm709_vm4, %v707_v44  ;;  %v346_v55 = vsel %vm5324_vm3, %v341_v45, %v345_v26  ;;  %v665_v57 = vunpack.c.l.b16 %v336_v50  ;;  %v450_v58 = vor.u32 %v449_v46, %v446_v41 }
  0x4f   : > { %v543_v59 = vshll.u32 %v245_v39, 16  ;;  %v666_v60 = vunpack.c.l.b16 %v346_v55  ;;  %v460_v61 = vor.u32 %v459_v51, %v455_v48  ;;  %v542_v62 = vrot.slane %v540_v54, 4 }
  0x50   : > { %v549_v3 = vshll.u32 %v246_v49, 16  ;;  %v451_v4 = vrot.slane %v450_v58, 4  ;;  %v553_v6 = vshrl.u32 %v246_v49, 16  ;;  %v559_v7 = vshll.u32 %v267_v53, 16 }
  0x51   : > { %v545_v5 = vrot.slane %v543_v59, 5  ;;  %v695_v9 = vpack.c.b16 %v666_v60, %v665_v57  ;;  %v461_v10 = vrot.slane %v460_v61, 4  ;;  %v636_v22 = vshrl.u32 %v253_v8, 16  ;;  %v1071_v61 = vld [vmem:[%s5312_s29] sm:$0xe] }
  0x52   : > { %v551_v11 = vrot.slane %v549_v3, 5  ;;  %v456_v13 = vsel %vm5324_vm3, %v451_v4, %v455_v48  ;;  %v555_v15 = vrot.slane %v553_v6, 4  ;;  %v561_v16 = vrot.slane %v559_v7, 5  ;;  %v5479_v48 = vld [vmem:[%s5312_s29 + $0x2c] sm:$0x1] }
  0x53   : > { %v546_v14 = vor.u32 %v545_v5, %v542_v62  ;;  %4512 = vmatmul.msk.bf16.gmra.mxu0 %vm709_vm4, %v695_v9  ;;  %v466_v18 = vsel %vm5324_vm3, %v461_v10, %v465_v52  ;;  %v675_v19 = vunpack.c.l.b16 %v456_v13  ;;  %v639_v23 = vshll.u32 %v253_v8, 16  ;;  %v4752_v6 = vld [vmem:[%s5312_s29 + $0xc] sm:$0xf] }
  0x54   : > { %v676_v24 = vunpack.c.l.b16 %v466_v18  ;;  %v556_v29 = vor.u32 %v555_v15, %v551_v11  ;;  %v645_v30 = vshll.u32 %v254_v12, 16  ;;  %v638_v31 = vrot.slane %v636_v22, 4 }
  0x55   : > { %v547_v26 = vrot.slane %v546_v14, 4  ;;  %v641_v33 = vrot.slane %v639_v23, 5  ;;  %v649_v34 = vshrl.u32 %v254_v12, 16  ;;  %v655_v35 = vshll.u32 %v271_v17, 16  ;;  %v4753_v12 = vld [vmem:[%s5312_s29 + $0x10] sm:$0xf] }
  0x56   : > { %v700_v38 = vpack.c.b16 %v676_v24, %v675_v19  ;;  %v557_v40 = vrot.slane %v556_v29, 4  ;;  %v647_v41 = vrot.slane %v645_v30, 5  ;;  %v1127_v43 = vrot.slane %v5340_v2, 5 }
  0x57   : > { %v552_v39 = vsel %vm5324_vm3, %v547_v26, %v551_v11  ;;  %v642_v45 = vor.u32 %v641_v33, %v638_v31  ;;  %v651_v46 = vrot.slane %v649_v34, 4  ;;  %v657_v50 = vrot.slane %v655_v35, 5  ;;  %v4898_v11 = vld [vmem:[%s6703_s1 + $0xc] sm:$0x3] }
  0x58   : > { %v683_v44 = vunpack.c.l.b16 %v552_v39  ;;  %4517 = vmatmul.msk.bf16.gmra.mxu1 %vm709_vm4, %v700_v38  ;;  %v562_v49 = vsel %vm5324_vm3, %v557_v40, %v561_v16  ;;  %v348_v51 = vshrl.u32 %v229_v37, 16  ;;  %v351_v52 = vshll.u32 %v229_v37, 16  ;;  %v4754_v38 = vld [vmem:[%s5312_s29 + $0x14] sm:$0x1] }
  0x59   : > { %v684_v53 = vunpack.c.l.b16 %v562_v49  ;;  %v643_v54 = vrot.slane %v642_v45, 4  ;;  %v652_v55 = vor.u32 %v651_v46, %v647_v41  ;;  %v357_v2 = vshll.u32 %v5475_v42, 16  ;;  %v5027_v45 = vld [vmem:[%s6703_s1 + $0xe] sm:$0x3] }
  0x5a   : > { %v350_v57 = vrot.slane %v348_v51, 4  ;;  %v353_v58 = vrot.slane %v351_v52, 5  ;;  %v361_v59 = vshrl.u32 %v5475_v42, 16  ;;  %v367_v60 = vshll.u32 %v5479_v48, 16  ;;  %v5096_v51 = vld [vmem:[%s5312_s29] sm:$0xff] }
  0x5b   : > { %v704_v62 = vpack.c.b16 %v684_v53, %v683_v44  ;;  %v648_v3 = vsel %vm5324_vm3, %v643_v54, %v647_v41  ;;  %v653_v4 = vrot.slane %v652_v55, 4  ;;  %v359_v5 = vrot.slane %v357_v2, 5  ;;  %v5076_v2 = vld [vmem:[%s6703_s1 + $0x10] sm:$0x3] }
  0x5c   : > { %v691_v7 = vunpack.c.l.b16 %v648_v3  ;;  %v354_v8 = vor.u32 %v353_v58, %v350_v57  ;;  %v363_v9 = vrot.slane %v361_v59, 4  ;;  %v369_v10 = vrot.slane %v367_v60, 5 }
  0x5d   : > { %4521 = vmatmul.msk.bf16.gmra.mxu2 %vm709_vm4, %v704_v62  ;;  %v658_v13 = vsel %vm5324_vm3, %v653_v4, %v657_v50  ;;  %v4606_v14 = vrot.slane %v1071_v61, 9  ;;  %v1124_v19 = vrot.slane %v5337_v1, 5  ;;  %v2959_v22 = vsel %vm758_vm0, %v4898_v11, 0  ;;  %v4849_v50 = vld [vmem:[%s6703_s1 + $0xa] sm:$0x3] }
  0x5e   : > { %v692_v15 = vunpack.c.l.b16 %v658_v13  ;;  %v355_v16 = vrot.slane %v354_v8, 4  ;;  %v364_v17 = vor.u32 %v363_v9, %v359_v5  ;;  %v1792_v23 = vshrl.u32 %v4752_v6, 16  ;;  %2968 = vmatpush.bf16.msra.mxu2 %v2959_v22  ;;  %v1072_v8 = vld [vmem:[%s5312_s29 + $0xc] sm:$0xe] }
  0x5f   : > { %v1795_v24 = vshll.u32 %v4752_v6, 16  ;;  %v1801_v26 = vshll.u32 %v4753_v12, 16  ;;  %v1125_v33 = vsel %vm5498_vm7, %v4606_v14, %v1124_v19  ;;  %v1126_v35 = vrot.slane %v1124_v19, 4  ;;  %v4756_v6 = vld [vmem:[%s5312_s29 + $0x1c] sm:$0xf] }
  0x60   : > { %v708_v29 = vpack.c.b16 %v692_v15, %v691_v7  ;;  %v360_v30 = vsel %vm5324_vm3, %v355_v16, %v359_v5  ;;  %v365_v31 = vrot.slane %v364_v17, 4  ;;  %v1236_v37 = vunpack.c.l.b16 %v1125_v33  ;;  %v4755_v5 = vld [vmem:[%s5312_s29 + $0x18] sm:$0xf]  ;;  %v5112_v15 = vld [vmem:[%s5312_s29 + $0xc] sm:$0xff] }
  0x61   : > { %v667_v34 = vunpack.c.l.b16 %v360_v30  ;;  %v1794_v1 = vrot.slane %v1792_v23, 4  ;;  %v1797_v40 = vrot.slane %v1795_v24, 5  ;;  %v1803_v41 = vrot.slane %v1801_v26, 5  ;;  %v4757_v30 = vld [vmem:[%s5312_s29 + $0x20] sm:$0x1] }
  0x62   : > { %4525 = vmatmul.msk.bf16.gmra.mxu3 %vm709_vm4, %v708_v29  ;;  %v370_v39 = vsel %vm5324_vm3, %v365_v31, %v369_v10  ;;  %v1805_v44 = vshrl.u32 %v4753_v12, 16  ;;  %v1128_v49 = vsel %vm5498_vm7, %v1126_v35, %v1127_v43  ;;  %v1811_v55 = vshll.u32 %v4754_v38, 16  ;;  %v5097_v35 = vld [vmem:[%s5312_s29 + $0xc] sm:$0xff] }
  0x63   : > { %v668_v46 = vunpack.c.l.b16 %v370_v39  ;;  %v1237_v52 = vunpack.c.l.b16 %v1128_v49  ;;  %v1798_v53 = vor.u32 %v1797_v40, %v1794_v1  ;;  %v3613_v58 = vsel %vm758_vm0, %v5027_v45, 0 }
  0x64   : > { %v1807_v54 = vrot.slane %v1805_v44, 4  ;;  %3622 = vmatpush.bf16.msra.mxu3 %v3613_v58  ;;  %v2672_v60 = vsel %vm758_vm0, %v4849_v50, 0  ;;  %v4011_v61 = vsel %vm758_vm0, %v5076_v2, 0  ;;  %v1813_v4 = vrot.slane %v1811_v55, 5  ;;  %v1073_v50 = vld [vmem:[%s5312_s29 + $0x18] sm:$0xe] }
  0x65   : > { %v696_v57 = vpack.c.b16 %v668_v46, %v667_v34  ;;  %v1268_v43 = vpack.c.b16 %v1237_v52, %v1236_v37  ;;  %2681 = vmatpush.bf16.msra.mxu1 %v2672_v60  ;;  %v1799_v62 = vrot.slane %v1798_v53, 4  ;;  %4020 = vmatpush.bf16.msra.mxu0 %v4011_v61  ;;  %v1131_v7 = vrot.slane %v5383_v28, 5  ;;  %v4759_v46 = vld [vmem:[%s5312_s29 + $0x28] sm:$0xf] }
  0x66   : > { %v1808_v59 = vor.u32 %v1807_v54, %v1803_v41  ;;  %v1816_v9 = vshrl.u32 %v4755_v5, 16  ;;  %v1819_v10 = vshll.u32 %v4755_v5, 16  ;;  %v1825_v13 = vshll.u32 %v4756_v6, 16 }
  0x67   : > { %4513 = vmatmul.msk.bf16.gmra.mxu0 %vm709_vm4, %v696_v57  ;;  %v1804_v11 = vsel %vm5324_vm3, %v1799_v62, %v1803_v41  ;;  %v1829_v14 = vshrl.u32 %v4756_v6, 16  ;;  %v4607_v16 = vrot.slane %v1072_v8, 9  ;;  %v1133_v17 = vrot.slane %v1131_v7, 4  ;;  %v4758_v41 = vld [vmem:[%s5312_s29 + $0x24] sm:$0xf] }
  0x68   : > { %4590 = vmatmul.msk.bf16.vlgmr.msrb.gmra.mxu1 %vm709_vm4, %v5096_v51  ;;  %v1809_v3 = vrot.slane %v1808_v59, 4  ;;  %v1134_v28 = vrot.slane %v5386_v32, 5  ;;  %v2177_v19 = vunpack.c.l.b16 %v1804_v11  ;;  %v1818_v23 = vrot.slane %v1816_v9, 4  ;;  %v4760_v6 = vld [vmem:[%s5312_s29 + $0x2c] sm:$0x1] }
  0x69   : > { %v1821_v24 = vrot.slane %v1819_v10, 5  ;;  %v1827_v26 = vrot.slane %v1825_v13, 5  ;;  %v1831_v29 = vrot.slane %v1829_v14, 4  ;;  %v1132_v31 = vsel %vm5498_vm7, %v4607_v16, %v1131_v7 }
  0x6a   : > { %v1814_v12 = vsel %vm5324_vm3, %v1809_v3, %v1813_v4  ;;  %v1135_v33 = vsel %vm5498_vm7, %v1133_v17, %v1134_v28  ;;  %v1835_v38 = vshll.u32 %v4757_v30, 16  ;;  %v1238_v1 = vunpack.c.l.b16 %v1132_v31 }
  0x6b   : > { %v2178_v22 = vunpack.c.l.b16 %v1814_v12  ;;  %v1822_v32 = vor.u32 %v1821_v24, %v1818_v23  ;;  %v1832_v37 = vor.u32 %v1831_v29, %v1827_v26  ;;  %v1239_v39 = vunpack.c.l.b16 %v1135_v33  ;;  %v5098_v12 = vld [vmem:[%s5312_s29 + $0x18] sm:$0xff]  ;;  %v1074_v29 = vld [vmem:[%s5312_s29 + $0x24] sm:$0xe] }
  0x6c   : > { %v1837_v45 = vrot.slane %v1835_v38, 5  ;;  %v1138_v51 = vrot.slane %v5429_v63, 5  ;;  %v1840_v52 = vshrl.u32 %v4758_v41, 16  ;;  %v1843_v54 = vshll.u32 %v4758_v41, 16 }
  0x6d   : > { %4623 = vmatmul.msk.bf16.vlgmr.msrb.gmra.mxu2 %vm709_vm4, %v1268_v43  ;;  %v2209_v34 = vpack.c.b16 %v2178_v22, %v2177_v19  ;;  %v1823_v40 = vrot.slane %v1822_v32, 4  ;;  %v1833_v44 = vrot.slane %v1832_v37, 4  ;;  %v1269_v49 = vpack.c.b16 %v1239_v39, %v1238_v1  ;;  %v5113_v43 = vld [vmem:[%s5312_s29 + $0x18] sm:$0xff]  ;;  %v4761_v19 = vld [vmem:[%s5312_s29 + $0x30] sm:$0xf]  ;;  %v5114_v32 = vld [vmem:[%s5312_s29 + $0x24] sm:$0xff] }
  0x6e   : > { %v1849_v55 = vshll.u32 %v4759_v46, 16  ;;  %v1853_v2 = vshrl.u32 %v4759_v46, 16  ;;  %v4608_v58 = vrot.slane %v1073_v50, 9  ;;  %v1140_v60 = vrot.slane %v1138_v51, 4  ;;  %v4762_v22 = vld [vmem:[%s5312_s29 + $0x34] sm:$0xf] }
  0x6f   : > { %v1828_v53 = vsel %vm5324_vm3, %v1823_v40, %v1827_v26  ;;  %v1838_v57 = vsel %vm5324_vm3, %v1833_v44, %v1837_v45  ;;  %v1141_v63 = vrot.slane %v5432_v0, 5  ;;  %v1842_v61 = vrot.slane %v1840_v52, 4  ;;  %v4763_v45 = vld [vmem:[%s5312_s29 + $0x38] sm:$0x1] }
  0x70   : > { %v2179_v59 = vunpack.c.l.b16 %v1828_v53  ;;  %v2180_v62 = vunpack.c.l.b16 %v1838_v57  ;;  %v1845_v3 = vrot.slane %v1843_v54, 5  ;;  %v1851_v4 = vrot.slane %v1849_v55, 5  ;;  %v4765_v57 = vld [vmem:[%s5312_s29 + $0x40] sm:$0xf] }
  0x71   : > { %v1855_v5 = vrot.slane %v1853_v2, 4  ;;  %v1139_v7 = vsel %vm5498_vm7, %v4608_v58, %v1138_v51  ;;  %v1142_v8 = vsel %vm5498_vm7, %v1140_v60, %v1141_v63  ;;  %v1859_v0 = vshll.u32 %v4760_v6, 16  ;;  %v4764_v2 = vld [vmem:[%s5312_s29 + $0x3c] sm:$0xf]  ;;  %v5173_v63 = vld [vmem:[%s5312_s29 + $0x34] sm:$0xf] }
  0x72   : > { %4736 = vmatmul.msk.bf16.vlgmr.msrb.gmra.mxu3 %vm709_vm4, %v5112_v15  ;;  %v2210_v9 = vpack.c.b16 %v2180_v62, %v2179_v59  ;;  %v1846_v10 = vor.u32 %v1845_v3, %v1842_v61  ;;  %v1240_v13 = vunpack.c.l.b16 %v1139_v7  ;;  %v1241_v14 = vunpack.c.l.b16 %v1142_v8  ;;  %v1075_v62 = vld [vmem:[%s5312_s29 + $0x30] sm:$0xe] }
  0x73   : > { %v1856_v11 = vor.u32 %v1855_v5, %v1851_v4  ;;  %v1861_v17 = vrot.slane %v1859_v0, 5  ;;  %v1145_v23 = vrot.slane %v5475_v42, 5  ;;  %v1864_v30 = vshrl.u32 %v4761_v19, 16  ;;  %v5174_v0 = vld [vmem:[%s5312_s29 + $0x38] sm:$0x1] }
  0x74   : > { %v1847_v15 = vrot.slane %v1846_v10, 4  ;;  %v1270_v28 = vpack.c.b16 %v1241_v14, %v1240_v13  ;;  %v1867_v31 = vshll.u32 %v4761_v19, 16  ;;  %v1873_v33 = vshll.u32 %v4762_v22, 16  ;;  %v5115_v13 = vld [vmem:[%s5312_s29 + $0x30] sm:$0xff] }
  0x75   : > { %v1857_v16 = vrot.slane %v1856_v11, 4  ;;  %v1147_v37 = vrot.slane %v1145_v23, 4  ;;  %v1148_v42 = vrot.slane %v5479_v48, 5  ;;  %v1866_v39 = vrot.slane %v1864_v30, 4  ;;  %v5099_v48 = vld [vmem:[%s5312_s29 + $0x24] sm:$0xff] }
  0x76   : > { %v1852_v24 = vsel %vm5324_vm3, %v1847_v15, %v1851_v4  ;;  %v1869_v40 = vrot.slane %v1867_v31, 5  ;;  %v1875_v41 = vrot.slane %v1873_v33, 5  ;;  %v1883_v53 = vshll.u32 %v4763_v45, 16  ;;  %v5100_v33 = vld [vmem:[%s5312_s29 + $0x30] sm:$0xff] }
  0x77   : > { %4801 = vmatmul.msk.bf16.vlgmr.msrb.gmra.mxu0 %vm709_vm4, %v2209_v34  ;;  %v1862_v26 = vsel %vm5324_vm3, %v1857_v16, %v1861_v17  ;;  %v1877_v34 = vshrl.u32 %v4762_v22, 16  ;;  %v2181_v38 = vunpack.c.l.b16 %v1852_v24  ;;  %v1152_v61 = vrot.slane %v5173_v63, 5  ;;  %v4766_v22 = vld [vmem:[%s5312_s29 + $0x44] sm:$0x1] }
  0x78   : > { %4591 = vmatmul.msk.bf16.gmra.mxu1 %vm709_vm4, %v5097_v35  ;;  %v4609_v35 = vrot.slane %v1074_v29, 9  ;;  %v2182_v1 = vunpack.c.l.b16 %v1862_v26  ;;  %v1870_v51 = vor.u32 %v1869_v40, %v1866_v39  ;;  %v1885_v59 = vrot.slane %v1883_v53, 5  ;;  %v4767_v39 = vld [vmem:[%s5312_s29 + $0x48] sm:$0xf]  ;;  %v4768_v40 = vld [vmem:[%s5312_s29 + $0x4c] sm:$0xf] }
  0x79   : > { %v1879_v44 = vrot.slane %v1877_v34, 4  ;;  %v1888_v3 = vshrl.u32 %v4764_v2, 16  ;;  %v1891_v4 = vshll.u32 %v4764_v2, 16  ;;  %v1897_v5 = vshll.u32 %v4765_v57, 16  ;;  %v5116_v2 = vld [vmem:[%s5312_s29 + $0x3c] sm:$0xff] }
  0x7a   : > { %v1146_v46 = vsel %vm5498_vm7, %v4609_v35, %v1145_v23  ;;  %v2211_v50 = vpack.c.b16 %v2182_v1, %v2181_v38  ;;  %v1871_v58 = vrot.slane %v1870_v51, 4  ;;  %v1901_v6 = vshrl.u32 %v4765_v57, 16 }
  0x7b   : > { %v1880_v52 = vor.u32 %v1879_v44, %v1875_v41  ;;  %v1242_v54 = vunpack.c.l.b16 %v1146_v46  ;;  %v4610_v10 = vrot.slane %v1075_v62, 9  ;;  %v1154_v11 = vrot.slane %v1152_v61, 4 }
  0x7c   : > { %v1876_v8 = vsel %vm5324_vm3, %v1871_v58, %v1875_v41  ;;  %v1890_v14 = vrot.slane %v1888_v3, 4  ;;  %v1893_v15 = vrot.slane %v1891_v4, 5  ;;  %v1899_v16 = vrot.slane %v1897_v5, 5  ;;  %v4769_v4 = vld [vmem:[%s5312_s29 + $0x50] sm:$0x1] }
  0x7d   : > { %4624 = vmatmul.msk.bf16.gmra.mxu2 %vm709_vm4, %v1269_v49  ;;  %v1149_v49 = vsel %vm5498_vm7, %v1147_v37, %v1148_v42  ;;  %v1903_v17 = vrot.slane %v1901_v6, 4  ;;  %v1153_v23 = vsel %vm5498_vm7, %v4610_v10, %v1152_v61  ;;  %v1907_v30 = vshll.u32 %v4766_v22, 16 }
  0x7e   : > { %v1243_v55 = vunpack.c.l.b16 %v1149_v49  ;;  %v1894_v26 = vor.u32 %v1893_v15, %v1890_v14  ;;  %v1912_v51 = vshrl.u32 %v4767_v39, 16  ;;  %v1921_v53 = vshll.u32 %v4768_v40, 16 }
  0x7f   : > { %v1904_v29 = vor.u32 %v1903_v17, %v1899_v16  ;;  %v1909_v1 = vrot.slane %v1907_v30, 5 }
  0x80   : > { %v1271_v60 = vpack.c.b16 %v1243_v55, %v1242_v54  ;;  %v1895_v42 = vrot.slane %v1894_v26, 4  ;;  %v1925_v54 = vshrl.u32 %v4768_v40, 16  ;;  %v1923_v62 = vrot.slane %v1921_v53, 5 }
  0x81   : > { %v1905_v38 = vrot.slane %v1904_v29, 4  ;;  %v1166_v26 = vrot.slane %v5396_v47, 5 }
  0x82   : > { %4737 = vmatmul.msk.bf16.gmra.mxu3 %vm709_vm4, %v5113_v43  ;;  %v1881_v43 = vrot.slane %v1880_v52, 4  ;;  %v1900_v45 = vsel %vm5324_vm3, %v1895_v42, %v1899_v16  ;;  %v1915_v52 = vshll.u32 %v4767_v39, 16  ;;  %v1927_v3 = vrot.slane %v1925_v54, 4  ;;  %v4772_v54 = vld [vmem:[%s5312_s29 + $0x5c] sm:$0x1] }
  0x83   : > { %v1910_v46 = vsel %vm5324_vm3, %v1905_v38, %v1909_v1  ;;  %v2185_v55 = vunpack.c.l.b16 %v1900_v45  ;;  %v5117_v1 = vld [vmem:[%s5312_s29 + $0x48] sm:$0xff]  ;;  %v1168_v40 = vrot.slane %v1166_v26, 4 }
  0x84   : > { %v2186_v57 = vunpack.c.l.b16 %v1910_v46  ;;  %v1917_v61 = vrot.slane %v1915_v52, 5  ;;  %v1928_v10 = vor.u32 %v1927_v3, %v1923_v62 }
  0x86   : > { %v1929_v16 = vrot.slane %v1928_v10, 4 }
  0x87   : > { %4802 = vmatmul.msk.bf16.gmra.mxu0 %vm709_vm4, %v2210_v9  ;;  %v1886_v9 = vsel %vm5324_vm3, %v1881_v43, %v1885_v59 }
  0x88   : > { %4592 = vmatmul.msk.bf16.gmra.mxu1 %vm709_vm4, %v5098_v12  ;;  %v1155_v12 = vrot.slane %v5174_v0, 5  ;;  %v2184_v19 = vunpack.c.l.b16 %v1886_v9 }
  0x8a   : > { %v1156_v24 = vsel %vm5498_vm7, %v1154_v11, %v1155_v12  ;;  %v1931_v11 = vshll.u32 %v4769_v4, 16  ;;  %v5101_v12 = vld [vmem:[%s5312_s29 + $0x3c] sm:$0xff] }
  0x8b   : > { %v1245_v35 = vunpack.c.l.b16 %v1156_v24  ;;  %v4771_v24 = vld [vmem:[%s5312_s29 + $0x58] sm:$0xf]  ;;  %v4773_v4 = vld [vmem:[%s5312_s29 + $0x60] sm:$0xf] }
  0x8c   : > { %v1933_v17 = vrot.slane %v1931_v11, 5  ;;  %v1949_v42 = vshrl.u32 %v4771_v24, 16 }
  0x8d   : > { %4625 = vmatmul.msk.bf16.gmra.mxu2 %vm709_vm4, %v1270_v28  ;;  %v2183_v28 = vunpack.c.l.b16 %v1876_v8  ;;  %v2213_v8 = vpack.c.b16 %v2186_v57, %v2185_v55 }
  0x8e   : > { %v1934_v30 = vsel %vm5324_vm3, %v1929_v16, %v1933_v17  ;;  %v1951_v52 = vrot.slane %v1949_v42, 4 }
  0x8f   : > { %v2212_v31 = vpack.c.b16 %v2184_v19, %v2183_v28  ;;  %v2188_v46 = vunpack.c.l.b16 %v1934_v30 }
  0x92   : > { %4738 = vmatmul.msk.bf16.gmra.mxu3 %vm709_vm4, %v5114_v32  ;;  %v1244_v32 = vunpack.c.l.b16 %v1153_v23  ;;  %v4770_v23 = vld [vmem:[%s5312_s29 + $0x54] sm:$0xf] }
  0x94   : > { %v1272_v44 = vpack.c.b16 %v1245_v35, %v1244_v32  ;;  %v1939_v32 = vshll.u32 %v4770_v23, 16  ;;  %v1945_v35 = vshll.u32 %v4771_v24, 16 }
  0x97   : > { %4803 = vmatmul.msk.bf16.gmra.mxu0 %vm709_vm4, %v2211_v50  ;;  %v1159_v50 = vrot.slane %v5352_v20, 5  ;;  %v1914_v20 = vrot.slane %v1912_v51, 4  ;;  %v1947_v51 = vrot.slane %v1945_v35, 5  ;;  %v1176_v35 = vrot.slane %v5447_v27, 5 }
  0x98   : > { %4593 = vmatmul.msk.bf16.gmra.mxu1 %vm709_vm4, %v5099_v48  ;;  %v1076_v48 = vld [vmem:[%s5312_s29 + $0x3c] sm:$0xe] }
  0x99   : > { %v4611_v43 = vrot.slane %v1076_v48, 9  ;;  %v1161_v59 = vrot.slane %v1159_v50, 4  ;;  %v1941_v48 = vrot.slane %v1939_v32, 5 }
  0x9b   : > { %v1160_v5 = vsel %vm5498_vm7, %v4611_v43, %v1159_v50  ;;  %v5102_v43 = vld [vmem:[%s5312_s29 + $0x48] sm:$0xff] }
  0x9d   : > { %v5593_v7 = vpop.f32.mrf.mxu1  ;;  %4626 = vmatmul.msk.bf16.gmra.mxu2 %vm709_vm4, %v1271_v60  ;;  %v1162_v60 = vrot.slane %v5357_v25, 5  ;;  %v1918_v25 = vor.u32 %v1917_v61, %v1914_v20  ;;  %v1955_v20 = vshll.u32 %v4772_v54, 16  ;;  %v5103_v54 = vld [vmem:[%s5312_s29 + $0x54] sm:$0xff] }
  0x9f   : > { %v1163_v6 = vsel %vm5498_vm7, %v1161_v59, %v1162_v60  ;;  %v1919_v15 = vrot.slane %v1918_v25, 4  ;;  %v1952_v60 = vor.u32 %v1951_v52, %v1947_v51  ;;  %v1957_v10 = vrot.slane %v1955_v20, 5 }
  0xa0   : > { %v1247_v14 = vunpack.c.l.b16 %v1163_v6 }
  0xa1   : > { %v1924_v29 = vsel %vm5324_vm3, %v1919_v15, %v1923_v62  ;;  %v1953_v25 = vrot.slane %v1952_v60, 4  ;;  %v1173_v15 = vrot.slane %v5442_v21, 5 }
  0xa2   : > { %4739 = vmatmul.msk.bf16.gmra.mxu3 %vm709_vm4, %v5115_v13  ;;  %v1246_v13 = vunpack.c.l.b16 %v1160_v5  ;;  %v2187_v45 = vunpack.c.l.b16 %v1924_v29  ;;  %v4774_v5 = vld [vmem:[%s5312_s29 + $0x64] sm:$0xf] }
  0xa3   : > { %v1973_v16 = vshrl.u32 %v4774_v5, 16  ;;  %v1958_v24 = vsel %vm5324_vm3, %v1953_v25, %v1957_v10  ;;  %v1175_v32 = vrot.slane %v1173_v15, 4  ;;  %v5175_v10 = vld [vmem:[%s5312_s29 + $0x64] sm:$0xf] }
  0xa4   : > { %v1273_v19 = vpack.c.b16 %v1247_v14, %v1246_v13  ;;  %v2214_v57 = vpack.c.b16 %v2188_v46, %v2187_v45  ;;  %v1963_v13 = vshll.u32 %v4773_v4, 16  ;;  %v1969_v14 = vshll.u32 %v4774_v5, 16 }
  0xa5   : > { %v5609_v34 = vpop.f32.mrf.mxu1  ;;  %v1975_v42 = vrot.slane %v1973_v16, 4 }
  0xa6   : > { %v1965_v30 = vrot.slane %v1963_v13, 5  ;;  %v1079_v13 = vld [vmem:[%s5312_s29 + $0x60] sm:$0xe] }
  0xa7   : > { %v5611_v37 = vpop.f32.mrf.mxu2  ;;  %4804 = vmatmul.msk.bf16.gmra.mxu0 %vm709_vm4, %v2212_v31  ;;  %v1077_v31 = vld [vmem:[%s5312_s29 + $0x48] sm:$0xe] }
  0xa8   : > { %4594 = vmatmul.msk.bf16.gmra.mxu1 %vm709_vm4, %v5100_v33  ;;  %v1936_v33 = vshrl.u32 %v4770_v23, 16  ;;  %v4612_v47 = vrot.slane %v1077_v31, 9  ;;  %v1971_v31 = vrot.slane %v1969_v14, 5 }
  0xaa   : > { %v5617_v41 = vpop.f32.mrf.mxu0  ;;  %v1938_v50 = vrot.slane %v1936_v33, 4  ;;  %v5118_v33 = vld [vmem:[%s5312_s29 + $0x54] sm:$0xff]  ;;  %v1976_v27 = vor.u32 %v1975_v42, %v1971_v31 }
  0xab   : > { %v5623_v49 = vpop.f32.mrf.mxu3 }
  0xac   : > { %v1942_v59 = vor.u32 %v1941_v48, %v1938_v50  ;;  %v1177_v48 = vsel %vm5498_vm7, %v1175_v32, %v1176_v35  ;;  %v1977_v60 = vrot.slane %v1976_v27, 4 }
  0xad   : > { %4627 = vmatmul.msk.bf16.gmra.mxu2 %vm709_vm4, %v1272_v44  ;;  %v1169_v44 = vrot.slane %v5401_v56, 5 }
  0xaf   : > { %v5629_v58 = vpop.f32.mrf.mxu1  ;;  %v5632_v63 = vpop.f32.mrf.mxu2  ;;  %v1170_v56 = vsel %vm5498_vm7, %v1168_v40, %v1169_v44  ;;  %v4775_v40 = vld [vmem:[%s5312_s29 + $0x68] sm:$0x1] }
  0xb0   : > { %v1249_v62 = vunpack.c.l.b16 %v1170_v56 }
  0xb2   : > { %4740 = vmatmul.msk.bf16.gmra.mxu3 %vm709_vm4, %v5116_v2  ;;  %v5640_v9 = vpop.f32.mrf.mxu0  ;;  %v1167_v2 = vsel %vm5498_vm7, %v4612_v47, %v1166_v26  ;;  %v2190_v47 = vunpack.c.l.b16 %v1958_v24 }
  0xb3   : > { %v5642_v0 = vpop.f32.mrf.mxu3  ;;  %v1248_v61 = vunpack.c.l.b16 %v1167_v2 }
  0xb5   : > { %v1274_v11 = vpack.c.b16 %v1249_v62, %v1248_v61  ;;  %v4776_v61 = vld [vmem:[%s5312_s29 + $0x6c] sm:$0xf]  ;;  %v4777_v62 = vld [vmem:[%s5312_s29 + $0x70] sm:$0xf] }
  0xb6   : > { %v1984_v14 = vshrl.u32 %v4776_v61, 16  ;;  %v1993_v16 = vshll.u32 %v4777_v62, 16 }
  0xb7   : > { %4805 = vmatmul.msk.bf16.gmra.mxu0 %vm709_vm4, %v2213_v8  ;;  %v5646_v28 = vpop.f32.mrf.mxu1  ;;  %v1943_v8 = vrot.slane %v1942_v59, 4 }
  0xb8   : > { %4595 = vmatmul.msk.bf16.gmra.mxu1 %vm709_vm4, %v5101_v12  ;;  %v1960_v12 = vshrl.u32 %v4773_v4, 16  ;;  %v1986_v35 = vrot.slane %v1984_v14, 4  ;;  %v4780_v14 = vld [vmem:[%s5312_s29 + $0x7c] sm:$0xf] }
  0xb9   : > { %v1948_v23 = vsel %vm5324_vm3, %v1943_v8, %v1947_v51  ;;  %v1979_v51 = vshll.u32 %v4775_v40, 16 }
  0xba   : > { %v5649_v22 = vpop.f32.mrf.mxu2  ;;  %v1962_v29 = vrot.slane %v1960_v12, 4 }
  0xbb   : > { %v1981_v20 = vrot.slane %v1979_v51, 5 }
  0xbc   : > { %v1966_v46 = vor.u32 %v1965_v30, %v1962_v29  ;;  %v5119_v30 = vld [vmem:[%s5312_s29 + $0x60] sm:$0xff] }
  0xbd   : > { %4628 = vmatmul.msk.bf16.gmra.mxu2 %vm709_vm4, %v1273_v19  ;;  %v1078_v19 = vld [vmem:[%s5312_s29 + $0x54] sm:$0xe]  ;;  %v1982_v25 = vsel %vm5324_vm3, %v1977_v60, %v1981_v20 }
  0xbe   : > { %v5659_v38 = vpop.f32.mrf.mxu0  ;;  %v4613_v21 = vrot.slane %v1078_v19, 9  ;;  %v1967_v59 = vrot.slane %v1966_v46, 4  ;;  %v1997_v19 = vshrl.u32 %v4777_v62, 16  ;;  %v4778_v46 = vld [vmem:[%s5312_s29 + $0x74] sm:$0x1] }
  0xbf   : > { %v5663_v39 = vpop.f32.mrf.mxu3 }
  0xc0   : > { %v1174_v50 = vsel %vm5498_vm7, %v4613_v21, %v1173_v15  ;;  %v1972_v8 = vsel %vm5324_vm3, %v1967_v59, %v1971_v31  ;;  %v1987_v15 = vshll.u32 %v4776_v61, 16  ;;  %v4614_v21 = vrot.slane %v1079_v13, 9  ;;  %v4779_v13 = vld [vmem:[%s5312_s29 + $0x78] sm:$0xf] }
  0xc1   : > { %v5666_v53 = vpop.f32.mrf.mxu1  ;;  %v1250_v56 = vunpack.c.l.b16 %v1174_v50  ;;  %v2191_v31 = vunpack.c.l.b16 %v1972_v8 }
  0xc2   : > { %4741 = vmatmul.msk.bf16.gmra.mxu3 %vm709_vm4, %v5117_v1  ;;  %v5670_v55 = vpop.f32.mrf.mxu2  ;;  %v2189_v1 = vunpack.c.l.b16 %v1948_v23  ;;  %v5176_v23 = vld [vmem:[%s5312_s29 + $0x68] sm:$0x1]  ;;  %v1989_v42 = vrot.slane %v1987_v15, 5  ;;  %v5177_v15 = vld [vmem:[%s5312_s29 + $0x70] sm:$0xf] }
  0xc3   : > { %v1183_v24 = vrot.slane %v5176_v23, 5  ;;  %v1080_v23 = vld [vmem:[%s5312_s29 + $0x6c] sm:$0xe] }
  0xc4   : > { %v2215_v52 = vpack.c.b16 %v2190_v47, %v2189_v1  ;;  %v1995_v1 = vrot.slane %v1993_v16, 5  ;;  %v1999_v47 = vrot.slane %v1997_v19, 4  ;;  %v1990_v51 = vor.u32 %v1989_v42, %v1986_v35  ;;  %v5178_v42 = vld [vmem:[%s5312_s29 + $0x74] sm:$0x1] }
  0xc5   : > { %v1187_v16 = vrot.slane %v5177_v15, 5 }
  0xc6   : > { %v5677_v3 = vpop.f32.mrf.mxu0 }
  0xc7   : > { %4806 = vmatmul.msk.bf16.gmra.mxu0 %vm709_vm4, %v2214_v57  ;;  %v5682_v6 = vpop.f32.mrf.mxu3  ;;  %v1251_v57 = vunpack.c.l.b16 %v1177_v48 }
  0xc8   : > { %4596 = vmatmul.msk.bf16.gmra.mxu1 %vm709_vm4, %v5102_v43 }
  0xc9   : > { %v5686_v17 = vpop.f32.mrf.mxu1  ;;  %v1275_v4 = vpack.c.b16 %v1251_v57, %v1250_v56  ;;  %v5104_v57 = vld [vmem:[%s5312_s29 + $0x60] sm:$0xff] }
  0xcd   : > { %v5693_v26 = vpop.f32.mrf.mxu2  ;;  %4629 = vmatmul.msk.bf16.gmra.mxu2 %vm709_vm4, %v1274_v11  ;;  %v1180_v11 = vrot.slane %v5175_v10, 5 }
  0xcf   : > { %v1182_v32 = vrot.slane %v1180_v11, 4  ;;  %v1181_v50 = vsel %vm5498_vm7, %v4614_v21, %v1180_v11  ;;  %v2021_v21 = vshrl.u32 %v4780_v14, 16 }
  0xd0   : > { %v5699_v44 = vpop.f32.mrf.mxu0  ;;  %v1252_v20 = vunpack.c.l.b16 %v1181_v50  ;;  %v4615_v50 = vrot.slane %v1080_v23, 9 }
  0xd1   : > { %v5701_v45 = vpop.f32.mrf.mxu3  ;;  %v1184_v48 = vsel %vm5498_vm7, %v1182_v32, %v1183_v24 }
  0xd2   : > { %4742 = vmatmul.msk.bf16.gmra.mxu3 %vm709_vm4, %v5118_v33  ;;  %v2192_v33 = vunpack.c.l.b16 %v1982_v25  ;;  %v1253_v61 = vunpack.c.l.b16 %v1184_v48  ;;  %v1189_v48 = vrot.slane %v1187_v16, 4 }
  0xd4   : > { %v2216_v27 = vpack.c.b16 %v2192_v33, %v2191_v31  ;;  %v1276_v11 = vpack.c.b16 %v1253_v61, %v1252_v20  ;;  %v2011_v31 = vshll.u32 %v4779_v13, 16  ;;  %v2017_v33 = vshll.u32 %v4780_v14, 16 }
  0xd5   : > { %v5709_v2 = vpop.f32.mrf.mxu1  ;;  %v5711_v43 = vpop.f32.mrf.mxu2  ;;  %v2023_v20 = vrot.slane %v2021_v21, 4 }
  0xd7   : > { %4807 = vmatmul.msk.bf16.gmra.mxu0 %vm709_vm4, %v2215_v52  ;;  %v2000_v52 = vor.u32 %v1999_v47, %v1995_v1  ;;  %v1190_v47 = vrot.slane %v5178_v42, 5 }
  0xd8   : > { %4597 = vmatmul.msk.bf16.gmra.mxu1 %vm709_vm4, %v5103_v54  ;;  %v5717_v5 = vpop.f32.mrf.mxu0  ;;  %v2003_v54 = vshll.u32 %v4778_v46, 16  ;;  %v5120_v46 = vld [vmem:[%s5312_s29 + $0x6c] sm:$0xff] }
  0xd9   : > { %v5724_v12 = vpop.f32.mrf.mxu3  ;;  %v2001_v8 = vrot.slane %v2000_v52, 4 }
  0xda   : > { %v2005_v25 = vrot.slane %v2003_v54, 5 }
  0xdd   : > { %4630 = vmatmul.msk.bf16.gmra.mxu2 %vm709_vm4, %v1275_v4  ;;  %v5729_v29 = vpop.f32.mrf.mxu1  ;;  %v1991_v4 = vrot.slane %v1990_v51, 4 }
  0xdf   : > { %v1996_v19 = vsel %vm5324_vm3, %v1991_v4, %v1995_v1  ;;  %v4781_v4 = vld [vmem:[%s5312_s29 + $0x80] sm:$0x1] }
  0xe0   : > { %v5732_v40 = vpop.f32.mrf.mxu2 }
  0xe2   : > { %4743 = vmatmul.msk.bf16.gmra.mxu3 %vm709_vm4, %v5119_v30  ;;  %v2008_v30 = vshrl.u32 %v4779_v13, 16  ;;  %v5105_v13 = vld [vmem:[%s5312_s29 + $0x6c] sm:$0xff] }
  0xe4   : > { %v5740_v56 = vpop.f32.mrf.mxu0  ;;  %v2010_v54 = vrot.slane %v2008_v30, 4 }
  0xe5   : > { %v5743_v59 = vpop.f32.mrf.mxu3  ;;  %v991_v60 = vpop.f32.mrf.mxu1 }
  0xe6   : > { %v992_v62 = vadd.f32 %v991_v60, %v5617_v41  ;;  %v2006_v41 = vsel %vm5324_vm3, %v2001_v8, %v2005_v25  ;;  %v2019_v60 = vrot.slane %v2017_v33, 5  ;;  %v1188_v8 = vsel %vm5498_vm7, %v4615_v50, %v1187_v16 }
  0xe7   : > { %4808 = vmatmul.msk.bf16.gmra.mxu0 %vm709_vm4, %v2216_v27  ;;  %v2193_v27 = vunpack.c.l.b16 %v1996_v19  ;;  %v2194_v51 = vunpack.c.l.b16 %v2006_v41  ;;  %v2027_v19 = vshll.u32 %v4781_v4, 16 }
  0xe8   : > { %v5747_v10 = vpop.f32.mrf.mxu2  ;;  %4598 = vmatmul.msk.bf16.gmra.mxu1 %vm709_vm4, %v5104_v57  ;;  %v2013_v57 = vrot.slane %v2011_v31, 5  ;;  %v2024_v15 = vor.u32 %v2023_v20, %v2019_v60 }
  0xe9   : > { %v2217_v25 = vpack.c.b16 %v2194_v51, %v2193_v27  ;;  %v2029_v42 = vrot.slane %v2027_v19, 5  ;;  %v4783_v27 = vld [vmem:[%s5312_s29 + $0x88] sm:$0xf]  ;;  %v5179_v51 = vld [vmem:[%s5312_s29 + $0x7c] sm:$0xf] }
  0xea   : > { %v2014_v14 = vor.u32 %v2013_v57, %v2010_v54  ;;  %v1081_v54 = vld [vmem:[%s5312_s29 + $0x78] sm:$0xe] }
  0xec   : > { %v5758_v24 = vpop.f32.mrf.mxu0  ;;  %v2015_v21 = vrot.slane %v2014_v14, 4 }
  0xed   : > { %v5760_v32 = vpop.f32.mrf.mxu3  ;;  %4631 = vmatmul.msk.bf16.gmra.mxu2 %vm709_vm4, %v1276_v11  ;;  %v993_v35 = vpop.f32.mrf.mxu1 }
  0xee   : > { %v994_v1 = vadd.f32 %v993_v35, %v5640_v9  ;;  %v1191_v9 = vsel %vm5498_vm7, %v1189_v48, %v1190_v47  ;;  %v2025_v35 = vrot.slane %v2024_v15, 4  ;;  %v4782_v47 = vld [vmem:[%s5312_s29 + $0x84] sm:$0xf]  ;;  %v5121_v15 = vld [vmem:[%s5312_s29 + $0x78] sm:$0xff] }
  0xef   : > { %v1255_v30 = vunpack.c.l.b16 %v1191_v9  ;;  %v2035_v57 = vshll.u32 %v4782_v47, 16  ;;  %v2045_v9 = vshrl.u32 %v4783_v27, 16 }
  0xf0   : > { %v1344_v52 = vpop.f32.mrf.mxu2  ;;  %v2030_v4 = vsel %vm5324_vm3, %v2025_v35, %v2029_v42 }
  0xf1   : > { %v1424_v61 = vadd.f32 %v1344_v52, %v992_v62  ;;  %v1254_v62 = vunpack.c.l.b16 %v1188_v8  ;;  %v1194_v52 = vrot.slane %v5179_v51, 5  ;;  %v2041_v8 = vshll.u32 %v4783_v27, 16 }
  0xf2   : > { %4744 = vmatmul.msk.bf16.gmra.mxu3 %vm709_vm4, %v5120_v46  ;;  %v2047_v35 = vrot.slane %v2045_v9, 4 }
  0xf3   : > { %v1277_v48 = vpack.c.b16 %v1255_v30, %v1254_v62 }
  0xf4   : > { %v2285_v11 = vpop.f32.mrf.mxu0 }
  0xf5   : > { %v1631_v41 = vpop.f32.mrf.mxu3  ;;  %v996_v23 = vpop.f32.mrf.mxu1 }
  0xf6   : > { %v1711_v31 = vadd.f32 %v1631_v41, %v1424_v61  ;;  %v997_v16 = vadd.f32 %v996_v23, %v5659_v38  ;;  %v2032_v38 = vshrl.u32 %v4782_v47, 16  ;;  %v2020_v61 = vsel %vm5324_vm3, %v2015_v21, %v2019_v60 }
  0xf7   : > { %4809 = vmatmul.msk.bf16.gmra.mxu0 %vm709_vm4, %v2217_v25  ;;  %v5180_v25 = vld [vmem:[%s5312_s29 + $0x80] sm:$0x1]  ;;  %v4616_v41 = vrot.slane %v1081_v54, 9  ;;  %v1196_v23 = vrot.slane %v1194_v52, 4  ;;  %v2195_v62 = vunpack.c.l.b16 %v2020_v61  ;;  %v2196_v60 = vunpack.c.l.b16 %v2030_v4 }
  0xf8   : > { %v1346_v33 = vpop.f32.mrf.mxu2  ;;  %4599 = vmatmul.msk.bf16.gmra.mxu1 %vm709_vm4, %v5105_v13  ;;  %v5777_v46 = vadd.f32 %v2285_v11, %v1711_v31  ;;  %v1197_v11 = vrot.slane %v5180_v25, 5  ;;  %v2034_v30 = vrot.slane %v2032_v38, 4  ;;  %v2037_v31 = vrot.slane %v2035_v57, 5  ;;  %v5106_v38 = vld [vmem:[%s5312_s29 + $0x78] sm:$0xff] }
  0xf9   : > { %v1425_v50 = vadd.f32 %v1346_v33, %v994_v1  ;;  %v2043_v21 = vrot.slane %v2041_v8, 5  ;;  %v2218_v27 = vpack.c.b16 %v2196_v60, %v2195_v62  ;;  %v4786_v62 = vld [vmem:[%s5312_s29 + $0x94] sm:$0xf]  ;;  %v5181_v60 = vld [vmem:[%s5312_s29 + $0x88] sm:$0xf] }
  0xfa   : > { %v2038_v51 = vor.u32 %v2037_v31, %v2034_v30  ;;  %v1201_v30 = vrot.slane %v5181_v60, 5  ;;  %v1082_v31 = vld [vmem:[%s5312_s29 + $0x84] sm:$0xe] }
  0xfb   : > { %v2048_v57 = vor.u32 %v2047_v35, %v2043_v21 }
  0xfc   : > { %v2287_v20 = vpop.f32.mrf.mxu0  ;;  %v2039_v25 = vrot.slane %v2038_v51, 4 }
  0xfd   : > { %v1633_v1 = vpop.f32.mrf.mxu3  ;;  %4632 = vmatmul.msk.bf16.gmra.mxu2 %vm709_vm4, %v1277_v48  ;;  %v998_v13 = vpop.f32.mrf.mxu1  ;;  %v4784_v48 = vld [vmem:[%s5312_s29 + $0x8c] sm:$0x1] }
  0xfe   : > { %v1712_v14 = vadd.f32 %v1633_v1, %v1425_v50  ;;  %v999_v19 = vadd.f32 %v998_v13, %v5677_v3  ;;  %v1195_v50 = vsel %vm5498_vm7, %v4616_v41, %v1194_v52  ;;  %v1198_v3 = vsel %vm5498_vm7, %v1196_v23, %v1197_v11 }
  0xff   : > { %v2051_v61 = vshll.u32 %v4784_v48, 16  ;;  %v1257_v8 = vunpack.c.l.b16 %v1198_v3  ;;  %v2049_v1 = vrot.slane %v2048_v57, 4  ;;  %v2069_v3 = vshrl.u32 %v4786_v62, 16  ;;  %v5122_v57 = vld [vmem:[%s5312_s29 + $0x84] sm:$0xff] }
 0x100   : > { %v1349_v33 = vpop.f32.mrf.mxu2  ;;  %v5790_v42 = vadd.f32 %v2287_v20, %v1712_v14  ;;  %v4785_v14 = vld [vmem:[%s5312_s29 + $0x90] sm:$0xf] }
 0x101   : > { %v1426_v47 = vadd.f32 %v1349_v33, %v997_v16  ;;  %v1256_v16 = vunpack.c.l.b16 %v1195_v50  ;;  %v2053_v13 = vrot.slane %v2051_v61, 5  ;;  %v2056_v33 = vshrl.u32 %v4785_v14, 16 }
 0x102   : > { %4745 = vmatmul.msk.bf16.gmra.mxu3 %vm709_vm4, %v5121_v15  ;;  %v2059_v48 = vshll.u32 %v4785_v14, 16  ;;  %v2065_v50 = vshll.u32 %v4786_v62, 16  ;;  %v4617_v61 = vrot.slane %v1082_v31, 9 }
 0x103   : > { %v1278_v23 = vpack.c.b16 %v1257_v8, %v1256_v16  ;;  %v2058_v8 = vrot.slane %v2056_v33, 4 }
 0x104   : > { %v2290_v54 = vpop.f32.mrf.mxu0 }
 0x105   : > { %v1636_v4 = vpop.f32.mrf.mxu3  ;;  %v1001_v20 = vpop.f32.mrf.mxu1 }
 0x106   : > { %v1713_v9 = vadd.f32 %v1636_v4, %v1426_v47  ;;  %v1002_v52 = vadd.f32 %v1001_v20, %v5699_v44  ;;  %v2044_v44 = vsel %vm5324_vm3, %v2039_v25, %v2043_v21  ;;  %v2054_v47 = vsel %vm5324_vm3, %v2049_v1, %v2053_v13 }
 0x107   : > { %4810 = vmatmul.msk.bf16.gmra.mxu0 %vm709_vm4, %v2218_v27  ;;  %v5182_v27 = vld [vmem:[%s5312_s29 + $0x8c] sm:$0x1]  ;;  %v1203_v4 = vrot.slane %v1201_v30, 4  ;;  %v2197_v20 = vunpack.c.l.b16 %v2044_v44  ;;  %v2198_v16 = vunpack.c.l.b16 %v2054_v47  ;;  %v2061_v25 = vrot.slane %v2059_v48, 5  ;;  %v5107_v44 = vld [vmem:[%s5312_s29 + $0x84] sm:$0xff] }
 0x108   : > { %v1351_v11 = vpop.f32.mrf.mxu2  ;;  %4600 = vmatmul.msk.bf16.gmra.mxu1 %vm709_vm4, %v5106_v38  ;;  %v5803_v15 = vadd.f32 %v2290_v54, %v1713_v9  ;;  %v1204_v51 = vrot.slane %v5182_v27, 5  ;;  %v2071_v1 = vrot.slane %v2069_v3, 4 }
 0x109   : > { %v1427_v41 = vadd.f32 %v1351_v11, %v999_v19  ;;  %v2067_v11 = vrot.slane %v2065_v50, 5  ;;  %v2219_v62 = vpack.c.b16 %v2198_v16, %v2197_v20  ;;  %v2062_v31 = vor.u32 %v2061_v25, %v2058_v8  ;;  %v4789_v20 = vld [vmem:[%s5312_s29 + $0xa0] sm:$0xf]  ;;  %v5183_v16 = vld [vmem:[%s5312_s29 + $0x94] sm:$0xf] }
 0x10a   : > { %v1208_v8 = vrot.slane %v5183_v16, 5 }
 0x10b   : > { %v2072_v33 = vor.u32 %v2071_v1, %v2067_v11 }
 0x10c   : > { %v2292_v35 = vpop.f32.mrf.mxu0 }
 0x10d   : > { %v1638_v19 = vpop.f32.mrf.mxu3  ;;  %4633 = vmatmul.msk.bf16.gmra.mxu2 %vm709_vm4, %v1278_v23  ;;  %v1003_v54 = vpop.f32.mrf.mxu1  ;;  %v4787_v23 = vld [vmem:[%s5312_s29 + $0x98] sm:$0x1] }
 0x10e   : > { %v1714_v38 = vadd.f32 %v1638_v19, %v1427_v41  ;;  %v1004_v21 = vadd.f32 %v1003_v54, %v5717_v5  ;;  %v1202_v41 = vsel %vm5498_vm7, %v4617_v61, %v1201_v30  ;;  %v1205_v5 = vsel %vm5498_vm7, %v1203_v4, %v1204_v51 }
 0x10f   : > { %v2075_v47 = vshll.u32 %v4787_v23, 16  ;;  %v1259_v50 = vunpack.c.l.b16 %v1205_v5  ;;  %v2063_v51 = vrot.slane %v2062_v31, 4  ;;  %v2073_v19 = vrot.slane %v2072_v33, 4  ;;  %v5123_v33 = vld [vmem:[%s5312_s29 + $0x90] sm:$0xff] }
 0x110   : > { %v1354_v9 = vpop.f32.mrf.mxu2  ;;  %v5816_v13 = vadd.f32 %v2292_v35, %v1714_v38  ;;  %v4788_v38 = vld [vmem:[%s5312_s29 + $0x9c] sm:$0xf]  ;;  %v2093_v5 = vshrl.u32 %v4789_v20, 16 }
 0x111   : > { %v1428_v14 = vadd.f32 %v1354_v9, %v1002_v52  ;;  %v1258_v52 = vunpack.c.l.b16 %v1202_v41  ;;  %v2077_v54 = vrot.slane %v2075_v47, 5  ;;  %v1083_v9 = vld [vmem:[%s5312_s29 + $0x90] sm:$0xe]  ;;  %v2083_v25 = vshll.u32 %v4788_v38, 16 }
 0x112   : > { %4746 = vmatmul.msk.bf16.gmra.mxu3 %vm709_vm4, %v5122_v57  ;;  %v2089_v41 = vshll.u32 %v4789_v20, 16 }
 0x113   : > { %v1279_v4 = vpack.c.b16 %v1259_v50, %v1258_v52  ;;  %v2078_v23 = vsel %vm5324_vm3, %v2073_v19, %v2077_v54  ;;  %v2095_v19 = vrot.slane %v2093_v5, 4 }
 0x114   : > { %v2295_v60 = vpop.f32.mrf.mxu0 }
 0x115   : > { %v1641_v48 = vpop.f32.mrf.mxu3  ;;  %v1006_v35 = vpop.f32.mrf.mxu1 }
 0x116   : > { %v1715_v3 = vadd.f32 %v1641_v48, %v1428_v14  ;;  %v1007_v30 = vadd.f32 %v1006_v35, %v5740_v56  ;;  %v2080_v56 = vshrl.u32 %v4788_v38, 16  ;;  %v2068_v14 = vsel %vm5324_vm3, %v2063_v51, %v2067_v11 }
 0x117   : > { %4811 = vmatmul.msk.bf16.gmra.mxu0 %vm709_vm4, %v2219_v62  ;;  %v5184_v62 = vld [vmem:[%s5312_s29 + $0x98] sm:$0x1]  ;;  %v4618_v48 = vrot.slane %v1083_v9, 9  ;;  %v1210_v35 = vrot.slane %v1208_v8, 4  ;;  %v2199_v52 = vunpack.c.l.b16 %v2068_v14  ;;  %v2200_v11 = vunpack.c.l.b16 %v2078_v23 }
 0x118   : > { %v1356_v27 = vpop.f32.mrf.mxu2  ;;  %4601 = vmatmul.msk.bf16.gmra.mxu1 %vm709_vm4, %v5107_v44  ;;  %v5829_v57 = vadd.f32 %v2295_v60, %v1715_v3  ;;  %v1211_v60 = vrot.slane %v5184_v62, 5  ;;  %v2082_v50 = vrot.slane %v2080_v56, 4  ;;  %v2085_v3 = vrot.slane %v2083_v25, 5  ;;  %v5108_v56 = vld [vmem:[%s5312_s29 + $0x90] sm:$0xff] }
 0x119   : > { %v1429_v61 = vadd.f32 %v1356_v27, %v1004_v21  ;;  %v2091_v51 = vrot.slane %v2089_v41, 5  ;;  %v2220_v20 = vpack.c.b16 %v2200_v11, %v2199_v52  ;;  %v4792_v11 = vld [vmem:[%s5312_s29 + $0xac] sm:$0xf] }
 0x11a   : > { %v2086_v16 = vor.u32 %v2085_v3, %v2082_v50  ;;  %v1084_v50 = vld [vmem:[%s5312_s29 + $0x9c] sm:$0xe] }
 0x11b   : > { %v2096_v25 = vor.u32 %v2095_v19, %v2091_v51 }
 0x11c   : > { %v2297_v1 = vpop.f32.mrf.mxu0 }
 0x11d   : > { %v1643_v21 = vpop.f32.mrf.mxu3  ;;  %4634 = vmatmul.msk.bf16.gmra.mxu2 %vm709_vm4, %v1279_v4  ;;  %v1008_v44 = vpop.f32.mrf.mxu1  ;;  %v4790_v4 = vld [vmem:[%s5312_s29 + $0xa4] sm:$0x1] }
 0x11e   : > { %v1716_v31 = vadd.f32 %v1643_v21, %v1429_v61  ;;  %v1009_v47 = vadd.f32 %v1008_v44, %v5758_v24  ;;  %v1209_v61 = vsel %vm5498_vm7, %v4618_v48, %v1208_v8  ;;  %v1212_v24 = vsel %vm5498_vm7, %v1210_v35, %v1211_v60  ;;  %v4791_v44 = vld [vmem:[%s5312_s29 + $0xa8] sm:$0xf]  ;;  %v5185_v35 = vld [vmem:[%s5312_s29 + $0xa0] sm:$0xf] }
 0x11f   : > { %v2099_v14 = vshll.u32 %v4790_v4, 16  ;;  %v1261_v41 = vunpack.c.l.b16 %v1212_v24  ;;  %v2087_v8 = vrot.slane %v2086_v16, 4  ;;  %v2097_v60 = vrot.slane %v2096_v25, 4 }
 0x120   : > { %v1359_v27 = vpop.f32.mrf.mxu2  ;;  %v5842_v54 = vadd.f32 %v2297_v1, %v1716_v31  ;;  %v1215_v52 = vrot.slane %v5185_v35, 5  ;;  %v2107_v19 = vshll.u32 %v4791_v44, 16  ;;  %v2117_v24 = vshrl.u32 %v4792_v11, 16 }
 0x121   : > { %v1430_v38 = vadd.f32 %v1359_v27, %v1007_v30  ;;  %v1260_v30 = vunpack.c.l.b16 %v1209_v61  ;;  %v2101_v21 = vrot.slane %v2099_v14, 5  ;;  %v2092_v3 = vsel %vm5324_vm3, %v2087_v8, %v2091_v51 }
 0x122   : > { %4747 = vmatmul.msk.bf16.gmra.mxu3 %vm709_vm4, %v5123_v33  ;;  %v2104_v27 = vshrl.u32 %v4791_v44, 16  ;;  %v2113_v61 = vshll.u32 %v4792_v11, 16  ;;  %v1217_v25 = vrot.slane %v1215_v52, 4  ;;  %v2201_v51 = vunpack.c.l.b16 %v2092_v3  ;;  %v4793_v11 = vld [vmem:[%s5312_s29 + $0xb0] sm:$0x1]  ;;  %v5109_v3 = vld [vmem:[%s5312_s29 + $0x9c] sm:$0xff] }
 0x123   : > { %v1280_v48 = vpack.c.b16 %v1261_v41, %v1260_v30  ;;  %v2102_v4 = vsel %vm5324_vm3, %v2097_v60, %v2101_v21  ;;  %v2109_v8 = vrot.slane %v2107_v19, 5  ;;  %v2119_v21 = vrot.slane %v2117_v24, 4 }
 0x124   : > { %v2300_v9 = vpop.f32.mrf.mxu0  ;;  %v2202_v41 = vunpack.c.l.b16 %v2102_v4  ;;  %v2115_v60 = vrot.slane %v2113_v61, 5  ;;  %v2123_v4 = vshll.u32 %v4793_v11, 16 }
 0x125   : > { %v1646_v1 = vpop.f32.mrf.mxu3  ;;  %v1011_v23 = vpop.f32.mrf.mxu1 }
 0x126   : > { %v1717_v5 = vadd.f32 %v1646_v1, %v1430_v38  ;;  %v5124_v1 = vld [vmem:[%s5312_s29 + $0x9c] sm:$0xff]  ;;  %v1012_v30 = vadd.f32 %v1011_v23, %v5593_v7  ;;  %v2221_v7 = vpack.c.b16 %v2202_v41, %v2201_v51  ;;  %v2125_v51 = vrot.slane %v2123_v4, 5 }
 0x127   : > { %4812 = vmatmul.msk.bf16.gmra.mxu0 %vm709_vm4, %v2220_v20  ;;  %v5186_v20 = vld [vmem:[%s5312_s29 + $0xa4] sm:$0x1] }
 0x128   : > { %v1361_v62 = vpop.f32.mrf.mxu2  ;;  %4602 = vmatmul.msk.bf16.gmra.mxu1 %vm709_vm4, %v5108_v56  ;;  %v5854_v31 = vadd.f32 %v2300_v9, %v1717_v5  ;;  %v1218_v16 = vrot.slane %v5186_v20, 5  ;;  %v4619_v56 = vrot.slane %v1084_v50, 9  ;;  %v2106_v5 = vrot.slane %v2104_v27, 4 }
 0x129   : > { %v1431_v33 = vadd.f32 %v1361_v62, %v1009_v47 }
 0x12a   : > { %v2110_v23 = vor.u32 %v2109_v8, %v2106_v5 }
 0x12c   : > { %v2302_v38 = vpop.f32.mrf.mxu0 }
 0x12d   : > { %v1648_v47 = vpop.f32.mrf.mxu3  ;;  %4635 = vmatmul.msk.bf16.gmra.mxu2 %vm709_vm4, %v1280_v48  ;;  %v1013_v9 = vpop.f32.mrf.mxu1  ;;  %v1216_v48 = vsel %vm5498_vm7, %v4619_v56, %v1215_v52  ;;  %v4794_v52 = vld [vmem:[%s5312_s29 + $0xb4] sm:$0xf]  ;;  %v2111_v56 = vrot.slane %v2110_v23, 4 }
 0x12e   : > { %v1718_v14 = vadd.f32 %v1648_v47, %v1431_v33  ;;  %v1219_v33 = vsel %vm5498_vm7, %v1217_v25, %v1218_v16  ;;  %v1262_v27 = vunpack.c.l.b16 %v1216_v48  ;;  %v4795_v47 = vld [vmem:[%s5312_s29 + $0xb8] sm:$0xf]  ;;  %v1014_v16 = vadd.f32 %v1013_v9, %v5609_v34 }
 0x12f   : > { %v1263_v19 = vunpack.c.l.b16 %v1219_v33  ;;  %v2128_v5 = vshrl.u32 %v4794_v52, 16  ;;  %v2131_v8 = vshll.u32 %v4794_v52, 16  ;;  %v2141_v48 = vshrl.u32 %v4795_v47, 16  ;;  %v1085_v33 = vld [vmem:[%s5312_s29 + $0xa8] sm:$0xe] }
 0x130   : > { %v1364_v62 = vpop.f32.mrf.mxu2  ;;  %v5867_v44 = vadd.f32 %v2302_v38, %v1718_v14  ;;  %v2120_v38 = vor.u32 %v2119_v21, %v2115_v60  ;;  %v5187_v21 = vld [vmem:[%s5312_s29 + $0xac] sm:$0xf]  ;;  %v2116_v9 = vsel %vm5324_vm3, %v2111_v56, %v2115_v60 }
 0x131   : > { %v1432_v35 = vadd.f32 %v1364_v62, %v1012_v30  ;;  %v1281_v14 = vpack.c.b16 %v1263_v19, %v1262_v27  ;;  %v2137_v62 = vshll.u32 %v4795_v47, 16  ;;  %v2130_v27 = vrot.slane %v2128_v5, 4 }
 0x132   : > { %4748 = vmatmul.msk.bf16.gmra.mxu3 %vm709_vm4, %v5124_v1  ;;  %v2121_v1 = vrot.slane %v2120_v38, 4  ;;  %v2133_v19 = vrot.slane %v2131_v8, 5  ;;  %v2143_v47 = vrot.slane %v2141_v48, 4  ;;  %v5110_v48 = vld [vmem:[%s5312_s29 + $0xa8] sm:$0xff] }
 0x133   : > { %v2139_v38 = vrot.slane %v2137_v62, 5 }
 0x134   : > { %v2305_v50 = vpop.f32.mrf.mxu0  ;;  %v2126_v11 = vsel %vm5324_vm3, %v2121_v1, %v2125_v51 }
 0x135   : > { %v1651_v61 = vpop.f32.mrf.mxu3  ;;  %v1016_v24 = vpop.f32.mrf.mxu1  ;;  %v2204_v56 = vunpack.c.l.b16 %v2126_v11  ;;  %v2144_v8 = vor.u32 %v2143_v47, %v2139_v38 }
 0x136   : > { %v1719_v20 = vadd.f32 %v1651_v61, %v1432_v35  ;;  %v1222_v35 = vrot.slane %v5187_v21, 5  ;;  %v5125_v61 = vld [vmem:[%s5312_s29 + $0xa8] sm:$0xff]  ;;  %v1017_v60 = vadd.f32 %v1016_v24, %v5629_v58 }
 0x137   : > { %4813 = vmatmul.msk.bf16.gmra.mxu0 %vm709_vm4, %v2221_v7  ;;  %v5188_v7 = vld [vmem:[%s5312_s29 + $0xb0] sm:$0x1] }
 0x138   : > { %v1366_v25 = vpop.f32.mrf.mxu2  ;;  %4603 = vmatmul.msk.bf16.gmra.mxu1 %vm709_vm4, %v5109_v3  ;;  %v5881_v30 = vadd.f32 %v2305_v50, %v1719_v20  ;;  %v1225_v23 = vrot.slane %v5188_v7, 5  ;;  %v4620_v20 = vrot.slane %v1085_v33, 9  ;;  %v1224_v52 = vrot.slane %v1222_v35, 4 }
 0x139   : > { %v1433_v41 = vadd.f32 %v1366_v25, %v1014_v16  ;;  %v2203_v16 = vunpack.c.l.b16 %v2116_v9  ;;  %v4796_v25 = vld [vmem:[%s5312_s29 + $0xbc] sm:$0x1] }
 0x13a   : > { %v1226_v5 = vsel %vm5498_vm7, %v1224_v52, %v1225_v23  ;;  %v2147_v58 = vshll.u32 %v4796_v25, 16  ;;  %v4798_v52 = vld [vmem:[%s5312_s29 + $0xc4] sm:$0xf] }
 0x13b   : > { %v2222_v24 = vpack.c.b16 %v2204_v56, %v2203_v16  ;;  %v1265_v11 = vunpack.c.l.b16 %v1226_v5  ;;  %v1086_v16 = vld [vmem:[%s5312_s29 + $0xb4] sm:$0xe]  ;;  %v5190_v56 = vld [vmem:[%s5312_s29 + $0xb8] sm:$0xf]  ;;  %v2165_v5 = vshrl.u32 %v4798_v52, 16 }
 0x13c   : > { %v2307_v34 = vpop.f32.mrf.mxu0  ;;  %v1229_v25 = vrot.slane %v5190_v56, 5 }
 0x13d   : > { %v1653_v50 = vpop.f32.mrf.mxu3  ;;  %4636 = vmatmul.msk.bf16.gmra.mxu2 %vm709_vm4, %v1281_v14  ;;  %v1018_v3 = vpop.f32.mrf.mxu1  ;;  %v2134_v14 = vor.u32 %v2133_v19, %v2130_v27  ;;  %v2149_v27 = vrot.slane %v2147_v58, 5  ;;  %v4797_v19 = vld [vmem:[%s5312_s29 + $0xc0] sm:$0xf]  ;;  %v5191_v58 = vld [vmem:[%s5312_s29 + $0x14] sm:$0x1] }
 0x13e   : > { %v1720_v4 = vadd.f32 %v1653_v50, %v1433_v41  ;;  %v1223_v41 = vsel %vm5498_vm7, %v4620_v20, %v1222_v35  ;;  %v2145_v35 = vrot.slane %v2144_v8, 4  ;;  %v1019_v23 = vadd.f32 %v1018_v3, %v5646_v28 }
 0x13f   : > { %v1264_v9 = vunpack.c.l.b16 %v1223_v41  ;;  %v2135_v50 = vrot.slane %v2134_v14, 4  ;;  %v2152_v3 = vshrl.u32 %v4797_v19, 16  ;;  %v2155_v14 = vshll.u32 %v4797_v19, 16  ;;  %v5126_v19 = vld [vmem:[%s5312_s29 + $0xb4] sm:$0xff] }
 0x140   : > { %v1369_v1 = vpop.f32.mrf.mxu2  ;;  %v5894_v51 = vadd.f32 %v2307_v34, %v1720_v4  ;;  %v5189_v4 = vld [vmem:[%s5312_s29 + $0x10] sm:$0xf]  ;;  %v2150_v28 = vsel %vm5324_vm3, %v2145_v35, %v2149_v27  ;;  %v2161_v41 = vshll.u32 %v4798_v52, 16  ;;  %v1231_v35 = vrot.slane %v1229_v25, 4  ;;  %v4817_v27 = vld [vmem:[%s5312_s29 + $0xc] sm:$0xe] }
 0x141   : > { %v1434_v21 = vadd.f32 %v1369_v1, %v1017_v60  ;;  %v1282_v60 = vpack.c.b16 %v1265_v11, %v1264_v9  ;;  %v5192_v9 = vld [vmem:[%s5312_s29 + $0xbc] sm:$0x1]  ;;  %v4833_v52 = vrot.slane %v4817_v27, 9 }
 0x142   : > { %4749 = vmatmul.msk.bf16.gmra.mxu3 %vm709_vm4, %v5125_v61  ;;  %v2463_v61 = vrot.slane %v5189_v4, 5  ;;  %v2154_v4 = vrot.slane %v2152_v3, 4 }
 0x144   : > { %v2310_v62 = vpop.f32.mrf.mxu0  ;;  %v2465_v8 = vrot.slane %v2463_v61, 4 }
 0x145   : > { %v1656_v33 = vpop.f32.mrf.mxu3  ;;  %v1021_v34 = vpop.f32.mrf.mxu1 }
 0x146   : > { %v1721_v7 = vadd.f32 %v1656_v33, %v1434_v21  ;;  %v2140_v21 = vsel %vm5324_vm3, %v2135_v50, %v2139_v38  ;;  %v4621_v33 = vrot.slane %v1086_v16, 9  ;;  %v1022_v56 = vadd.f32 %v1021_v34, %v5666_v53 }
 0x147   : > { %4814 = vmatmul.msk.bf16.gmra.mxu0 %vm709_vm4, %v2222_v24  ;;  %v2466_v24 = vrot.slane %v5191_v58, 5  ;;  %v2205_v38 = vunpack.c.l.b16 %v2140_v21  ;;  %v2163_v16 = vrot.slane %v2161_v41, 5  ;;  %v2167_v58 = vrot.slane %v2165_v5, 4  ;;  %v4799_v21 = vld [vmem:[%s5312_s29 + $0xc8] sm:$0x1] }
 0x148   : > { %v1371_v20 = vpop.f32.mrf.mxu2  ;;  %4604 = vmatmul.msk.bf16.gmra.mxu1 %vm709_vm4, %v5110_v48  ;;  %v5910_v1 = vadd.f32 %v2310_v62, %v1721_v7  ;;  %v1232_v62 = vrot.slane %v5192_v9, 5  ;;  %v2206_v7 = vunpack.c.l.b16 %v2150_v28  ;;  %v2464_v28 = vsel %vm5498_vm7, %v4833_v52, %v2463_v61  ;;  %v4979_v41 = vld [vmem:[%s5312_s29 + $0x18] sm:$0xf] }
 0x149   : > { %v1435_v47 = vadd.f32 %v1371_v20, %v1019_v23  ;;  %v2157_v20 = vrot.slane %v2155_v14, 5  ;;  %v2575_v53 = vunpack.c.l.b16 %v2464_v28  ;;  %v2171_v27 = vshll.u32 %v4799_v21, 16 }
 0x14a   : > { %v1233_v14 = vsel %vm5498_vm7, %v1231_v35, %v1232_v62  ;;  %v2223_v5 = vpack.c.b16 %v2206_v7, %v2205_v38  ;;  %v3131_v62 = vshrl.u32 %v4979_v41, 16  ;;  %v3134_v35 = vshll.u32 %v4979_v41, 16 }
 0x14c   : > { %v2312_v48 = vpop.f32.mrf.mxu0  ;;  %v3133_v21 = vrot.slane %v3131_v62, 4 }
 0x14d   : > { %v1658_v11 = vpop.f32.mrf.mxu3  ;;  %4637 = vmatmul.msk.bf16.gmra.mxu2 %vm709_vm4, %v1282_v60  ;;  %v1023_v50 = vpop.f32.mrf.mxu1  ;;  %v1230_v60 = vsel %vm5498_vm7, %v4621_v33, %v1229_v25  ;;  %v5934_v25 = vld [vmem:[%s5312_s29 + $0x1c] sm:$0xf]  ;;  %v2168_v33 = vor.u32 %v2167_v58, %v2163_v16 }
 0x14e   : > { %v1722_v23 = vadd.f32 %v1658_v11, %v1435_v47  ;;  %v2467_v47 = vsel %vm5498_vm7, %v2465_v8, %v2466_v24  ;;  %v2158_v11 = vor.u32 %v2157_v20, %v2154_v4  ;;  %v5111_v24 = vld [vmem:[%s5312_s29 + $0xb4] sm:$0xff]  ;;  %v3144_v38 = vshrl.u32 %v5934_v25, 16 }
 0x14f   : > { %v2576_v34 = vunpack.c.l.b16 %v2467_v47  ;;  %v1024_v4 = vadd.f32 %v1023_v50, %v5686_v17 }
 0x150   : > { %v1374_v9 = vpop.f32.mrf.mxu2  ;;  %v5938_v52 = vadd.f32 %v2312_v48, %v1722_v23  ;;  %v2159_v48 = vrot.slane %v2158_v11, 4  ;;  %v2169_v23 = vrot.slane %v2168_v33, 4  ;;  %v3146_v41 = vrot.slane %v3144_v38, 4 }
 0x151   : > { %v1436_v3 = vadd.f32 %v1374_v9, %v1022_v56  ;;  %v5936_v61 = vpack.c.b16 %v2576_v34, %v2575_v53  ;;  %v1266_v56 = vunpack.c.l.b16 %v1230_v60  ;;  %v1267_v9 = vunpack.c.l.b16 %v1233_v14 }
 0x152   : > { %4750 = vmatmul.msk.bf16.gmra.mxu3 %vm709_vm4, %v5126_v19  ;;  %6710 = vst [vmem:[#allocation2_spill] sm:$0xff] %v5938_v52  ;;  %v3140_v19 = vshll.u32 %v5934_v25, 16  ;;  %v2173_v60 = vrot.slane %v2171_v27, 5  ;;  %v3136_v14 = vrot.slane %v3134_v35, 5  ;;  %v2164_v17 = vsel %vm5324_vm3, %v2159_v48, %v2163_v16  ;;  %v5044_v48 = vld [vmem:[%s5312_s29 + $0x18] sm:$0xe] }
 0x153   : > { %v1283_v58 = vpack.c.b16 %v1267_v9, %v1266_v56  ;;  %v5127_v9 = vld [vmem:[%s5312_s29 + $0xc0] sm:$0xff]  ;;  %v2207_v16 = vunpack.c.l.b16 %v2164_v17 }
 0x154   : > { %v2315_v8 = vpop.f32.mrf.mxu0  ;;  %v3142_v34 = vrot.slane %v3140_v19, 5  ;;  %v2174_v50 = vsel %vm5324_vm3, %v2169_v23, %v2173_v60  ;;  %v3137_v27 = vor.u32 %v3136_v14, %v3133_v21  ;;  %v4982_v23 = vld [vmem:[%s5312_s29 + $0x24] sm:$0xf]  ;;  %v5964_v60 = vld [vmem:[%s5312_s29 + $0x28] sm:$0xf] }
 0x155   : > { %v1661_v28 = vpop.f32.mrf.mxu3  ;;  %v1026_v47 = vpop.f32.mrf.mxu1  ;;  %v2208_v35 = vunpack.c.l.b16 %v2174_v50 }
 0x156   : > { %v1723_v7 = vadd.f32 %v1661_v28, %v1436_v3  ;;  %v5949_v3 = vld [vmem:[%s5312_s29 + $0x20] sm:$0x1]  ;;  %v1027_v62 = vadd.f32 %v1026_v47, %v5709_v2  ;;  %v3138_v38 = vrot.slane %v3137_v27, 4  ;;  %v5193_v47 = vld [vmem:[%s5312_s29 + $0x1c] sm:$0xf] }
 0x157   : > { %4815 = vmatmul.msk.bf16.gmra.mxu0 %vm709_vm4, %v2223_v5  ;;  %v2470_v14 = vrot.slane %v5193_v47, 5  ;;  %v4818_v27 = vld [vmem:[%s5312_s29 + $0x18] sm:$0xe] }
 0x158   : > { %v1376_v20 = vpop.f32.mrf.mxu2  ;;  %4605 = vmatmul.msk.bf16.gmra.mxu1 %vm709_vm4, %v5111_v24  ;;  %v5946_v52 = vadd.f32 %v2315_v8, %v1723_v7  ;;  %v3147_v24 = vor.u32 %v3146_v41, %v3142_v34  ;;  %v3150_v8 = vshll.u32 %v5949_v3, 16  ;;  %v3143_v17 = vsel %vm5324_vm3, %v3138_v38, %v3142_v34 }
 0x159   : > { %v1437_v53 = vadd.f32 %v1376_v20, %v1024_v4  ;;  %v2224_v20 = vpack.c.b16 %v2208_v35, %v2207_v16  ;;  %v3805_v34 = vrot.slane %v5949_v3, 5  ;;  %v5194_v16 = vld [vmem:[%s5312_s29 + $0x20] sm:$0x1]  ;;  %v4834_v38 = vrot.slane %v4818_v27, 9 }
 0x15a   : > { %v3148_v7 = vrot.slane %v3147_v24, 4  ;;  %v3152_v4 = vrot.slane %v3150_v8, 5  ;;  %v3155_v24 = vshrl.u32 %v4982_v23, 16  ;;  %v3158_v8 = vshll.u32 %v4982_v23, 16 }
 0x15b   : > { %v2473_v35 = vrot.slane %v5194_v16, 5  ;;  %v2471_v27 = vsel %vm5498_vm7, %v4834_v38, %v2470_v14  ;;  %v4985_v38 = vld [vmem:[%s5312_s29 + $0x30] sm:$0xf] }
 0x15c   : > { %v2317_v5 = vpop.f32.mrf.mxu0  ;;  %v3153_v50 = vsel %vm5324_vm3, %v3148_v7, %v3152_v4  ;;  %v2472_v7 = vrot.slane %v2470_v14, 4  ;;  %v3160_v3 = vrot.slane %v3158_v8, 5 }
 0x15d   : > { %v1663_v11 = vpop.f32.mrf.mxu3  ;;  %4638 = vmatmul.msk.bf16.gmra.mxu2 %vm709_vm4, %v1283_v58  ;;  %v1028_v33 = vpop.f32.mrf.mxu1  ;;  %v3802_v58 = vrot.slane %v5934_v25, 5  ;;  %v3517_v23 = vunpack.c.l.b16 %v3153_v50 }
 0x15e   : > { %v1724_v56 = vadd.f32 %v1663_v11, %v1437_v53  ;;  %v5060_v11 = vrot.slane %v5044_v48, 9  ;;  %v5128_v48 = vld [vmem:[%s5312_s29 + $0x18] sm:$0xff]  ;;  %v2474_v50 = vsel %vm5498_vm7, %v2472_v7, %v2473_v35  ;;  %v6004_v7 = vld [vmem:[%s5312_s29 + $0x34] sm:$0xf] }
 0x160   : > { %v1379_v28 = vpop.f32.mrf.mxu2  ;;  %v5966_v21 = vadd.f32 %v2317_v5, %v1724_v56  ;;  %v3164_v5 = vshll.u32 %v5964_v60, 16  ;;  %v3168_v56 = vshrl.u32 %v5964_v60, 16 }
 0x161   : > { %v1438_v19 = vadd.f32 %v1379_v28, %v1027_v62  ;;  %v3804_v62 = vrot.slane %v3802_v58, 4 }
 0x162   : > { %4751 = vmatmul.msk.bf16.gmra.mxu3 %vm709_vm4, %v5127_v9  ;;  %v1029_v9 = vadd.f32 %v1028_v33, %v5729_v29  ;;  %v3157_v33 = vrot.slane %v3155_v24, 4  ;;  %v5987_v47 = vrot.slane %v3164_v5, 5 }
 0x164   : > { %v2320_v2 = vpop.f32.mrf.mxu0  ;;  %v3161_v5 = vor.u32 %v3160_v3, %v3157_v33  ;;  %v5045_v33 = vld [vmem:[%s5312_s29 + $0x24] sm:$0xe] }
 0x165   : > { %v1666_v53 = vpop.f32.mrf.mxu3  ;;  %v1031_v41 = vpop.f32.mrf.mxu1 }
 0x166   : > { %v1725_v25 = vadd.f32 %v1666_v53, %v1438_v19  ;;  %v3516_v19 = vunpack.c.l.b16 %v3143_v17  ;;  %v3170_v53 = vrot.slane %v3168_v56, 4  ;;  %v1032_v14 = vadd.f32 %v1031_v41, %v5611_v37 }
 0x167   : > { %4816 = vmatmul.msk.bf16.gmra.mxu0 %vm709_vm4, %v2224_v20  ;;  %v3803_v20 = vsel %vm5498_vm7, %v5060_v11, %v3802_v58  ;;  %v3809_v37 = vrot.slane %v5964_v60, 5 }
 0x168   : > { %v1381_v28 = vpop.f32.mrf.mxu2  ;;  %4850 = vmatmul.msk.bf16.vlgmr.msra.gmra.mxu1 %vm709_vm4, %v5936_v61  ;;  %v5985_v29 = vadd.f32 %v2320_v2, %v1725_v25  ;;  %v3806_v61 = vsel %vm5498_vm7, %v3804_v62, %v3805_v34  ;;  %v3548_v2 = vpack.c.b16 %v3517_v23, %v3516_v19  ;;  %v3914_v11 = vunpack.c.l.b16 %v3803_v20 }
 0x169   : > { %v1439_v4 = vadd.f32 %v1381_v28, %v1029_v9  ;;  %v5996_v9 = vld [vmem:[%s5312_s29 + $0x2c] sm:$0x1]  ;;  %v3915_v8 = vunpack.c.l.b16 %v3806_v61  ;;  %v3171_v56 = vor.u32 %v3170_v53, %v5987_v47  ;;  %v2577_v62 = vunpack.c.l.b16 %v2471_v27 }
 0x16a   : > { %v2578_v34 = vunpack.c.l.b16 %v2474_v50  ;;  %v3174_v16 = vshll.u32 %v5996_v9, 16  ;;  %v3179_v53 = vshrl.u32 %v4985_v38, 16  ;;  %v3182_v61 = vshll.u32 %v4985_v38, 16 }
 0x16b   : > { %v3946_v19 = vpack.c.b16 %v3915_v8, %v3914_v11  ;;  %v3188_v27 = vshll.u32 %v6004_v7, 16  ;;  %v3192_v50 = vshrl.u32 %v6004_v7, 16  ;;  %v5195_v11 = vld [vmem:[%s5312_s29 + $0x28] sm:$0xf]  ;;  %v3812_v60 = vrot.slane %v5996_v9, 5 }
 0x16c   : > { %v2322_v17 = vpop.f32.mrf.mxu0  ;;  %v2608_v23 = vpack.c.b16 %v2578_v34, %v2577_v62  ;;  %v3176_v20 = vrot.slane %v3174_v16, 5  ;;  %v2477_v8 = vrot.slane %v5195_v11, 5  ;;  %v5061_v62 = vrot.slane %v5045_v33, 9  ;;  %v5129_v11 = vld [vmem:[%s5312_s29 + $0x24] sm:$0xff] }
 0x16d   : > { %v1668_v58 = vpop.f32.mrf.mxu3  ;;  %4963 = vmatmul.msk.bf16.vlgmr.msra.gmra.mxu2 %vm709_vm4, %v5128_v48  ;;  %v1033_v24 = vpop.f32.mrf.mxu1  ;;  %v3172_v48 = vrot.slane %v3171_v56, 4  ;;  %v3184_v33 = vrot.slane %v3182_v61, 5  ;;  %v6025_v9 = vrot.slane %v3188_v27, 5 }
 0x16e   : > { %v1726_v25 = vadd.f32 %v1668_v58, %v1439_v4  ;;  %v3162_v4 = vrot.slane %v3161_v5, 4  ;;  %v5196_v5 = vld [vmem:[%s5312_s29 + $0x2c] sm:$0x1] }
 0x16f   : > { %v2480_v56 = vrot.slane %v5196_v5, 5  ;;  %v3177_v16 = vsel %vm5324_vm3, %v3172_v48, %v3176_v20  ;;  %v3810_v20 = vsel %vm5498_vm7, %v5061_v62, %v3809_v37 }
 0x170   : > { %v1384_v35 = vpop.f32.mrf.mxu2  ;;  %v6009_v41 = vadd.f32 %v2322_v17, %v1726_v25  ;;  %v4819_v17 = vld [vmem:[%s5312_s29 + $0x24] sm:$0xe]  ;;  %v1034_v25 = vadd.f32 %v1033_v24, %v5632_v63  ;;  %v3167_v34 = vsel %vm5324_vm3, %v3162_v4, %v5987_v47  ;;  %v2479_v24 = vrot.slane %v2477_v8, 4 }
 0x171   : > { %v1440_v28 = vadd.f32 %v1384_v35, %v1032_v14  ;;  %v3811_v35 = vrot.slane %v3809_v37, 4  ;;  %v4835_v63 = vrot.slane %v4819_v17, 9  ;;  %v3518_v47 = vunpack.c.l.b16 %v3167_v34 }
 0x172   : > { %5028 = vmatmul.msk.bf16.vlgmr.msra.gmra.mxu3 %vm709_vm4, %v3548_v2  ;;  %6711 = vst [vmem:[#allocation3_spill] sm:$0xff] %v6009_v41  ;;  %v3519_v4 = vunpack.c.l.b16 %v3177_v16  ;;  %v6031_v41 = vld [vmem:[%s5312_s29 + $0x38] sm:$0x1] }
 0x173   : > { %v3198_v37 = vshll.u32 %v6031_v41, 16 }
 0x174   : > { %v2325_v3 = vpop.f32.mrf.mxu0  ;;  %v3549_v17 = vpack.c.b16 %v3519_v4, %v3518_v47  ;;  %v5197_v4 = vld [vmem:[%s5312_s29 + $0x34] sm:$0xf] }
 0x175   : > { %v1671_v58 = vpop.f32.mrf.mxu3  ;;  %v1036_v2 = vpop.f32.mrf.mxu1 }
 0x176   : > { %v1727_v14 = vadd.f32 %v1671_v58, %v1440_v28  ;;  %v3181_v28 = vrot.slane %v3179_v53, 4  ;;  %v3194_v58 = vrot.slane %v3192_v50, 4  ;;  %v2481_v50 = vsel %vm5498_vm7, %v2479_v24, %v2480_v56  ;;  %v6050_v24 = vld [vmem:[%s5312_s29 + $0x40] sm:$0xf] }
 0x177   : > { %5077 = vmatmul.msk.bf16.vlgmr.msra.gmra.mxu0 %vm709_vm4, %v3946_v19 }
 0x178   : > { %v1386_v38 = vpop.f32.mrf.mxu2  ;;  %4851 = vmatmul.msk.bf16.gmra.mxu1 %vm709_vm4, %v2608_v23  ;;  %v6028_v5 = vadd.f32 %v2325_v3, %v1727_v14  ;;  %v3813_v23 = vsel %vm5498_vm7, %v3811_v35, %v3812_v60  ;;  %v3185_v53 = vor.u32 %v3184_v33, %v3181_v28  ;;  %v2478_v3 = vsel %vm5498_vm7, %v4835_v63, %v2477_v8 }
 0x179   : > { %v1441_v19 = vadd.f32 %v1386_v38, %v1034_v25  ;;  %v3195_v14 = vor.u32 %v3194_v58, %v6025_v9  ;;  %v1037_v60 = vadd.f32 %v1036_v2, %v5649_v22  ;;  %v3916_v25 = vunpack.c.l.b16 %v3810_v20  ;;  %v5046_v58 = vld [vmem:[%s5312_s29 + $0x30] sm:$0xe] }
 0x17a   : > { %v3917_v34 = vunpack.c.l.b16 %v3813_v23  ;;  %v2579_v35 = vunpack.c.l.b16 %v2478_v3  ;;  %v2580_v8 = vunpack.c.l.b16 %v2481_v50  ;;  %v3186_v28 = vrot.slane %v3185_v53, 4 }
 0x17b   : > { %v3196_v56 = vrot.slane %v3195_v14, 4  ;;  %v3200_v33 = vrot.slane %v3198_v37, 5  ;;  %v3816_v63 = vrot.slane %v6004_v7, 5  ;;  %v2484_v20 = vrot.slane %v5197_v4, 5  ;;  %v4820_v7 = vld [vmem:[%s5312_s29 + $0x30] sm:$0xe] }
 0x17c   : > { %v2327_v48 = vpop.f32.mrf.mxu0  ;;  %v2609_v47 = vpack.c.b16 %v2580_v8, %v2579_v35  ;;  %v5062_v50 = vrot.slane %v5046_v58, 9 }
 0x17d   : > { %v1673_v61 = vpop.f32.mrf.mxu3  ;;  %4964 = vmatmul.msk.bf16.gmra.mxu2 %vm709_vm4, %v5129_v11  ;;  %v1038_v27 = vpop.f32.mrf.mxu1  ;;  %v4988_v11 = vld [vmem:[%s5312_s29 + $0x3c] sm:$0xf]  ;;  %v3201_v3 = vsel %vm5324_vm3, %v3196_v56, %v3200_v33  ;;  %v5130_v33 = vld [vmem:[%s5312_s29 + $0x30] sm:$0xff] }
 0x17e   : > { %v1728_v62 = vadd.f32 %v1673_v61, %v1441_v19  ;;  %v3947_v19 = vpack.c.b16 %v3917_v34, %v3916_v25  ;;  %v3191_v61 = vsel %vm5324_vm3, %v3186_v28, %v6025_v9  ;;  %v3203_v14 = vshrl.u32 %v4988_v11, 16  ;;  %v5198_v34 = vld [vmem:[%s5312_s29 + $0x38] sm:$0x1] }
 0x17f   : > { %v3818_v25 = vrot.slane %v3816_v63, 4  ;;  %v3819_v9 = vrot.slane %v6031_v41, 5  ;;  %v3520_v8 = vunpack.c.l.b16 %v3191_v61  ;;  %v2486_v28 = vrot.slane %v2484_v20, 4 }
 0x180   : > { %v1389_v16 = vpop.f32.mrf.mxu2  ;;  %v6052_v22 = vadd.f32 %v2327_v48, %v1728_v62  ;;  %v3206_v48 = vshll.u32 %v4988_v11, 16  ;;  %v3212_v62 = vshll.u32 %v6050_v24, 16  ;;  %v3521_v58 = vunpack.c.l.b16 %v3201_v3 }
 0x181   : > { %v1442_v38 = vadd.f32 %v1389_v16, %v1037_v60  ;;  %v1039_v60 = vadd.f32 %v1038_v27, %v5670_v55  ;;  %v2487_v16 = vrot.slane %v5198_v34, 5  ;;  %v3817_v11 = vsel %vm5498_vm7, %v5062_v50, %v3816_v63 }
 0x182   : > { %5029 = vmatmul.msk.bf16.gmra.mxu3 %vm709_vm4, %v3549_v17  ;;  %v3216_v17 = vshrl.u32 %v6050_v24, 16  ;;  %v3205_v55 = vrot.slane %v3203_v14, 4  ;;  %v3208_v27 = vrot.slane %v3206_v48, 5  ;;  %v6073_v41 = vrot.slane %v3212_v62, 5 }
 0x183   : > { %v2488_v3 = vsel %vm5498_vm7, %v2486_v28, %v2487_v16  ;;  %v3918_v50 = vunpack.c.l.b16 %v3817_v11  ;;  %v5047_v11 = vld [vmem:[%s5312_s29 + $0x3c] sm:$0xe] }
 0x184   : > { %v2330_v2 = vpop.f32.mrf.mxu0  ;;  %v3218_v4 = vrot.slane %v3216_v17, 4  ;;  %v3209_v62 = vor.u32 %v3208_v27, %v3205_v55 }
 0x185   : > { %v1676_v23 = vpop.f32.mrf.mxu3  ;;  %v1041_v53 = vpop.f32.mrf.mxu1 }
 0x186   : > { %v1729_v37 = vadd.f32 %v1676_v23, %v1442_v38  ;;  %v4836_v38 = vrot.slane %v4820_v7, 9  ;;  %v6082_v7 = vld [vmem:[%s5312_s29 + $0x44] sm:$0x1]  ;;  %v3219_v17 = vor.u32 %v3218_v4, %v6073_v41  ;;  %v3210_v28 = vrot.slane %v3209_v62, 4 }
 0x187   : > { %5078 = vmatmul.msk.bf16.gmra.mxu0 %vm709_vm4, %v3947_v19 }
 0x188   : > { %v1391_v35 = vpop.f32.mrf.mxu2  ;;  %4852 = vmatmul.msk.bf16.gmra.mxu1 %vm709_vm4, %v2609_v47  ;;  %v6071_v19 = vadd.f32 %v2330_v2, %v1729_v37  ;;  %v3820_v47 = vsel %vm5498_vm7, %v3818_v25, %v3819_v9  ;;  %v2485_v61 = vsel %vm5498_vm7, %v4836_v38, %v2484_v20  ;;  %v3550_v2 = vpack.c.b16 %v3521_v58, %v3520_v8  ;;  %v6090_v38 = vld [vmem:[%s5312_s29 + $0x4c] sm:$0xf] }
 0x189   : > { %v1443_v56 = vadd.f32 %v1391_v35, %v1039_v60  ;;  %v3919_v48 = vunpack.c.l.b16 %v3820_v47  ;;  %v1042_v20 = vadd.f32 %v1041_v53, %v5693_v26  ;;  %v2581_v60 = vunpack.c.l.b16 %v2485_v61  ;;  %v4991_v35 = vld [vmem:[%s5312_s29 + $0x48] sm:$0xf] }
 0x18a   : > { %v2582_v25 = vunpack.c.l.b16 %v2488_v3  ;;  %v3222_v9 = vshll.u32 %v6082_v7, 16  ;;  %v3823_v26 = vrot.slane %v6050_v24, 5  ;;  %v3227_v27 = vshrl.u32 %v4991_v35, 16 }
 0x18b   : > { %v3948_v8 = vpack.c.b16 %v3919_v48, %v3918_v50  ;;  %v3230_v4 = vshll.u32 %v4991_v35, 16  ;;  %v3236_v47 = vshll.u32 %v6090_v38, 16  ;;  %v3240_v61 = vshrl.u32 %v6090_v38, 16  ;;  %v5200_v48 = vld [vmem:[%s5312_s29 + $0x44] sm:$0x1] }
 0x18c   : > { %v2332_v23 = vpop.f32.mrf.mxu0  ;;  %v3224_v58 = vrot.slane %v3222_v9, 5  ;;  %v2494_v62 = vrot.slane %v5200_v48, 5  ;;  %v3826_v24 = vrot.slane %v6082_v7, 5  ;;  %v3825_v9 = vrot.slane %v3823_v26, 4  ;;  %v6117_v48 = vld [vmem:[%s5312_s29 + $0x50] sm:$0x1] }
 0x18d   : > { %v1678_v63 = vpop.f32.mrf.mxu3  ;;  %4965 = vmatmul.msk.bf16.gmra.mxu2 %vm709_vm4, %v5130_v33  ;;  %v1043_v14 = vpop.f32.mrf.mxu1  ;;  %v2610_v33 = vpack.c.b16 %v2582_v25, %v2581_v60  ;;  %v3215_v60 = vsel %vm5324_vm3, %v3210_v28, %v6073_v41  ;;  %v3232_v35 = vrot.slane %v3230_v4, 5  ;;  %v6111_v7 = vrot.slane %v3236_v47, 5 }
 0x18e   : > { %v1730_v37 = vadd.f32 %v1678_v63, %v1443_v56  ;;  %v3220_v56 = vrot.slane %v3219_v17, 4  ;;  %v3522_v41 = vunpack.c.l.b16 %v3215_v60 }
 0x190   : > { %v1394_v34 = vpop.f32.mrf.mxu2  ;;  %v6095_v53 = vadd.f32 %v2332_v23, %v1730_v37  ;;  %v4821_v23 = vld [vmem:[%s5312_s29 + $0x3c] sm:$0xe]  ;;  %v1044_v37 = vadd.f32 %v1043_v14, %v5711_v43  ;;  %v3225_v25 = vsel %vm5324_vm3, %v3220_v56, %v3224_v58 }
 0x191   : > { %v1444_v16 = vadd.f32 %v1394_v34, %v1042_v20  ;;  %v5063_v20 = vrot.slane %v5047_v11, 9  ;;  %v3242_v11 = vrot.slane %v3240_v61, 4  ;;  %v4837_v43 = vrot.slane %v4821_v23, 9 }
 0x192   : > { %5030 = vmatmul.msk.bf16.gmra.mxu3 %vm709_vm4, %v3550_v2  ;;  %v5199_v2 = vld [vmem:[%s5312_s29 + $0x40] sm:$0xf]  ;;  %v3523_v28 = vunpack.c.l.b16 %v3225_v25 }
 0x193   : > { %v2491_v50 = vrot.slane %v5199_v2, 5  ;;  %v3824_v58 = vsel %vm5498_vm7, %v5063_v20, %v3823_v26  ;;  %v3246_v26 = vshll.u32 %v6117_v48, 16 }
 0x194   : > { %v2335_v55 = vpop.f32.mrf.mxu0  ;;  %v3551_v23 = vpack.c.b16 %v3523_v28, %v3522_v41  ;;  %v5201_v28 = vld [vmem:[%s5312_s29 + $0x4c] sm:$0xf] }
 0x195   : > { %v1681_v3 = vpop.f32.mrf.mxu3  ;;  %v1046_v63 = vpop.f32.mrf.mxu1  ;;  %v2493_v14 = vrot.slane %v2491_v50, 4 }
 0x196   : > { %v1731_v17 = vadd.f32 %v1681_v3, %v1444_v16  ;;  %v3229_v16 = vrot.slane %v3227_v27, 4  ;;  %v5131_v3 = vld [vmem:[%s5312_s29 + $0x3c] sm:$0xff] }
 0x197   : > { %5079 = vmatmul.msk.bf16.gmra.mxu0 %vm709_vm4, %v3948_v8  ;;  %v2495_v61 = vsel %vm5498_vm7, %v2493_v14, %v2494_v62  ;;  %v6136_v14 = vld [vmem:[%s5312_s29 + $0x58] sm:$0xf] }
 0x198   : > { %v1396_v34 = vpop.f32.mrf.mxu2  ;;  %4853 = vmatmul.msk.bf16.gmra.mxu1 %vm709_vm4, %v2610_v33  ;;  %v6114_v2 = vadd.f32 %v2335_v55, %v1731_v17  ;;  %v3827_v33 = vsel %vm5498_vm7, %v3825_v9, %v3826_v24  ;;  %v3233_v27 = vor.u32 %v3232_v35, %v3229_v16  ;;  %v2492_v55 = vsel %vm5498_vm7, %v4837_v43, %v2491_v50 }
 0x199   : > { %v1445_v8 = vadd.f32 %v1396_v34, %v1044_v37  ;;  %v3243_v17 = vor.u32 %v3242_v11, %v6111_v7  ;;  %v1047_v24 = vadd.f32 %v1046_v63, %v5732_v40  ;;  %v3920_v37 = vunpack.c.l.b16 %v3824_v58  ;;  %v5048_v11 = vld [vmem:[%s5312_s29 + $0x48] sm:$0xe] }
 0x19a   : > { %v3921_v60 = vunpack.c.l.b16 %v3827_v33  ;;  %v2583_v9 = vunpack.c.l.b16 %v2492_v55  ;;  %v2584_v50 = vunpack.c.l.b16 %v2495_v61  ;;  %v3234_v16 = vrot.slane %v3233_v27, 4 }
 0x19b   : > { %v3244_v62 = vrot.slane %v3243_v17, 4  ;;  %v3248_v35 = vrot.slane %v3246_v26, 5  ;;  %v3830_v43 = vrot.slane %v6090_v38, 5  ;;  %v2498_v58 = vrot.slane %v5201_v28, 5  ;;  %v4822_v38 = vld [vmem:[%s5312_s29 + $0x48] sm:$0xe] }
 0x19c   : > { %v2337_v56 = vpop.f32.mrf.mxu0  ;;  %v2611_v41 = vpack.c.b16 %v2584_v50, %v2583_v9  ;;  %v5064_v61 = vrot.slane %v5048_v11, 9 }
 0x19d   : > { %v1683_v4 = vpop.f32.mrf.mxu3  ;;  %4966 = vmatmul.msk.bf16.gmra.mxu2 %vm709_vm4, %v5131_v3  ;;  %v1048_v47 = vpop.f32.mrf.mxu1  ;;  %v4994_v3 = vld [vmem:[%s5312_s29 + $0x54] sm:$0xf]  ;;  %v3249_v55 = vsel %vm5324_vm3, %v3244_v62, %v3248_v35  ;;  %v5132_v35 = vld [vmem:[%s5312_s29 + $0x48] sm:$0xff] }
 0x19e   : > { %v1732_v20 = vadd.f32 %v1683_v4, %v1445_v8  ;;  %v3949_v8 = vpack.c.b16 %v3921_v60, %v3920_v37  ;;  %v3239_v4 = vsel %vm5324_vm3, %v3234_v16, %v6111_v7  ;;  %v3251_v17 = vshrl.u32 %v4994_v3, 16  ;;  %v5202_v60 = vld [vmem:[%s5312_s29 + $0x50] sm:$0x1] }
 0x19f   : > { %v3832_v37 = vrot.slane %v3830_v43, 4  ;;  %v3833_v7 = vrot.slane %v6117_v48, 5  ;;  %v3524_v50 = vunpack.c.l.b16 %v3239_v4  ;;  %v2500_v16 = vrot.slane %v2498_v58, 4 }
 0x1a0   : > { %v1399_v25 = vpop.f32.mrf.mxu2  ;;  %v6138_v40 = vadd.f32 %v2337_v56, %v1732_v20  ;;  %v3254_v56 = vshll.u32 %v4994_v3, 16  ;;  %v3260_v20 = vshll.u32 %v6136_v14, 16  ;;  %v3525_v11 = vunpack.c.l.b16 %v3249_v55 }
 0x1a1   : > { %v1446_v34 = vadd.f32 %v1399_v25, %v1047_v24  ;;  %v1049_v24 = vadd.f32 %v1048_v47, %v5747_v10  ;;  %v2501_v25 = vrot.slane %v5202_v60, 5  ;;  %v3831_v3 = vsel %vm5498_vm7, %v5064_v61, %v3830_v43 }
 0x1a2   : > { %5031 = vmatmul.msk.bf16.gmra.mxu3 %vm709_vm4, %v3551_v23  ;;  %v3264_v23 = vshrl.u32 %v6136_v14, 16  ;;  %v3253_v10 = vrot.slane %v3251_v17, 4  ;;  %v3256_v47 = vrot.slane %v3254_v56, 5  ;;  %v6159_v48 = vrot.slane %v3260_v20, 5 }
 0x1a3   : > { %v2502_v55 = vsel %vm5498_vm7, %v2500_v16, %v2501_v25  ;;  %v3922_v61 = vunpack.c.l.b16 %v3831_v3  ;;  %v5049_v3 = vld [vmem:[%s5312_s29 + $0x54] sm:$0xe] }
 0x1a4   : > { %v2340_v63 = vpop.f32.mrf.mxu0  ;;  %v3266_v28 = vrot.slane %v3264_v23, 4  ;;  %v3257_v20 = vor.u32 %v3256_v47, %v3253_v10 }
 0x1a5   : > { %v1686_v33 = vpop.f32.mrf.mxu3  ;;  %v1051_v27 = vpop.f32.mrf.mxu1 }
 0x1a6   : > { %v1733_v26 = vadd.f32 %v1686_v33, %v1446_v34  ;;  %v4838_v34 = vrot.slane %v4822_v38, 9  ;;  %v6168_v38 = vld [vmem:[%s5312_s29 + $0x5c] sm:$0x1]  ;;  %v3267_v23 = vor.u32 %v3266_v28, %v6159_v48  ;;  %v3258_v16 = vrot.slane %v3257_v20, 4 }
 0x1a7   : > { %5080 = vmatmul.msk.bf16.gmra.mxu0 %vm709_vm4, %v3949_v8 }
 0x1a8   : > { %v1401_v9 = vpop.f32.mrf.mxu2  ;;  %4854 = vmatmul.msk.bf16.gmra.mxu1 %vm709_vm4, %v2611_v41  ;;  %v6157_v8 = vadd.f32 %v2340_v63, %v1733_v26  ;;  %v3834_v41 = vsel %vm5498_vm7, %v3832_v37, %v3833_v7  ;;  %v2499_v4 = vsel %vm5498_vm7, %v4838_v34, %v2498_v58  ;;  %v3552_v63 = vpack.c.b16 %v3525_v11, %v3524_v50  ;;  %v6176_v34 = vld [vmem:[%s5312_s29 + $0x64] sm:$0xf] }
 0x1a9   : > { %v1447_v62 = vadd.f32 %v1401_v9, %v1049_v24  ;;  %v3923_v56 = vunpack.c.l.b16 %v3834_v41  ;;  %v1052_v58 = vadd.f32 %v1051_v27, %v5623_v49  ;;  %v2585_v24 = vunpack.c.l.b16 %v2499_v4  ;;  %v4997_v9 = vld [vmem:[%s5312_s29 + $0x60] sm:$0xf] }
 0x1aa   : > { %v2586_v37 = vunpack.c.l.b16 %v2502_v55  ;;  %v3270_v7 = vshll.u32 %v6168_v38, 16  ;;  %v3837_v49 = vrot.slane %v6136_v14, 5  ;;  %v3275_v47 = vshrl.u32 %v4997_v9, 16 }
 0x1ab   : > { %v3950_v50 = vpack.c.b16 %v3923_v56, %v3922_v61  ;;  %v3278_v28 = vshll.u32 %v4997_v9, 16  ;;  %v3284_v41 = vshll.u32 %v6176_v34, 16  ;;  %v3288_v4 = vshrl.u32 %v6176_v34, 16  ;;  %v5204_v56 = vld [vmem:[%s5312_s29 + $0x5c] sm:$0x1] }
 0x1ac   : > { %v2342_v33 = vpop.f32.mrf.mxu0  ;;  %v3272_v11 = vrot.slane %v3270_v7, 5  ;;  %v2508_v20 = vrot.slane %v5204_v56, 5  ;;  %v3840_v14 = vrot.slane %v6168_v38, 5  ;;  %v3839_v7 = vrot.slane %v3837_v49, 4  ;;  %v6203_v56 = vld [vmem:[%s5312_s29 + $0x68] sm:$0x1] }
 0x1ad   : > { %v1688_v43 = vpop.f32.mrf.mxu3  ;;  %4967 = vmatmul.msk.bf16.gmra.mxu2 %vm709_vm4, %v5132_v35  ;;  %v1053_v17 = vpop.f32.mrf.mxu1  ;;  %v2612_v35 = vpack.c.b16 %v2586_v37, %v2585_v24  ;;  %v3263_v24 = vsel %vm5324_vm3, %v3258_v16, %v6159_v48  ;;  %v3280_v9 = vrot.slane %v3278_v28, 5  ;;  %v6197_v38 = vrot.slane %v3284_v41, 5 }
 0x1ae   : > { %v1734_v26 = vadd.f32 %v1688_v43, %v1447_v62  ;;  %v3268_v62 = vrot.slane %v3267_v23, 4  ;;  %v3526_v48 = vunpack.c.l.b16 %v3263_v24 }
 0x1b0   : > { %v1404_v60 = vpop.f32.mrf.mxu2  ;;  %v6181_v27 = vadd.f32 %v2342_v33, %v1734_v26  ;;  %v4823_v33 = vld [vmem:[%s5312_s29 + $0x54] sm:$0xe]  ;;  %v1054_v26 = vadd.f32 %v1053_v17, %v5642_v0  ;;  %v3273_v37 = vsel %vm5324_vm3, %v3268_v62, %v3272_v11 }
 0x1b1   : > { %v1448_v25 = vadd.f32 %v1404_v60, %v1052_v58  ;;  %v5065_v58 = vrot.slane %v5049_v3, 9  ;;  %v3290_v3 = vrot.slane %v3288_v4, 4  ;;  %v4839_v0 = vrot.slane %v4823_v33, 9 }
 0x1b2   : > { %5032 = vmatmul.msk.bf16.gmra.mxu3 %vm709_vm4, %v3552_v63  ;;  %v5203_v63 = vld [vmem:[%s5312_s29 + $0x58] sm:$0xf]  ;;  %v3527_v16 = vunpack.c.l.b16 %v3273_v37 }
 0x1b3   : > { %v2505_v61 = vrot.slane %v5203_v63, 5  ;;  %v3838_v11 = vsel %vm5498_vm7, %v5065_v58, %v3837_v49  ;;  %v3294_v49 = vshll.u32 %v6203_v56, 16 }
 0x1b4   : > { %v2345_v10 = vpop.f32.mrf.mxu0  ;;  %v3553_v33 = vpack.c.b16 %v3527_v16, %v3526_v48 }
 0x1b5   : > { %v1691_v55 = vpop.f32.mrf.mxu3  ;;  %v1056_v43 = vpop.f32.mrf.mxu1  ;;  %v2507_v17 = vrot.slane %v2505_v61, 4 }
 0x1b6   : > { %v1735_v23 = vadd.f32 %v1691_v55, %v1448_v25  ;;  %v3277_v25 = vrot.slane %v3275_v47, 4  ;;  %v5133_v55 = vld [vmem:[%s5312_s29 + $0x54] sm:$0xff] }
 0x1b7   : > { %5081 = vmatmul.msk.bf16.gmra.mxu0 %vm709_vm4, %v3950_v50  ;;  %v2509_v4 = vsel %vm5498_vm7, %v2507_v17, %v2508_v20  ;;  %v3296_v20 = vrot.slane %v3294_v49, 5  ;;  %v6222_v17 = vld [vmem:[%s5312_s29 + $0x70] sm:$0xf]  ;;  %v4824_v49 = vld [vmem:[%s5312_s29 + $0x60] sm:$0xe] }
 0x1b8   : > { %v1406_v60 = vpop.f32.mrf.mxu2  ;;  %4855 = vmatmul.msk.bf16.gmra.mxu1 %vm709_vm4, %v2612_v35  ;;  %v6200_v63 = vadd.f32 %v2345_v10, %v1735_v23  ;;  %v3841_v35 = vsel %vm5498_vm7, %v3839_v7, %v3840_v14  ;;  %v3281_v47 = vor.u32 %v3280_v9, %v3277_v25  ;;  %v2506_v10 = vsel %vm5498_vm7, %v4839_v0, %v2505_v61 }
 0x1b9   : > { %v1449_v50 = vadd.f32 %v1406_v60, %v1054_v26  ;;  %v3291_v23 = vor.u32 %v3290_v3, %v6197_v38  ;;  %v1057_v14 = vadd.f32 %v1056_v43, %v5663_v39  ;;  %v3924_v26 = vunpack.c.l.b16 %v3838_v11  ;;  %v5000_v3 = vld [vmem:[%s5312_s29 + $0x6c] sm:$0xf] }
 0x1ba   : > { %v3925_v24 = vunpack.c.l.b16 %v3841_v35  ;;  %v2587_v7 = vunpack.c.l.b16 %v2506_v10  ;;  %v2588_v60 = vunpack.c.l.b16 %v2509_v4  ;;  %v3282_v25 = vrot.slane %v3281_v47, 4  ;;  %v5205_v10 = vld [vmem:[%s5312_s29 + $0x64] sm:$0xf] }
 0x1bb   : > { %v3292_v9 = vrot.slane %v3291_v23, 4  ;;  %v3844_v0 = vrot.slane %v6176_v34, 5  ;;  %v2512_v4 = vrot.slane %v5205_v10, 5  ;;  %v3299_v34 = vshrl.u32 %v5000_v3, 16 }
 0x1bc   : > { %v2347_v62 = vpop.f32.mrf.mxu0  ;;  %v2613_v48 = vpack.c.b16 %v2588_v60, %v2587_v7  ;;  %v3287_v47 = vsel %vm5324_vm3, %v3282_v25, %v6197_v38  ;;  %v3847_v38 = vrot.slane %v6203_v56, 5 }
 0x1bd   : > { %v1693_v28 = vpop.f32.mrf.mxu3  ;;  %4968 = vmatmul.msk.bf16.gmra.mxu2 %vm709_vm4, %v5133_v55  ;;  %v1058_v41 = vpop.f32.mrf.mxu1  ;;  %v5050_v55 = vld [vmem:[%s5312_s29 + $0x60] sm:$0xe]  ;;  %v3528_v60 = vunpack.c.l.b16 %v3287_v47  ;;  %v6250_v47 = vld [vmem:[%s5312_s29 + $0x74] sm:$0x1] }
 0x1be   : > { %v1736_v58 = vadd.f32 %v1693_v28, %v1449_v50  ;;  %v3951_v50 = vpack.c.b16 %v3925_v24, %v3924_v26  ;;  %v5066_v16 = vrot.slane %v5050_v55, 9  ;;  %v3297_v28 = vsel %vm5324_vm3, %v3292_v9, %v3296_v20  ;;  %v5206_v24 = vld [vmem:[%s5312_s29 + $0x68] sm:$0x1]  ;;  %v5134_v20 = vld [vmem:[%s5312_s29 + $0x60] sm:$0xff] }
 0x1bf   : > { %v3846_v26 = vrot.slane %v3844_v0, 4  ;;  %v4840_v55 = vrot.slane %v4824_v49, 9 }
 0x1c0   : > { %v1409_v37 = vpop.f32.mrf.mxu2  ;;  %v6224_v39 = vadd.f32 %v2347_v62, %v1736_v58  ;;  %v3302_v62 = vshll.u32 %v5000_v3, 16  ;;  %v3308_v58 = vshll.u32 %v6222_v17, 16  ;;  %v3845_v25 = vsel %vm5498_vm7, %v5066_v16, %v3844_v0 }
 0x1c1   : > { %v1450_v61 = vadd.f32 %v1409_v37, %v1057_v14  ;;  %v1059_v14 = vadd.f32 %v1058_v41, %v5682_v6  ;;  %v2515_v37 = vrot.slane %v5206_v24, 5  ;;  %v2514_v3 = vrot.slane %v2512_v4, 4 }
 0x1c2   : > { %5033 = vmatmul.msk.bf16.gmra.mxu3 %vm709_vm4, %v3553_v33  ;;  %v3312_v33 = vshrl.u32 %v6222_v17, 16  ;;  %v3301_v6 = vrot.slane %v3299_v34, 4  ;;  %v3304_v41 = vrot.slane %v3302_v62, 5  ;;  %v6245_v56 = vrot.slane %v3308_v58, 5 }
 0x1c3   : > { %v3848_v10 = vsel %vm5498_vm7, %v3846_v26, %v3847_v38  ;;  %v3926_v16 = vunpack.c.l.b16 %v3845_v25  ;;  %v2513_v34 = vsel %vm5498_vm7, %v4840_v55, %v2512_v4  ;;  %v3318_v26 = vshll.u32 %v6250_v47, 16  ;;  %v6262_v25 = vld [vmem:[%s5312_s29 + $0x7c] sm:$0xf]  ;;  %v5051_v55 = vld [vmem:[%s5312_s29 + $0x6c] sm:$0xe] }
 0x1c4   : > { %v2350_v43 = vpop.f32.mrf.mxu0  ;;  %v3927_v62 = vunpack.c.l.b16 %v3848_v10  ;;  %v3305_v58 = vor.u32 %v3304_v41, %v3301_v6  ;;  %v2589_v24 = vunpack.c.l.b16 %v2513_v34  ;;  %v3332_v10 = vshll.u32 %v6262_v25, 16 }
 0x1c5   : > { %v1696_v11 = vpop.f32.mrf.mxu3  ;;  %v1061_v35 = vpop.f32.mrf.mxu1 }
 0x1c6   : > { %v1737_v23 = vadd.f32 %v1696_v11, %v1450_v61  ;;  %v3529_v61 = vunpack.c.l.b16 %v3297_v28  ;;  %v3314_v11 = vrot.slane %v3312_v33, 4  ;;  %v3952_v4 = vpack.c.b16 %v3927_v62, %v3926_v16  ;;  %v4825_v16 = vld [vmem:[%s5312_s29 + $0x6c] sm:$0xe] }
 0x1c7   : > { %5082 = vmatmul.msk.bf16.gmra.mxu0 %vm709_vm4, %v3951_v50 }
 0x1c8   : > { %v1411_v7 = vpop.f32.mrf.mxu2  ;;  %4856 = vmatmul.msk.bf16.gmra.mxu1 %vm709_vm4, %v2613_v48  ;;  %v6243_v50 = vadd.f32 %v2350_v43, %v1737_v23  ;;  %v3554_v0 = vpack.c.b16 %v3529_v61, %v3528_v60  ;;  %v2516_v23 = vsel %vm5498_vm7, %v2514_v3, %v2515_v37  ;;  %v3315_v33 = vor.u32 %v3314_v11, %v6245_v56  ;;  %v5003_v60 = vld [vmem:[%s5312_s29 + $0x78] sm:$0xf] }
 0x1c9   : > { %v1451_v9 = vadd.f32 %v1411_v7, %v1059_v14  ;;  %v1062_v14 = vadd.f32 %v1061_v35, %v5701_v45  ;;  %v2590_v7 = vunpack.c.l.b16 %v2516_v23  ;;  %v3306_v37 = vrot.slane %v3305_v58, 4  ;;  %v5207_v23 = vld [vmem:[%s5312_s29 + $0x70] sm:$0xf] }
 0x1ca   : > { %v3851_v45 = vrot.slane %v6222_v17, 5  ;;  %v3323_v35 = vshrl.u32 %v5003_v60, 16  ;;  %v3326_v11 = vshll.u32 %v5003_v60, 16  ;;  %v2519_v62 = vrot.slane %v5207_v23, 5 }
 0x1cb   : > { %v2614_v41 = vpack.c.b16 %v2590_v7, %v2589_v24  ;;  %v3311_v17 = vsel %vm5324_vm3, %v3306_v37, %v6245_v56  ;;  %v4841_v7 = vrot.slane %v4825_v16, 9  ;;  %v3334_v56 = vrot.slane %v3332_v10, 5 }
 0x1cc   : > { %v2352_v48 = vpop.f32.mrf.mxu0  ;;  %v3328_v60 = vrot.slane %v3326_v11, 5 }
 0x1cd   : > { %v1698_v28 = vpop.f32.mrf.mxu3  ;;  %4969 = vmatmul.msk.bf16.gmra.mxu2 %vm709_vm4, %v5134_v20  ;;  %v1063_v43 = vpop.f32.mrf.mxu1  ;;  %v3320_v20 = vrot.slane %v3318_v26, 5  ;;  %v3853_v26 = vrot.slane %v3851_v45, 4 }
 0x1ce   : > { %v1738_v49 = vadd.f32 %v1698_v28, %v1451_v9  ;;  %v3316_v9 = vrot.slane %v3315_v33, 4  ;;  %v3336_v28 = vshrl.u32 %v6262_v25, 16  ;;  %v1064_v33 = vadd.f32 %v1063_v43, %v5724_v12 }
 0x1cf   : > { %v3530_v12 = vunpack.c.l.b16 %v3311_v17 }
 0x1d0   : > { %v1414_v38 = vpop.f32.mrf.mxu2  ;;  %v6267_v3 = vadd.f32 %v2352_v48, %v1738_v49  ;;  %v5067_v48 = vrot.slane %v5051_v55, 9  ;;  %v3854_v49 = vrot.slane %v6250_v47, 5  ;;  %v5135_v55 = vld [vmem:[%s5312_s29 + $0x6c] sm:$0xff]  ;;  %v2521_v47 = vrot.slane %v2519_v62, 4 }
 0x1d1   : > { %v1452_v61 = vadd.f32 %v1414_v38, %v1062_v14  ;;  %v3321_v14 = vsel %vm5324_vm3, %v3316_v9, %v3320_v20  ;;  %v3325_v38 = vrot.slane %v3323_v35, 4  ;;  %v5005_v9 = vld [vmem:[%s5312_s29 + $0x80] sm:$0x1] }
 0x1d2   : > { %5034 = vmatmul.msk.bf16.gmra.mxu3 %vm709_vm4, %v3554_v0  ;;  %v3531_v43 = vunpack.c.l.b16 %v3321_v14  ;;  %v3852_v35 = vsel %vm5498_vm7, %v5067_v48, %v3851_v45  ;;  %v3342_v17 = vshll.u32 %v5005_v9, 16 }
 0x1d3   : > { %v3329_v11 = vor.u32 %v3328_v60, %v3325_v38 }
 0x1d4   : > { %v2355_v6 = vpop.f32.mrf.mxu0  ;;  %v3555_v45 = vpack.c.b16 %v3531_v43, %v3530_v12 }
 0x1d5   : > { %v1701_v0 = vpop.f32.mrf.mxu3  ;;  %v1066_v34 = vpop.f32.mrf.mxu1  ;;  %v3330_v60 = vrot.slane %v3329_v11, 4 }
 0x1d6   : > { %v1739_v58 = vadd.f32 %v1701_v0, %v1452_v61  ;;  %v3338_v61 = vrot.slane %v3336_v28, 4  ;;  %v5208_v0 = vld [vmem:[%s5312_s29 + $0x74] sm:$0x1]  ;;  %v1067_v48 = vadd.f32 %v1066_v34, %v5743_v59  ;;  %v6302_v34 = vld [vmem:[%s5312_s29 + $0x88] sm:$0xf] }
 0x1d7   : > { %5083 = vmatmul.msk.bf16.gmra.mxu0 %vm709_vm4, %v3952_v4  ;;  %v2522_v4 = vrot.slane %v5208_v0, 5 }
 0x1d8   : > { %v1416_v24 = vpop.f32.mrf.mxu2  ;;  %4857 = vmatmul.msk.bf16.gmra.mxu1 %vm709_vm4, %v2614_v41  ;;  %v6284_v23 = vadd.f32 %v2355_v6, %v1739_v58  ;;  %v3855_v41 = vsel %vm5498_vm7, %v3853_v26, %v3854_v49  ;;  %v2520_v6 = vsel %vm5498_vm7, %v4841_v7, %v2519_v62  ;;  %v3339_v58 = vor.u32 %v3338_v61, %v3334_v56 }
 0x1d9   : > { %v1453_v37 = vadd.f32 %v1416_v24, %v1064_v33  ;;  %v2523_v16 = vsel %vm5498_vm7, %v2521_v47, %v2522_v4  ;;  %v3928_v49 = vunpack.c.l.b16 %v3852_v35  ;;  %v3929_v14 = vunpack.c.l.b16 %v3855_v41 }
 0x1da   : > { %v2591_v38 = vunpack.c.l.b16 %v2520_v6  ;;  %v2592_v24 = vunpack.c.l.b16 %v2523_v16  ;;  %v3858_v62 = vrot.slane %v6262_v25, 5  ;;  %v3340_v0 = vrot.slane %v3339_v58, 4  ;;  %v4826_v16 = vld [vmem:[%s5312_s29 + $0x78] sm:$0xe]  ;;  %v5209_v58 = vld [vmem:[%s5312_s29 + $0x7c] sm:$0xf] }
 0x1db   : > { %v3344_v61 = vrot.slane %v3342_v17, 5  ;;  %v3953_v47 = vpack.c.b16 %v3929_v14, %v3928_v49  ;;  %v3335_v35 = vsel %vm5324_vm3, %v3330_v60, %v3334_v56  ;;  %v3861_v41 = vrot.slane %v5005_v9, 5 }
 0x1dc   : > { %v2357_v20 = vpop.f32.mrf.mxu0  ;;  %v2615_v43 = vpack.c.b16 %v2592_v24, %v2591_v38  ;;  %v3860_v25 = vrot.slane %v3858_v62, 4  ;;  %v2526_v17 = vrot.slane %v5209_v58, 5  ;;  %v3360_v49 = vshrl.u32 %v6302_v34, 16 }
 0x1dd   : > { %v1703_v10 = vpop.f32.mrf.mxu3  ;;  %4970 = vmatmul.msk.bf16.gmra.mxu2 %vm709_vm4, %v5135_v55  ;;  %v1068_v28 = vpop.f32.mrf.mxu1  ;;  %v5052_v55 = vld [vmem:[%s5312_s29 + $0x78] sm:$0xe]  ;;  %v3345_v6 = vsel %vm5324_vm3, %v3340_v0, %v3344_v61  ;;  %v3532_v9 = vunpack.c.l.b16 %v3335_v35  ;;  %v4842_v60 = vrot.slane %v4826_v16, 9  ;;  %v5210_v61 = vld [vmem:[%s5312_s29 + $0x80] sm:$0x1] }
 0x1de   : > { %v1740_v33 = vadd.f32 %v1703_v10, %v1453_v37  ;;  %v5006_v37 = vld [vmem:[%s5312_s29 + $0x84] sm:$0xf]  ;;  %v5068_v59 = vrot.slane %v5052_v55, 9  ;;  %v1069_v56 = vadd.f32 %v1068_v28, %v5760_v32  ;;  %v3862_v24 = vsel %vm5498_vm7, %v3860_v25, %v3861_v41 }
 0x1df   : > { %v2528_v0 = vrot.slane %v2526_v17, 4  ;;  %v3931_v25 = vunpack.c.l.b16 %v3862_v24  ;;  %v5009_v24 = vld [vmem:[%s5312_s29 + $0x90] sm:$0xf] }
 0x1e0   : > { %v1419_v26 = vpop.f32.mrf.mxu2  ;;  %v6304_v4 = vadd.f32 %v2357_v20, %v1740_v33  ;;  %v3350_v20 = vshll.u32 %v5006_v37, 16  ;;  %v3356_v33 = vshll.u32 %v6302_v34, 16  ;;  %v3859_v38 = vsel %vm5498_vm7, %v5068_v59, %v3858_v62 }
 0x1e1   : > { %v1454_v7 = vadd.f32 %v1419_v26, %v1067_v48  ;;  %v3533_v26 = vunpack.c.l.b16 %v3345_v6  ;;  %v3930_v58 = vunpack.c.l.b16 %v3859_v38 }
 0x1e2   : > { %5035 = vmatmul.msk.bf16.gmra.mxu3 %vm709_vm4, %v3555_v45  ;;  %v3347_v45 = vshrl.u32 %v5006_v37, 16  ;;  %v2529_v37 = vrot.slane %v5210_v61, 5  ;;  %v3352_v28 = vrot.slane %v3350_v20, 5  ;;  %v6325_v35 = vrot.slane %v3356_v33, 5  ;;  %v6340_v61 = vld [vmem:[%s5312_s29 + $0x94] sm:$0xf] }
 0x1e3   : > { %v3556_v59 = vpack.c.b16 %v3533_v26, %v3532_v9  ;;  %v5053_v9 = vld [vmem:[%s5312_s29 + $0x84] sm:$0xe]  ;;  %v3865_v26 = vrot.slane %v6302_v34, 5 }
 0x1e4   : > { %v2360_v12 = vpop.f32.mrf.mxu0  ;;  %v3349_v32 = vrot.slane %v3347_v45, 4  ;;  %v2530_v16 = vsel %vm5498_vm7, %v2528_v0, %v2529_v37  ;;  %v5069_v37 = vrot.slane %v5053_v9, 9 }
 0x1e5   : > { %v1706_v11 = vpop.f32.mrf.mxu3  ;;  %v2683_v10 = vpop.f32.mrf.mxu1  ;;  %v2594_v38 = vunpack.c.l.b16 %v2530_v16  ;;  %v3867_v34 = vrot.slane %v3865_v26, 4 }
 0x1e6   : > { %v1741_v48 = vadd.f32 %v1706_v11, %v1454_v7  ;;  %v5136_v7 = vld [vmem:[%s5312_s29 + $0x78] sm:$0xff]  ;;  %v5008_v11 = vld [vmem:[%s5312_s29 + $0x8c] sm:$0x1] }
 0x1e7   : > { %5084 = vmatmul.msk.bf16.gmra.mxu0 %vm709_vm4, %v3953_v47  ;;  %v3366_v33 = vshll.u32 %v5008_v11, 16 }
 0x1e8   : > { %v1421_v14 = vpop.f32.mrf.mxu2  ;;  %4858 = vmatmul.msk.bf16.gmra.mxu1 %vm709_vm4, %v2615_v43  ;;  %v6323_v47 = vadd.f32 %v2360_v12, %v1741_v48  ;;  %v3362_v43 = vrot.slane %v3360_v49, 4  ;;  %v2527_v12 = vsel %vm5498_vm7, %v4842_v60, %v2526_v17  ;;  %v3353_v48 = vor.u32 %v3352_v28, %v3349_v32 }
 0x1e9   : > { %v1455_v55 = vadd.f32 %v1421_v14, %v1069_v56  ;;  %v2763_v49 = vadd.f32 %v2683_v10, %v5777_v46  ;;  %v2593_v14 = vunpack.c.l.b16 %v2527_v12  ;;  %v3368_v0 = vrot.slane %v3366_v33, 5  ;;  %v5211_v12 = vld [vmem:[%s5312_s29 + $0x88] sm:$0xf] }
 0x1ea   : > { %6712 = vst [vmem:[#allocation4_spill] sm:$0xff] %v6323_v47  ;;  %v3363_v20 = vor.u32 %v3362_v43, %v6325_v35  ;;  %v3354_v60 = vrot.slane %v3353_v48, 4  ;;  %v3371_v46 = vshrl.u32 %v5009_v24, 16  ;;  %v3374_v10 = vshll.u32 %v5009_v24, 16 }
 0x1eb   : > { %v2616_v43 = vpack.c.b16 %v2594_v38, %v2593_v14  ;;  %v2533_v16 = vrot.slane %v5211_v12, 5  ;;  %v3380_v48 = vshll.u32 %v6340_v61, 16 }
 0x1ec   : > { %v2362_v6 = vpop.f32.mrf.mxu0  ;;  %v3376_v14 = vrot.slane %v3374_v10, 5 }
 0x1ed   : > { %v1708_v62 = vpop.f32.mrf.mxu3  ;;  %4971 = vmatmul.msk.bf16.gmra.mxu2 %vm709_vm4, %v5136_v7  ;;  %v2685_v41 = vpop.f32.mrf.mxu1  ;;  %v3954_v7 = vpack.c.b16 %v3931_v25, %v3930_v58 }
 0x1ee   : > { %v1742_v45 = vadd.f32 %v1708_v62, %v1455_v55  ;;  %v3364_v55 = vrot.slane %v3363_v20, 4  ;;  %v3868_v62 = vrot.slane %v5008_v11, 5  ;;  %v3384_v20 = vshrl.u32 %v6340_v61, 16 }
 0x1ef   : > { %v3359_v11 = vsel %vm5324_vm3, %v3354_v60, %v6325_v35  ;;  %v2764_v9 = vadd.f32 %v2685_v41, %v5790_v42  ;;  %v2535_v60 = vrot.slane %v2533_v16, 4  ;;  %v6371_v42 = vld [vmem:[%s5312_s29 + $0x98] sm:$0x1] }
 0x1f0   : > { %v2970_v56 = vpop.f32.mrf.mxu2  ;;  %v6342_v32 = vadd.f32 %v2362_v6, %v1742_v45  ;;  %v6351_v6 = vld [vmem:[%s6704_s2] ss:$0 sm:$0xff]  ;;  %v3369_v45 = vsel %vm5324_vm3, %v3364_v55, %v3368_v0  ;;  %v3869_v35 = vsel %vm5498_vm7, %v3867_v34, %v3868_v62  ;;  %v6367_v0 = vrot.slane %v3380_v48, 5 }
 0x1f1   : > { %v3050_v17 = vadd.f32 %v2970_v56, %v2763_v49  ;;  %v3866_v49 = vsel %vm5498_vm7, %v5069_v37, %v3865_v26  ;;  %v3373_v56 = vrot.slane %v3371_v46, 4  ;;  %v3386_v26 = vrot.slane %v3384_v20, 4 }
 0x1f2   : > { %5036 = vmatmul.msk.bf16.gmra.mxu3 %vm709_vm4, %v3556_v59  ;;  %6713 = vst [vmem:[#allocation5_spill] sm:$0xff] %v6342_v32  ;;  %v4827_v59 = vld [vmem:[%s5312_s29 + $0x84] sm:$0xe]  ;;  %v3534_v10 = vunpack.c.l.b16 %v3359_v11  ;;  %v3932_v41 = vunpack.c.l.b16 %v3866_v49 }
 0x1f3   : > { %v3377_v12 = vor.u32 %v3376_v14, %v3373_v56  ;;  %v3387_v11 = vor.u32 %v3386_v26, %v6367_v0 }
 0x1f4   : > { %v4022_v28 = vpop.f32.mrf.mxu0 }
 0x1f5   : > { %v3624_v58 = vpop.f32.mrf.mxu3  ;;  %v2688_v25 = vpop.f32.mrf.mxu1  ;;  %v3388_v26 = vrot.slane %v3387_v11, 4 }
 0x1f6   : > { %v3704_v33 = vadd.f32 %v3624_v58, %v3050_v17  ;;  %v4843_v17 = vrot.slane %v4827_v59, 9  ;;  %v5212_v58 = vld [vmem:[%s5312_s29 + $0x8c] sm:$0x1] }
 0x1f7   : > { %5085 = vmatmul.msk.bf16.gmra.mxu0 %vm709_vm4, %v3954_v7  ;;  %v5137_v7 = vld [vmem:[%s5312_s29 + $0x84] sm:$0xff]  ;;  %v2536_v55 = vrot.slane %v5212_v58, 5 }
 0x1f8   : > { %v4102_v38 = vadd.f32 %v4022_v28, %v3704_v33  ;;  %v2972_v24 = vpop.f32.mrf.mxu2  ;;  %4859 = vmatmul.msk.bf16.gmra.mxu1 %vm709_vm4, %v2616_v43  ;;  %v3535_v28 = vunpack.c.l.b16 %v3369_v45  ;;  %v3933_v43 = vunpack.c.l.b16 %v3869_v35  ;;  %v2534_v59 = vsel %vm5498_vm7, %v4843_v17, %v2533_v16 }
 0x1f9   : > { %v3051_v46 = vadd.f32 %v2972_v24, %v2764_v9  ;;  %v2537_v20 = vsel %vm5498_vm7, %v2535_v60, %v2536_v55  ;;  %v3390_v45 = vshll.u32 %v6371_v42, 16  ;;  %v2595_v16 = vunpack.c.l.b16 %v2534_v59  ;;  %v5054_v60 = vld [vmem:[%s5312_s29 + $0x90] sm:$0xe]  ;;  %v6384_v55 = vld [vmem:[%s5312_s29 + $0xa0] sm:$0xf] }
 0x1fa   : > { %v4138_v37 = vadd.f32 %v6351_v6, %v4102_v38  ;;  %v3557_v14 = vpack.c.b16 %v3535_v28, %v3534_v10  ;;  %v5012_v38 = vld [vmem:[%s5312_s29 + $0x9c] sm:$0xf]  ;;  %v3955_v9 = vpack.c.b16 %v3933_v43, %v3932_v41  ;;  %v3378_v24 = vrot.slane %v3377_v12, 4 }
 0x1fb   : > { %v3392_v32 = vrot.slane %v3390_v45, 5  ;;  %v3395_v47 = vshrl.u32 %v5012_v38, 16  ;;  %v3875_v41 = vrot.slane %v6371_v42, 5  ;;  %v3404_v43 = vshll.u32 %v6384_v55, 16 }
 0x1fc   : > { %v4170_v34 = vmax.f32 %v4138_v37, 0.0  ;;  %v4024_v62 = vpop.f32.mrf.mxu0  ;;  %v2596_v37 = vunpack.c.l.b16 %v2537_v20  ;;  %v3408_v12 = vshrl.u32 %v6384_v55, 16  ;;  %v3383_v11 = vsel %vm5324_vm3, %v3378_v24, %v6367_v0 }
 0x1fd   : > { %v3626_v33 = vpop.f32.mrf.mxu3  ;;  %4972 = vmatmul.msk.bf16.gmra.mxu2 %vm709_vm4, %v5137_v7  ;;  %v2690_v48 = vpop.f32.mrf.mxu1  ;;  %v2765_v7 = vadd.f32 %v2688_v25, %v5803_v15  ;;  %v3872_v15 = vrot.slane %v6340_v61, 5  ;;  %v5070_v25 = vrot.slane %v5054_v60, 9  ;;  %v3393_v42 = vsel %vm5324_vm3, %v3388_v26, %v3392_v32 }
 0x1fe   : > { %v4202_v49 = vmin.f32 %v4170_v34, 1.0  ;;  %v3705_v56 = vadd.f32 %v3626_v33, %v3051_v46  ;;  %v3398_v34 = vshll.u32 %v5012_v38, 16  ;;  %v2617_v20 = vpack.c.b16 %v2596_v37, %v2595_v16 }
 0x1ff   : > { %v3397_v38 = vrot.slane %v3395_v47, 4  ;;  %v3874_v24 = vrot.slane %v3872_v15, 4  ;;  %v6408_v37 = vrot.slane %v3404_v43, 5  ;;  %v3410_v32 = vrot.slane %v3408_v12, 4 }
 0x200   : > { %v4234_v35 = vmul.f32 8.0, %v4202_v49  ;;  %v4103_v17 = vadd.f32 %v4024_v62, %v3705_v56  ;;  %v2975_v58 = vpop.f32.mrf.mxu2  ;;  %v4828_v49 = vld [vmem:[%s5312_s29 + $0x90] sm:$0xe]  ;;  %v5213_v56 = vld [vmem:[%s5312_s29 + $0x94] sm:$0xf]  ;;  %v3400_v16 = vrot.slane %v3398_v34, 5  ;;  %v2766_v26 = vadd.f32 %v2690_v48, %v5816_v13 }
 0x201   : > { %v3052_v28 = vadd.f32 %v2975_v58, %v2765_v7  ;;  %v3536_v7 = vunpack.c.l.b16 %v3383_v11  ;;  %v3873_v58 = vsel %vm5498_vm7, %v5070_v25, %v3872_v15  ;;  %v3411_v13 = vor.u32 %v3410_v32, %v6408_v37 }
 0x202   : > { %v4266_v46 = vadd.f32 0.5, %v4234_v35  ;;  %v4139_v10 = vadd.f32 %v6351_v6, %v4103_v17  ;;  %5037 = vmatmul.msk.bf16.gmra.mxu3 %vm709_vm4, %v3557_v14  ;;  %v2540_v14 = vrot.slane %v5213_v56, 5  ;;  %v3401_v15 = vor.u32 %v3400_v16, %v3397_v38 }
 0x203   : > { %v3934_v38 = vunpack.c.l.b16 %v3873_v58 }
 0x204   : > { %v4298_v62 = vfloor.f32 %v4266_v46  ;;  %v4171_v59 = vmax.f32 %v4139_v10, 0.0  ;;  %v4027_v33 = vpop.f32.mrf.mxu0  ;;  %v4844_v46 = vrot.slane %v4828_v49, 9  ;;  %v6414_v10 = vld [vmem:[%s5312_s29 + $0xa4] sm:$0x1] }
 0x205   : > { %v3629_v61 = vpop.f32.mrf.mxu3  ;;  %v2693_v45 = vpop.f32.mrf.mxu1  ;;  %v3414_v48 = vshll.u32 %v6414_v10, 16 }
 0x206   : > { %v4330_v35 = vmul.f32 0.125, %v4298_v62  ;;  %v4203_v17 = vmin.f32 %v4171_v59, 1.0  ;;  %v3706_v0 = vadd.f32 %v3629_v61, %v3052_v28  ;;  %v3537_v28 = vunpack.c.l.b16 %v3393_v42  ;;  %v5214_v59 = vld [vmem:[%s5312_s29 + $0x98] sm:$0x1] }
 0x207   : > { %5086 = vmatmul.msk.bf16.gmra.mxu0 %vm709_vm4, %v3955_v9  ;;  %v5138_v9 = vld [vmem:[%s5312_s29 + $0x90] sm:$0xff]  ;;  %v2542_v62 = vrot.slane %v2540_v14, 4  ;;  %v2543_v11 = vrot.slane %v5214_v59, 5  ;;  %v2541_v42 = vsel %vm5498_vm7, %v4844_v46, %v2540_v14  ;;  %v3416_v14 = vrot.slane %v3414_v48, 5 }
 0x208   : > { %4362 = vst [vmem:[%s6399_s19] sm:$0xff] %v4330_v35  ;;  %v4235_v60 = vmul.f32 8.0, %v4203_v17  ;;  %v4104_v47 = vadd.f32 %v4027_v33, %v3706_v0  ;;  %v2977_v34 = vpop.f32.mrf.mxu2  ;;  %4860 = vmatmul.msk.bf16.gmra.mxu1 %vm709_vm4, %v2617_v20  ;;  %v3876_v33 = vsel %vm5498_vm7, %v3874_v24, %v3875_v41  ;;  %v3402_v17 = vrot.slane %v3401_v15, 4 }
 0x209   : > { %v3053_v12 = vadd.f32 %v2977_v34, %v2766_v26  ;;  %v3935_v16 = vunpack.c.l.b16 %v3876_v33  ;;  %v2544_v41 = vsel %vm5498_vm7, %v2542_v62, %v2543_v11  ;;  %v3412_v26 = vrot.slane %v3411_v13, 4 }
 0x20a   : > { %v4267_v25 = vadd.f32 0.5, %v4235_v60  ;;  %v4140_v43 = vadd.f32 %v6351_v6, %v4104_v47  ;;  %v3558_v60 = vpack.c.b16 %v3537_v28, %v3536_v7  ;;  %v2597_v47 = vunpack.c.l.b16 %v2541_v42 }
 0x20b   : > { %v2767_v58 = vadd.f32 %v2693_v45, %v5829_v57  ;;  %v2598_v59 = vunpack.c.l.b16 %v2544_v41  ;;  %v3956_v62 = vpack.c.b16 %v3935_v16, %v3934_v38  ;;  %v3407_v11 = vsel %vm5324_vm3, %v3402_v17, %v6408_v37  ;;  %v4829_v17 = vld [vmem:[%s5312_s29 + $0x9c] sm:$0xe] }
 0x20c   : > { %v4299_v20 = vfloor.f32 %v4267_v25  ;;  %v4172_v61 = vmax.f32 %v4140_v43, 0.0  ;;  %v4029_v49 = vpop.f32.mrf.mxu0  ;;  %v5015_v25 = vld [vmem:[%s5312_s29 + $0xa8] sm:$0xf]  ;;  %v6432_v43 = vld [vmem:[%s5312_s29 + $0xac] sm:$0xf]  ;;  %v3879_v57 = vrot.slane %v6384_v55, 5  ;;  %v3417_v42 = vsel %vm5324_vm3, %v3412_v26, %v3416_v14 }
 0x20d   : > { %v3631_v56 = vpop.f32.mrf.mxu3  ;;  %4973 = vmatmul.msk.bf16.gmra.mxu2 %vm709_vm4, %v5138_v9  ;;  %v2695_v35 = vpop.f32.mrf.mxu1  ;;  %v3419_v45 = vshrl.u32 %v5015_v25, 16  ;;  %v3422_v33 = vshll.u32 %v5015_v25, 16  ;;  %v3428_v13 = vshll.u32 %v6432_v43, 16  ;;  %v3432_v48 = vshrl.u32 %v6432_v43, 16 }
 0x20e   : > { %v4331_v0 = vmul.f32 0.125, %v4299_v20  ;;  %v4204_v24 = vmin.f32 %v4172_v61, 1.0  ;;  %v3707_v32 = vadd.f32 %v3631_v56, %v3053_v12  ;;  %v5055_v12 = vld [vmem:[%s5312_s29 + $0x9c] sm:$0xe]  ;;  %v6445_v16 = vunpack.c.l.b16 %v3407_v11 }
 0x20f   : > { %v5071_v55 = vrot.slane %v5055_v12, 9  ;;  %v3882_v41 = vrot.slane %v6414_v10, 5  ;;  %v3421_v26 = vrot.slane %v3419_v45, 4  ;;  %v3424_v14 = vrot.slane %v3422_v33, 5  ;;  %v5216_v45 = vld [vmem:[%s5312_s29 + $0xa4] sm:$0x1] }
 0x210   : > { %4363 = vst [vmem:[%s6399_s19 + $0x8] sm:$0xff] %v4331_v0  ;;  %v4236_v34 = vmul.f32 8.0, %v4204_v24  ;;  %v4105_v46 = vadd.f32 %v4029_v49, %v3707_v32  ;;  %v2980_v9 = vpop.f32.mrf.mxu2  ;;  %v2618_v49 = vpack.c.b16 %v2598_v59, %v2597_v47  ;;  %v5215_v0 = vld [vmem:[%s5312_s29 + $0xa0] sm:$0xf]  ;;  %v3881_v47 = vrot.slane %v3879_v57, 4 }
 0x211   : > { %v3054_v15 = vadd.f32 %v2980_v9, %v2767_v58  ;;  %v2547_v24 = vrot.slane %v5215_v0, 5  ;;  %v3434_v58 = vrot.slane %v3432_v48, 4  ;;  %v2768_v59 = vadd.f32 %v2695_v35, %v5842_v54 }
 0x212   : > { %v4268_v7 = vadd.f32 0.5, %v4236_v34  ;;  %v4141_v28 = vadd.f32 %v6351_v6, %v4105_v46  ;;  %5038 = vmatmul.msk.bf16.gmra.mxu3 %vm709_vm4, %v3558_v60  ;;  %v6451_v46 = vrot.slane %v3428_v13, 5  ;;  %v4845_v11 = vrot.slane %v4829_v17, 9 }
 0x213   : > { %v2549_v12 = vrot.slane %v2547_v24, 4  ;;  %v2550_v33 = vrot.slane %v5216_v45, 5  ;;  %v3883_v54 = vsel %vm5498_vm7, %v3881_v47, %v3882_v41  ;;  %v3425_v35 = vor.u32 %v3424_v14, %v3421_v26  ;;  %v5018_v14 = vld [vmem:[%s5312_s29 + $0xb4] sm:$0xf] }
 0x214   : > { %v4300_v20 = vfloor.f32 %v4268_v7  ;;  %v4173_v61 = vmax.f32 %v4141_v28, 0.0  ;;  %v4032_v37 = vpop.f32.mrf.mxu0  ;;  %v6457_v7 = vld [vmem:[%s5312_s29 + $0xb0] sm:$0x1]  ;;  %v5139_v28 = vld [vmem:[%s5312_s29 + $0x9c] sm:$0xff]  ;;  %v3937_v0 = vunpack.c.l.b16 %v3883_v54  ;;  %v3446_v54 = vshll.u32 %v5018_v14, 16 }
 0x215   : > { %v3634_v56 = vpop.f32.mrf.mxu3  ;;  %v2698_v38 = vpop.f32.mrf.mxu1  ;;  %v2551_v41 = vsel %vm5498_vm7, %v2549_v12, %v2550_v33  ;;  %v6478_v12 = vld [vmem:[%s5312_s29 + $0xb8] sm:$0xf]  ;;  %v3886_v33 = vrot.slane %v6432_v43, 5 }
 0x216   : > { %v4332_v32 = vmul.f32 0.125, %v4300_v20  ;;  %v4205_v60 = vmin.f32 %v4173_v61, 1.0  ;;  %v3708_v34 = vadd.f32 %v3634_v56, %v3054_v15  ;;  %v3539_v15 = vunpack.c.l.b16 %v3417_v42 }
 0x217   : > { %5087 = vmatmul.msk.bf16.gmra.mxu0 %vm709_vm4, %v3956_v62  ;;  %v3880_v62 = vsel %vm5498_vm7, %v5071_v55, %v3879_v57  ;;  %v3435_v61 = vor.u32 %v3434_v58, %v6451_v46  ;;  %v2548_v57 = vsel %vm5498_vm7, %v4845_v11, %v2547_v24  ;;  %v2769_v11 = vadd.f32 %v2698_v38, %v5854_v31 }
 0x218   : > { %4364 = vst [vmem:[%s6399_s19 + $0x10] sm:$0xff] %v4332_v32  ;;  %v4237_v9 = vmul.f32 8.0, %v4205_v60  ;;  %v4106_v10 = vadd.f32 %v4032_v37, %v3708_v34  ;;  %v2982_v25 = vpop.f32.mrf.mxu2  ;;  %4861 = vmatmul.msk.bf16.gmra.mxu1 %vm709_vm4, %v2618_v49  ;;  %v3438_v37 = vshll.u32 %v6457_v7, 16  ;;  %v3936_v17 = vunpack.c.l.b16 %v3880_v62 }
 0x219   : > { %v3055_v20 = vadd.f32 %v2982_v25, %v2768_v59  ;;  %v3559_v26 = vpack.c.b16 %v3539_v15, %v6445_v16  ;;  %v2599_v58 = vunpack.c.l.b16 %v2548_v57  ;;  %v3436_v24 = vrot.slane %v3435_v61, 4  ;;  %v5217_v57 = vld [vmem:[%s5312_s29 + $0xac] sm:$0xf] }
 0x21a   : > { %v4269_v13 = vadd.f32 0.5, %v4237_v9  ;;  %v4142_v48 = vadd.f32 %v6351_v6, %v4106_v10  ;;  %v3426_v9 = vrot.slane %v3425_v35, 4  ;;  %v3440_v10 = vrot.slane %v3438_v37, 5 }
 0x21b   : > { %v2600_v62 = vunpack.c.l.b16 %v2551_v41  ;;  %v3957_v45 = vpack.c.b16 %v3937_v0, %v3936_v17  ;;  %v3443_v16 = vshrl.u32 %v5018_v14, 16  ;;  %v3452_v43 = vshll.u32 %v6478_v12, 16 }
 0x21c   : > { %v4301_v49 = vfloor.f32 %v4269_v13  ;;  %v4174_v42 = vmax.f32 %v4142_v48, 0.0  ;;  %v4034_v56 = vpop.f32.mrf.mxu0  ;;  %v3431_v31 = vsel %vm5324_vm3, %v3426_v9, %v6451_v46  ;;  %v3441_v38 = vsel %vm5324_vm3, %v3436_v24, %v3440_v10 }
 0x21d   : > { %v3636_v55 = vpop.f32.mrf.mxu3  ;;  %4974 = vmatmul.msk.bf16.gmra.mxu2 %vm709_vm4, %v5139_v28  ;;  %v2700_v32 = vpop.f32.mrf.mxu1  ;;  %v3456_v35 = vshrl.u32 %v6478_v12, 16  ;;  %v3889_v46 = vrot.slane %v6457_v7, 5  ;;  %v3448_v9 = vrot.slane %v3446_v54, 5  ;;  %v6496_v10 = vrot.slane %v3452_v43, 5 }
 0x21e   : > { %v4333_v60 = vmul.f32 0.125, %v4301_v49  ;;  %v4206_v34 = vmin.f32 %v4174_v42, 1.0  ;;  %v3709_v47 = vadd.f32 %v3636_v55, %v3055_v20  ;;  %v5056_v20 = vld [vmem:[%s5312_s29 + $0xa8] sm:$0xe]  ;;  %v2619_v42 = vpack.c.b16 %v2600_v62, %v2599_v58  ;;  %v5218_v62 = vld [vmem:[%s5312_s29 + $0xb0] sm:$0x1] }
 0x21f   : > { %v2554_v55 = vrot.slane %v5217_v57, 5  ;;  %v5072_v41 = vrot.slane %v5056_v20, 9  ;;  %v2770_v58 = vadd.f32 %v2700_v32, %v5867_v44 }
 0x220   : > { %4365 = vst [vmem:[%s6399_s19 + $0x18] sm:$0xff] %v4333_v60  ;;  %v4238_v59 = vmul.f32 8.0, %v4206_v34  ;;  %v4107_v25 = vadd.f32 %v4034_v56, %v3709_v47  ;;  %v2985_v28 = vpop.f32.mrf.mxu2  ;;  %v4830_v56 = vld [vmem:[%s5312_s29 + $0xa8] sm:$0xe]  ;;  %v3888_v60 = vrot.slane %v3886_v33, 4  ;;  %v3445_v34 = vrot.slane %v3443_v16, 4 }
 0x221   : > { %v3056_v48 = vadd.f32 %v2985_v28, %v2769_v11  ;;  %v4846_v24 = vrot.slane %v4830_v56, 9  ;;  %v2556_v28 = vrot.slane %v2554_v55, 4  ;;  %v2557_v16 = vrot.slane %v5218_v62, 5 }
 0x222   : > { %v4270_v15 = vadd.f32 0.5, %v4238_v59  ;;  %v4143_v13 = vadd.f32 %v6351_v6, %v4107_v25  ;;  %5039 = vmatmul.msk.bf16.gmra.mxu3 %vm709_vm4, %v3559_v26  ;;  %v3458_v59 = vrot.slane %v3456_v35, 4  ;;  %v3887_v44 = vsel %vm5498_vm7, %v5072_v41, %v3886_v33 }
 0x223   : > { %v3890_v32 = vsel %vm5498_vm7, %v3888_v60, %v3889_v46  ;;  %v3449_v35 = vor.u32 %v3448_v9, %v3445_v34  ;;  %v2555_v33 = vsel %vm5498_vm7, %v4846_v24, %v2554_v55  ;;  %v5021_v46 = vld [vmem:[%s5312_s29 + $0xc0] sm:$0xf]  ;;  %v6519_v9 = vld [vmem:[%s5312_s29 + $0xc4] sm:$0xf] }
 0x224   : > { %v4302_v61 = vfloor.f32 %v4270_v15  ;;  %v4175_v37 = vmax.f32 %v4143_v13, 0.0  ;;  %v4037_v49 = vpop.f32.mrf.mxu0  ;;  %v6502_v15 = vld [vmem:[%s5312_s29 + $0xbc] sm:$0x1]  ;;  %v5140_v13 = vld [vmem:[%s5312_s29 + $0xa8] sm:$0xff]  ;;  %v3939_v41 = vunpack.c.l.b16 %v3890_v32  ;;  %v3467_v62 = vshrl.u32 %v5021_v46, 16 }
 0x225   : > { %v3639_v17 = vpop.f32.mrf.mxu3  ;;  %v2703_v0 = vpop.f32.mrf.mxu1 }
 0x226   : > { %v4334_v47 = vmul.f32 0.125, %v4302_v61  ;;  %v4207_v26 = vmin.f32 %v4175_v37, 1.0  ;;  %v3710_v14 = vadd.f32 %v3639_v17, %v3056_v48  ;;  %v3540_v48 = vunpack.c.l.b16 %v3431_v31 }
 0x227   : > { %5088 = vmatmul.msk.bf16.gmra.mxu0 %vm709_vm4, %v3957_v45  ;;  %v3541_v45 = vunpack.c.l.b16 %v3441_v38  ;;  %v3459_v61 = vor.u32 %v3458_v59, %v6496_v10  ;;  %v3462_v37 = vshll.u32 %v6502_v15, 16  ;;  %v3938_v17 = vunpack.c.l.b16 %v3887_v44 }
 0x228   : > { %4366 = vst [vmem:[%s6399_s19 + $0x20] sm:$0xff] %v4334_v47  ;;  %v4239_v25 = vmul.f32 8.0, %v4207_v26  ;;  %v4108_v11 = vadd.f32 %v4037_v49, %v3710_v14  ;;  %v2987_v7 = vpop.f32.mrf.mxu2  ;;  %4862 = vmatmul.msk.bf16.gmra.mxu1 %vm709_vm4, %v2619_v42  ;;  %v2558_v42 = vsel %vm5498_vm7, %v2556_v28, %v2557_v16  ;;  %v3450_v14 = vrot.slane %v3449_v35, 4 }
 0x229   : > { %v3057_v43 = vadd.f32 %v2987_v7, %v2770_v58  ;;  %v3560_v57 = vpack.c.b16 %v3541_v45, %v3540_v48  ;;  %v2601_v58 = vunpack.c.l.b16 %v2555_v33  ;;  %v2602_v55 = vunpack.c.l.b16 %v2558_v42  ;;  %v4831_v42 = vld [vmem:[%s5312_s29 + $0xb4] sm:$0xe] }
 0x22a   : > { %v4271_v20 = vadd.f32 0.5, %v4239_v25  ;;  %v4144_v54 = vadd.f32 %v6351_v6, %v4108_v11  ;;  %v3460_v24 = vrot.slane %v3459_v61, 4  ;;  %v3464_v59 = vrot.slane %v3462_v37, 5 }
 0x22b   : > { %v2771_v7 = vadd.f32 %v2703_v0, %v5881_v30  ;;  %v3470_v16 = vshll.u32 %v5021_v46, 16  ;;  %v3480_v48 = vshrl.u32 %v6519_v9, 16  ;;  %v3455_v30 = vsel %vm5324_vm3, %v3450_v14, %v6496_v10 }
 0x22c   : > { %v4303_v49 = vfloor.f32 %v4271_v20  ;;  %v4176_v31 = vmax.f32 %v4144_v54, 0.0  ;;  %v4039_v38 = vpop.f32.mrf.mxu0  ;;  %v3958_v20 = vpack.c.b16 %v3939_v41, %v3938_v17  ;;  %v3465_v0 = vsel %vm5324_vm3, %v3460_v24, %v3464_v59  ;;  %v6541_v24 = vld [vmem:[%s5312_s29 + $0xc8] sm:$0x1] }
 0x22d   : > { %v3641_v56 = vpop.f32.mrf.mxu3  ;;  %4975 = vmatmul.msk.bf16.gmra.mxu2 %vm709_vm4, %v5140_v13  ;;  %v2705_v60 = vpop.f32.mrf.mxu1  ;;  %v3476_v13 = vshll.u32 %v6519_v9, 16  ;;  %v3893_v54 = vrot.slane %v6478_v12, 5  ;;  %v2620_v37 = vpack.c.b16 %v2602_v55, %v2601_v58  ;;  %v3472_v17 = vrot.slane %v3470_v16, 5 }
 0x22e   : > { %v4335_v34 = vmul.f32 0.125, %v4303_v49  ;;  %v4208_v47 = vmin.f32 %v4176_v31, 1.0  ;;  %v3711_v26 = vadd.f32 %v3641_v56, %v3057_v43  ;;  %v5057_v49 = vld [vmem:[%s5312_s29 + $0xb4] sm:$0xe]  ;;  %v3469_v31 = vrot.slane %v3467_v62, 4 }
 0x22f   : > { %v5219_v56 = vld [vmem:[%s5312_s29 + $0xb8] sm:$0xf]  ;;  %v6536_v10 = vrot.slane %v3476_v13, 5  ;;  %v3482_v41 = vrot.slane %v3480_v48, 4  ;;  %v5073_v14 = vrot.slane %v5057_v49, 9  ;;  %v3895_v58 = vrot.slane %v3893_v54, 4 }
 0x230   : > { %4367 = vst [vmem:[%s6399_s19 + $0x28] sm:$0xff] %v4335_v34  ;;  %v4240_v25 = vmul.f32 8.0, %v4208_v47  ;;  %v4109_v11 = vadd.f32 %v4039_v38, %v3711_v26  ;;  %v2990_v28 = vpop.f32.mrf.mxu2  ;;  %v3542_v47 = vunpack.c.l.b16 %v3455_v30  ;;  %v3543_v26 = vunpack.c.l.b16 %v3465_v0  ;;  %v5141_v62 = vld [vmem:[%s5312_s29 + $0xb4] sm:$0xff]  ;;  %v5220_v13 = vld [vmem:[%s5312_s29 + $0xbc] sm:$0x1] }
 0x231   : > { %v3058_v32 = vadd.f32 %v2990_v28, %v2771_v7  ;;  %v3896_v55 = vrot.slane %v6502_v15, 5  ;;  %v4847_v28 = vrot.slane %v4831_v42, 9  ;;  %v2564_v48 = vrot.slane %v5220_v13, 5 }
 0x232   : > { %v4272_v45 = vadd.f32 0.5, %v4240_v25  ;;  %v4145_v44 = vadd.f32 %v6351_v6, %v4109_v11  ;;  %5040 = vmatmul.msk.bf16.gmra.mxu3 %vm709_vm4, %v3560_v57  ;;  %v2561_v57 = vrot.slane %v5219_v56, 5  ;;  %v2772_v11 = vadd.f32 %v2705_v60, %v5894_v51 }
 0x233   : > { %v3486_v30 = vshll.u32 %v6541_v24, 16  ;;  %v3894_v51 = vsel %vm5498_vm7, %v5073_v14, %v3893_v54  ;;  %v3561_v49 = vpack.c.b16 %v3543_v26, %v3542_v47 }
 0x234   : > { %v4304_v43 = vfloor.f32 %v4272_v45  ;;  %v4177_v35 = vmax.f32 %v4145_v44, 0.0  ;;  %v4042_v61 = vpop.f32.mrf.mxu0  ;;  %v2563_v16 = vrot.slane %v2561_v57, 4  ;;  %v3473_v45 = vor.u32 %v3472_v17, %v3469_v31 }
 0x235   : > { %v3644_v38 = vpop.f32.mrf.mxu3  ;;  %v2708_v33 = vpop.f32.mrf.mxu1  ;;  %v3483_v44 = vor.u32 %v3482_v41, %v6536_v10 }
 0x236   : > { %v4336_v46 = vmul.f32 0.125, %v4304_v43  ;;  %v4209_v34 = vmin.f32 %v4177_v35, 1.0  ;;  %v3712_v12 = vadd.f32 %v3644_v38, %v3058_v32  ;;  %v3897_v35 = vsel %vm5498_vm7, %v3895_v58, %v3896_v55 }
 0x237   : > { %5089 = vmatmul.msk.bf16.gmra.mxu0 %vm709_vm4, %v3958_v20  ;;  %v2565_v38 = vsel %vm5498_vm7, %v2563_v16, %v2564_v48  ;;  %v3474_v42 = vrot.slane %v3473_v45, 4  ;;  %v3484_v54 = vrot.slane %v3483_v44, 4  ;;  %v2773_v47 = vadd.f32 %v2708_v33, %v5910_v1  ;;  %v5024_v1 = vld [vmem:[%s5312_s29 + $0xcc] sm:$0xf] }
 0x238   : > { %4368 = vst [vmem:[%s6399_s19 + $0x30] sm:$0xff] %v4336_v46  ;;  %v4241_v59 = vmul.f32 8.0, %v4209_v34  ;;  %v4110_v25 = vadd.f32 %v4042_v61, %v3712_v12  ;;  %v2992_v7 = vpop.f32.mrf.mxu2  ;;  %4863 = vmatmul.msk.bf16.gmra.mxu1 %vm709_vm4, %v2620_v37  ;;  %v2562_v61 = vsel %vm5498_vm7, %v4847_v28, %v2561_v57  ;;  %v3488_v46 = vrot.slane %v3486_v30, 5 }
 0x239   : > { %v3059_v20 = vadd.f32 %v2992_v7, %v2772_v11  ;;  %v3940_v34 = vunpack.c.l.b16 %v3894_v51  ;;  %v3941_v12 = vunpack.c.l.b16 %v3897_v35  ;;  %v2603_v14 = vunpack.c.l.b16 %v2562_v61 }
 0x23a   : > { %v4273_v32 = vadd.f32 0.5, %v4241_v59  ;;  %v4146_v15 = vadd.f32 %v6351_v6, %v4110_v25  ;;  %v2604_v55 = vunpack.c.l.b16 %v2565_v38  ;;  %v3479_v59 = vsel %vm5324_vm3, %v3474_v42, %v6536_v10 }
 0x23b   : > { %v3489_v28 = vsel %vm5324_vm3, %v3484_v54, %v3488_v46  ;;  %v3959_v33 = vpack.c.b16 %v3941_v12, %v3940_v34  ;;  %v3900_v16 = vrot.slane %v6519_v9, 5  ;;  %v6572_v44 = vunpack.c.l.b16 %v3479_v59  ;;  %v6714_v46 = vld [vmem:[#allocation2_spill] sm:$0xff] }
 0x23c   : > { %v4305_v60 = vfloor.f32 %v4273_v32  ;;  %v4178_v0 = vmax.f32 %v4146_v15, 0.0  ;;  %v4044_v43 = vpop.f32.mrf.mxu0  ;;  %v2621_v10 = vpack.c.b16 %v2604_v55, %v2603_v14  ;;  %v6575_v32 = vld [vmem:[%s5312_s29 + $0xd0] sm:$0xf]  ;;  %v6577_v30 = vunpack.c.l.b16 %v3489_v28 }
 0x23d   : > { %v3646_v37 = vpop.f32.mrf.mxu3  ;;  %4976 = vmatmul.msk.bf16.gmra.mxu2 %vm709_vm4, %v5141_v62  ;;  %v2710_v31 = vpop.f32.mrf.mxu1  ;;  %v5058_v62 = vld [vmem:[%s5312_s29 + $0xc0] sm:$0xe]  ;;  %v3491_v35 = vshrl.u32 %v5024_v1, 16  ;;  %v3902_v38 = vrot.slane %v3900_v16, 4  ;;  %v3903_v42 = vrot.slane %v6541_v24, 5  ;;  %v3500_v54 = vshll.u32 %v6575_v32, 16 }
 0x23e   : > { %v4337_v56 = vmul.f32 0.125, %v4305_v60  ;;  %v4210_v17 = vmin.f32 %v4178_v0, 1.0  ;;  %v3713_v41 = vadd.f32 %v3646_v37, %v3059_v20  ;;  %v5074_v51 = vrot.slane %v5058_v62, 9  ;;  %v4832_v60 = vld [vmem:[%s5312_s29 + $0xc0] sm:$0xe] }
 0x23f   : > { %v5221_v0 = vld [vmem:[%s5312_s29 + $0xc4] sm:$0xf]  ;;  %v2774_v34 = vadd.f32 %v2710_v31, %v6714_v46  ;;  %v4848_v14 = vrot.slane %v4832_v60, 9  ;;  %v5222_v24 = vld [vmem:[%s5312_s29 + $0xc8] sm:$0x1]  ;;  %v3493_v55 = vrot.slane %v3491_v35, 4 }
 0x240   : > { %4369 = vst [vmem:[%s6399_s19 + $0x38] sm:$0xff] %v4337_v56  ;;  %v4242_v57 = vmul.f32 8.0, %v4210_v17  ;;  %v4111_v58 = vadd.f32 %v4044_v43, %v3713_v41  ;;  %v2995_v26 = vpop.f32.mrf.mxu2  ;;  %v2568_v43 = vrot.slane %v5221_v0, 5  ;;  %v3504_v56 = vshrl.u32 %v6575_v32, 16 }
 0x241   : > { %v3060_v7 = vadd.f32 %v2995_v26, %v2773_v47  ;;  %v2571_v26 = vrot.slane %v5222_v24, 5  ;;  %v3502_v28 = vrot.slane %v3500_v54, 5 }
 0x242   : > { %v4274_v25 = vadd.f32 0.5, %v4242_v57  ;;  %v4147_v11 = vadd.f32 %v6351_v6, %v4111_v58  ;;  %5041 = vmatmul.msk.bf16.gmra.mxu3 %vm709_vm4, %v3561_v49  ;;  %v3494_v49 = vshll.u32 %v5024_v1, 16  ;;  %v5142_v57 = vld [vmem:[%s5312_s29 + $0xc0] sm:$0xff]  ;;  %v3901_v58 = vsel %vm5498_vm7, %v5074_v51, %v3900_v16 }
 0x243   : > { %v2570_v47 = vrot.slane %v2568_v43, 4  ;;  %v3506_v31 = vrot.slane %v3504_v56, 4  ;;  %v2569_v16 = vsel %vm5498_vm7, %v4848_v14, %v2568_v43 }
 0x244   : > { %v4306_v13 = vfloor.f32 %v4274_v25  ;;  %v4179_v48 = vmax.f32 %v4147_v11, 0.0  ;;  %v4047_v45 = vpop.f32.mrf.mxu0  ;;  %v2605_v43 = vunpack.c.l.b16 %v2569_v16 }
 0x245   : > { %v3649_v15 = vpop.f32.mrf.mxu3  ;;  %v2713_v20 = vpop.f32.mrf.mxu1  ;;  %v2572_v60 = vsel %vm5498_vm7, %v2570_v47, %v2571_v26 }
 0x246   : > { %v4338_v61 = vmul.f32 0.125, %v4306_v13  ;;  %v4211_v9 = vmin.f32 %v4179_v48, 1.0  ;;  %v3714_v37 = vadd.f32 %v3649_v15, %v3060_v7  ;;  %v3496_v7 = vrot.slane %v3494_v49, 5  ;;  %v6598_v48 = vld [vmem:[%s5312_s29 + $0xd4] sm:$0x1] }
 0x247   : > { %5090 = vmatmul.msk.bf16.gmra.mxu0 %vm709_vm4, %v3959_v33  ;;  %v3904_v13 = vsel %vm5498_vm7, %v3902_v38, %v3903_v42  ;;  %v3942_v15 = vunpack.c.l.b16 %v3901_v58  ;;  %v3507_v49 = vor.u32 %v3506_v31, %v3502_v28  ;;  %v3510_v38 = vshll.u32 %v6598_v48, 16 }
 0x248   : > { %4370 = vst [vmem:[%s6399_s19 + $0x40] sm:$0xff] %v4338_v61  ;;  %v4243_v17 = vmul.f32 8.0, %v4211_v9  ;;  %v4112_v41 = vadd.f32 %v4047_v45, %v3714_v37  ;;  %v2997_v12 = vpop.f32.mrf.mxu2  ;;  %4864 = vmatmul.msk.bf16.gmra.mxu1 %vm709_vm4, %v2621_v10  ;;  %v3562_v10 = vpack.c.b16 %v6577_v30, %v6572_v44  ;;  %v3497_v9 = vor.u32 %v3496_v7, %v3493_v55 }
 0x249   : > { %v3061_v11 = vadd.f32 %v2997_v12, %v2774_v34  ;;  %v3943_v37 = vunpack.c.l.b16 %v3904_v13  ;;  %v2775_v56 = vadd.f32 %v2713_v20, %v5946_v52  ;;  %v2606_v30 = vunpack.c.l.b16 %v2572_v60  ;;  %v5059_v20 = vld [vmem:[%s5312_s29 + $0xcc] sm:$0xe] }
 0x24a   : > { %v4275_v59 = vadd.f32 0.5, %v4243_v17  ;;  %v4148_v25 = vadd.f32 %v6351_v6, %v4112_v41  ;;  %v3498_v34 = vrot.slane %v3497_v9, 4  ;;  %v3508_v14 = vrot.slane %v3507_v49, 4 }
 0x24b   : > { %v3960_v12 = vpack.c.b16 %v3943_v37, %v3942_v15  ;;  %v3907_v58 = vrot.slane %v6575_v32, 5  ;;  %v2622_v52 = vpack.c.b16 %v2606_v30, %v2605_v43  ;;  %v5143_v15 = vld [vmem:[%s5312_s29 + $0xcc] sm:$0xff] }
 0x24c   : > { %v4307_v62 = vfloor.f32 %v4275_v59  ;;  %v4180_v1 = vmax.f32 %v4148_v25, 0.0  ;;  %v4049_v33 = vpop.f32.mrf.mxu0  ;;  %v3503_v31 = vsel %vm5324_vm3, %v3498_v34, %v3502_v28 }
 0x24d   : > { %v3651_v45 = vpop.f32.mrf.mxu3  ;;  %4977 = vmatmul.msk.bf16.gmra.mxu2 %vm709_vm4, %v5142_v57  ;;  %v2715_v51 = vpop.f32.mrf.mxu1  ;;  %v3512_v57 = vrot.slane %v3510_v38, 5  ;;  %v3546_v60 = vunpack.c.l.b16 %v3503_v31  ;;  %v6638_v31 = vld [vmem:[%s6704_s2] ss:$0 sm:$0xff] }
 0x24e   : > { %v4339_v0 = vmul.f32 0.125, %v4307_v62  ;;  %v4212_v35 = vmin.f32 %v4180_v1, 1.0  ;;  %v3715_v61 = vadd.f32 %v3651_v45, %v3061_v11  ;;  %v5075_v62 = vrot.slane %v5059_v20, 9 }
 0x24f   : > { %v3513_v32 = vsel %vm5324_vm3, %v3508_v14, %v3512_v57  ;;  %v3909_v1 = vrot.slane %v3907_v58, 4  ;;  %v2776_v16 = vadd.f32 %v2715_v51, %v5966_v21 }
 0x250   : > { %4371 = vst [vmem:[%s6399_s19 + $0x48] sm:$0xff] %v4339_v0  ;;  %v4244_v42 = vmul.f32 8.0, %v4212_v35  ;;  %v4113_v54 = vadd.f32 %v4049_v33, %v3715_v61  ;;  %v3000_v44 = vpop.f32.mrf.mxu2  ;;  %v3547_v36 = vunpack.c.l.b16 %v3513_v32  ;;  %v3908_v43 = vsel %vm5498_vm7, %v5075_v62, %v3907_v58 }
 0x251   : > { %v3062_v46 = vadd.f32 %v3000_v44, %v2775_v56  ;;  %v3944_v56 = vunpack.c.l.b16 %v3908_v43 }
 0x252   : > { %v4276_v17 = vadd.f32 0.5, %v4244_v42  ;;  %v4149_v41 = vadd.f32 %v6351_v6, %v4113_v54  ;;  %5042 = vmatmul.msk.bf16.gmra.mxu3 %vm709_vm4, %v3562_v10  ;;  %v3910_v10 = vrot.slane %v6598_v48, 5  ;;  %v3563_v54 = vpack.c.b16 %v3547_v36, %v3546_v60 }
 0x254   : > { %v4308_v47 = vfloor.f32 %v4276_v17  ;;  %v4181_v24 = vmax.f32 %v4149_v41, 0.0  ;;  %v4052_v26 = vpop.f32.mrf.mxu0  ;;  %v3911_v21 = vsel %vm5498_vm7, %v3909_v1, %v3910_v10 }
 0x255   : > { %v3654_v55 = vpop.f32.mrf.mxu3  ;;  %v2718_v59 = vpop.f32.mrf.mxu1  ;;  %v3945_v44 = vunpack.c.l.b16 %v3911_v21 }
 0x256   : > { %v4340_v25 = vmul.f32 0.125, %v4308_v47  ;;  %v4213_v11 = vmin.f32 %v4181_v24, 1.0  ;;  %v3716_v7 = vadd.f32 %v3654_v55, %v3062_v46  ;;  %v2777_v41 = vadd.f32 %v2718_v59, %v5985_v29 }
 0x257   : > { %5091 = vmatmul.msk.bf16.gmra.mxu0 %vm709_vm4, %v3960_v12  ;;  %v3961_v14 = vpack.c.b16 %v3945_v44, %v3944_v56 }
 0x258   : > { %4372 = vst [vmem:[%s6399_s19 + $0x50] sm:$0xff] %v4340_v25  ;;  %v4245_v33 = vmul.f32 8.0, %v4213_v11  ;;  %v4114_v13 = vadd.f32 %v4052_v26, %v3716_v7  ;;  %v3002_v45 = vpop.f32.mrf.mxu2  ;;  %4865 = vmatmul.msk.bf16.gmra.mxu1 %vm709_vm4, %v2622_v52  ;;  %v6715_v25 = vld [vmem:[#allocation3_spill] sm:$0xff] }
 0x259   : > { %v3063_v35 = vadd.f32 %v3002_v45, %v2776_v16 }
 0x25a   : > { %v4277_v28 = vadd.f32 0.5, %v4245_v33  ;;  %v4150_v0 = vadd.f32 %v6351_v6, %v4114_v13 }
 0x25c   : > { %v4309_v61 = vfloor.f32 %v4277_v28  ;;  %v4182_v9 = vmax.f32 %v4150_v0, 0.0  ;;  %v4054_v37 = vpop.f32.mrf.mxu0 }
 0x25d   : > { %v3656_v51 = vpop.f32.mrf.mxu3  ;;  %4978 = vmatmul.msk.bf16.gmra.mxu2 %vm709_vm4, %v5143_v15  ;;  %v2720_v48 = vpop.f32.mrf.mxu1 }
 0x25e   : > { %v4341_v49 = vmul.f32 0.125, %v4309_v61  ;;  %v4214_v38 = vmin.f32 %v4182_v9, 1.0  ;;  %v3717_v42 = vadd.f32 %v3656_v51, %v3063_v35 }
 0x260   : > { %4373 = vst [vmem:[%s6399_s19 + $0x58] sm:$0xff] %v4341_v49  ;;  %v4246_v30 = vmul.f32 8.0, %v4214_v38  ;;  %v4115_v17 = vadd.f32 %v4054_v37, %v3717_v42  ;;  %v3005_v46 = vpop.f32.mrf.mxu2 }
 0x261   : > { %v3064_v12 = vadd.f32 %v3005_v46, %v2777_v41 }
 0x262   : > { %v4278_v34 = vadd.f32 0.5, %v4246_v30  ;;  %v4151_v18 = vadd.f32 %v6351_v6, %v4115_v17  ;;  %5043 = vmatmul.msk.bf16.gmra.mxu3 %vm709_vm4, %v3563_v54  ;;  %v2778_v6 = vadd.f32 %v2720_v48, %v6715_v25 }
 0x264   : > { %v4310_v57 = vfloor.f32 %v4278_v34  ;;  %v4183_v58 = vmax.f32 %v4151_v18, 0.0  ;;  %v4057_v47 = vpop.f32.mrf.mxu0 }
 0x265   : > { %v3659_v24 = vpop.f32.mrf.mxu3  ;;  %v2723_v26 = vpop.f32.mrf.mxu1 }
 0x266   : > { %v4342_v52 = vmul.f32 0.125, %v4310_v57  ;;  %v4215_v20 = vmin.f32 %v4183_v58, 1.0  ;;  %v3718_v55 = vadd.f32 %v3659_v24, %v3064_v12  ;;  %v2779_v35 = vadd.f32 %v2723_v26, %v6028_v5 }
 0x267   : > { %5092 = vmatmul.msk.bf16.gmra.mxu0 %vm709_vm4, %v3961_v14 }
 0x268   : > { %4374 = vst [vmem:[%s6399_s19 + $0x60] sm:$0xff] %v4342_v52  ;;  %v4247_v29 = vmul.f32 8.0, %v4215_v20  ;;  %v4116_v59 = vadd.f32 %v4057_v47, %v3718_v55  ;;  %v3007_v11 = vpop.f32.mrf.mxu2 }
 0x269   : > { %v3065_v62 = vadd.f32 %v3007_v11, %v2778_v6 }
 0x26a   : > { %v4279_v7 = vadd.f32 0.5, %v4247_v29  ;;  %v4152_v32 = vadd.f32 %v6638_v31, %v4116_v59 }
 0x26c   : > { %v4311_v1 = vfloor.f32 %v4279_v7  ;;  %v4184_v33 = vmax.f32 %v4152_v32, 0.0  ;;  %v4059_v13 = vpop.f32.mrf.mxu0 }
 0x26d   : > { %v3661_v16 = vpop.f32.mrf.mxu3  ;;  %v2725_v45 = vpop.f32.mrf.mxu1 }
 0x26e   : > { %v4343_v10 = vmul.f32 0.125, %v4311_v1  ;;  %v4216_v15 = vmin.f32 %v4184_v33, 1.0  ;;  %v3719_v60 = vadd.f32 %v3661_v16, %v3065_v62  ;;  %v2780_v30 = vadd.f32 %v2725_v45, %v6052_v22 }
 0x270   : > { %4375 = vst [vmem:[%s6399_s19 + $0x68] sm:$0xff] %v4343_v10  ;;  %v4248_v28 = vmul.f32 8.0, %v4216_v15  ;;  %v4117_v0 = vadd.f32 %v4059_v13, %v3719_v60  ;;  %v3010_v36 = vpop.f32.mrf.mxu2 }
 0x271   : > { %v3066_v37 = vadd.f32 %v3010_v36, %v2779_v35 }
 0x272   : > { %v4280_v61 = vadd.f32 0.5, %v4248_v28  ;;  %v4153_v9 = vadd.f32 %v6638_v31, %v4117_v0 }
 0x274   : > { %v4312_v43 = vfloor.f32 %v4280_v61  ;;  %v4185_v21 = vmax.f32 %v4153_v9, 0.0  ;;  %v4062_v51 = vpop.f32.mrf.mxu0 }
 0x275   : > { %v3664_v48 = vpop.f32.mrf.mxu3  ;;  %v2728_v49 = vpop.f32.mrf.mxu1 }
 0x276   : > { %v4344_v38 = vmul.f32 0.125, %v4312_v43  ;;  %v4217_v42 = vmin.f32 %v4185_v21, 1.0  ;;  %v3720_v54 = vadd.f32 %v3664_v48, %v3066_v37  ;;  %v2781_v20 = vadd.f32 %v2728_v49, %v6071_v19 }
 0x278   : > { %4376 = vst [vmem:[%s6399_s19 + $0x70] sm:$0xff] %v4344_v38  ;;  %v4249_v56 = vmul.f32 8.0, %v4217_v42  ;;  %v4118_v44 = vadd.f32 %v4062_v51, %v3720_v54  ;;  %v3012_v5 = vpop.f32.mrf.mxu2 }
 0x279   : > { %v3067_v46 = vadd.f32 %v3012_v5, %v2780_v30 }
 0x27a   : > { %v4281_v17 = vadd.f32 0.5, %v4249_v56  ;;  %v4154_v41 = vadd.f32 %v6638_v31, %v4118_v44 }
 0x27c   : > { %v4313_v34 = vfloor.f32 %v4281_v17  ;;  %v4186_v18 = vmax.f32 %v4154_v41, 0.0  ;;  %v4064_v12 = vpop.f32.mrf.mxu0 }
 0x27d   : > { %v3666_v14 = vpop.f32.mrf.mxu3  ;;  %v2730_v57 = vpop.f32.mrf.mxu1 }
 0x27e   : > { %v4345_v58 = vmul.f32 0.125, %v4313_v34  ;;  %v4218_v47 = vmin.f32 %v4186_v18, 1.0  ;;  %v3721_v24 = vadd.f32 %v3666_v14, %v3067_v46  ;;  %v2782_v45 = vadd.f32 %v2730_v57, %v6095_v53 }
 0x280   : > { %4377 = vst [vmem:[%s6399_s19 + $0x78] sm:$0xff] %v4345_v58  ;;  %v4250_v26 = vmul.f32 8.0, %v4218_v47  ;;  %v4119_v52 = vadd.f32 %v4064_v12, %v3721_v24  ;;  %v3015_v22 = vpop.f32.mrf.mxu2 }
 0x281   : > { %v3068_v59 = vadd.f32 %v3015_v22, %v2781_v20 }
 0x282   : > { %v4282_v55 = vadd.f32 0.5, %v4250_v26  ;;  %v4155_v29 = vadd.f32 %v6638_v31, %v4119_v52 }
 0x284   : > { %v4314_v25 = vfloor.f32 %v4282_v55  ;;  %v4187_v6 = vmax.f32 %v4155_v29, 0.0  ;;  %v4067_v11 = vpop.f32.mrf.mxu0 }
 0x285   : > { %v3669_v7 = vpop.f32.mrf.mxu3  ;;  %v2733_v32 = vpop.f32.mrf.mxu1 }
 0x286   : > { %v4346_v62 = vmul.f32 0.125, %v4314_v25  ;;  %v4219_v1 = vmin.f32 %v4187_v6, 1.0  ;;  %v3722_v33 = vadd.f32 %v3669_v7, %v3068_v59  ;;  %v2783_v48 = vadd.f32 %v2733_v32, %v6114_v2 }
 0x288   : > { %4378 = vst [vmem:[%s6399_s19 + $0x80] sm:$0xff] %v4346_v62  ;;  %v4251_v13 = vmul.f32 8.0, %v4219_v1  ;;  %v4120_v16 = vadd.f32 %v4067_v11, %v3722_v33  ;;  %v3017_v19 = vpop.f32.mrf.mxu2 }
 0x289   : > { %v3069_v60 = vadd.f32 %v3017_v19, %v2782_v45 }
 0x28a   : > { %v4283_v10 = vadd.f32 0.5, %v4251_v13  ;;  %v4156_v15 = vadd.f32 %v6638_v31, %v4120_v16 }
 0x28c   : > { %v4315_v28 = vfloor.f32 %v4283_v10  ;;  %v4188_v0 = vmax.f32 %v4156_v15, 0.0  ;;  %v4069_v35 = vpop.f32.mrf.mxu0 }
 0x28d   : > { %v3671_v36 = vpop.f32.mrf.mxu3  ;;  %v2735_v61 = vpop.f32.mrf.mxu1 }
 0x28e   : > { %v4347_v9 = vmul.f32 0.125, %v4315_v28  ;;  %v4220_v37 = vmin.f32 %v4188_v0, 1.0  ;;  %v3723_v43 = vadd.f32 %v3671_v36, %v3069_v60  ;;  %v2784_v12 = vadd.f32 %v2735_v61, %v6138_v40 }
 0x290   : > { %4379 = vst [vmem:[%s6399_s19 + $0x88] sm:$0xff] %v4347_v9  ;;  %v4252_v21 = vmul.f32 8.0, %v4220_v37  ;;  %v4121_v51 = vadd.f32 %v4069_v35, %v3723_v43  ;;  %v3020_v53 = vpop.f32.mrf.mxu2 }
 0x291   : > { %v3070_v42 = vadd.f32 %v3020_v53, %v2783_v48 }
 0x292   : > { %v4284_v49 = vadd.f32 0.5, %v4252_v21  ;;  %v4157_v38 = vadd.f32 %v6638_v31, %v4121_v51 }
 0x294   : > { %v4316_v54 = vfloor.f32 %v4284_v49  ;;  %v4189_v56 = vmax.f32 %v4157_v38, 0.0  ;;  %v4072_v44 = vpop.f32.mrf.mxu0 }
 0x295   : > { %v3674_v30 = vpop.f32.mrf.mxu3  ;;  %v2738_v5 = vpop.f32.mrf.mxu1 }
 0x296   : > { %v4348_v17 = vmul.f32 0.125, %v4316_v54  ;;  %v4221_v41 = vmin.f32 %v4189_v56, 1.0  ;;  %v3724_v46 = vadd.f32 %v3674_v30, %v3070_v42  ;;  %v2785_v6 = vadd.f32 %v2738_v5, %v6157_v8 }
 0x298   : > { %4380 = vst [vmem:[%s6399_s19 + $0x90] sm:$0xff] %v4348_v17  ;;  %v4253_v34 = vmul.f32 8.0, %v4221_v41  ;;  %v4122_v18 = vadd.f32 %v4072_v44, %v3724_v46  ;;  %v3022_v2 = vpop.f32.mrf.mxu2 }
 0x299   : > { %v3071_v58 = vadd.f32 %v3022_v2, %v2784_v12 }
 0x29a   : > { %v4285_v14 = vadd.f32 0.5, %v4253_v34  ;;  %v4158_v57 = vadd.f32 %v6638_v31, %v4122_v18 }
 0x29c   : > { %v4317_v47 = vfloor.f32 %v4285_v14  ;;  %v4190_v24 = vmax.f32 %v4158_v57, 0.0  ;;  %v4074_v26 = vpop.f32.mrf.mxu0 }
 0x29d   : > { %v3676_v52 = vpop.f32.mrf.mxu3  ;;  %v2740_v20 = vpop.f32.mrf.mxu1 }
 0x29e   : > { %v4349_v22 = vmul.f32 0.125, %v4317_v47  ;;  %v4222_v55 = vmin.f32 %v4190_v24, 1.0  ;;  %v3725_v29 = vadd.f32 %v3676_v52, %v3071_v58  ;;  %v2786_v28 = vadd.f32 %v2740_v20, %v6181_v27 }
 0x2a0   : > { %4381 = vst [vmem:[%s6399_s19 + $0x98] sm:$0xff] %v4349_v22  ;;  %v4254_v59 = vmul.f32 8.0, %v4222_v55  ;;  %v4123_v25 = vadd.f32 %v4074_v26, %v3725_v29  ;;  %v3025_v40 = vpop.f32.mrf.mxu2 }
 0x2a1   : > { %v3072_v32 = vadd.f32 %v3025_v40, %v2785_v6 }
 0x2a2   : > { %v4286_v11 = vadd.f32 0.5, %v4254_v59  ;;  %v4159_v7 = vadd.f32 %v6638_v31, %v4123_v25 }
 0x2a4   : > { %v4318_v62 = vfloor.f32 %v4286_v11  ;;  %v4191_v1 = vmax.f32 %v4159_v7, 0.0  ;;  %v4077_v33 = vpop.f32.mrf.mxu0 }
 0x2a5   : > { %v3679_v13 = vpop.f32.mrf.mxu3  ;;  %v2743_v16 = vpop.f32.mrf.mxu1 }
 0x2a6   : > { %v4350_v45 = vmul.f32 0.125, %v4318_v62  ;;  %v4223_v19 = vmin.f32 %v4191_v1, 1.0  ;;  %v3726_v10 = vadd.f32 %v3679_v13, %v3072_v32  ;;  %v2787_v42 = vadd.f32 %v2743_v16, %v6200_v63 }
 0x2a8   : > { %4382 = vst [vmem:[%s6399_s19 + $0xa0] sm:$0xff] %v4350_v45  ;;  %v4255_v15 = vmul.f32 8.0, %v4223_v19  ;;  %v4124_v60 = vadd.f32 %v4077_v33, %v3726_v10  ;;  %v3027_v8 = vpop.f32.mrf.mxu2 }
 0x2a9   : > { %v3073_v36 = vadd.f32 %v3027_v8, %v2786_v28 }
 0x2aa   : > { %v4287_v0 = vadd.f32 0.5, %v4255_v15  ;;  %v4160_v35 = vadd.f32 %v6638_v31, %v4124_v60 }
 0x2ac   : > { %v4319_v61 = vfloor.f32 %v4287_v0  ;;  %v4192_v9 = vmax.f32 %v4160_v35, 0.0  ;;  %v4079_v37 = vpop.f32.mrf.mxu0 }
 0x2ad   : > { %v3681_v43 = vpop.f32.mrf.mxu3  ;;  %v2745_v21 = vpop.f32.mrf.mxu1 }
 0x2ae   : > { %v4351_v51 = vmul.f32 0.125, %v4319_v61  ;;  %v4224_v48 = vmin.f32 %v4192_v9, 1.0  ;;  %v3727_v53 = vadd.f32 %v3681_v43, %v3073_v36  ;;  %v2788_v57 = vadd.f32 %v2745_v21, %v6224_v39 }
 0x2b0   : > { %4383 = vst [vmem:[%s6399_s19 + $0xa8] sm:$0xff] %v4351_v51  ;;  %v4256_v49 = vmul.f32 8.0, %v4224_v48  ;;  %v4125_v38 = vadd.f32 %v4079_v37, %v3727_v53  ;;  %v3030_v27 = vpop.f32.mrf.mxu2 }
 0x2b1   : > { %v3074_v44 = vadd.f32 %v3030_v27, %v2787_v42 }
 0x2b2   : > { %v4288_v54 = vadd.f32 0.5, %v4256_v49  ;;  %v4161_v56 = vadd.f32 %v6638_v31, %v4125_v38 }
 0x2b4   : > { %v4320_v30 = vfloor.f32 %v4288_v54  ;;  %v4193_v5 = vmax.f32 %v4161_v56, 0.0  ;;  %v4082_v17 = vpop.f32.mrf.mxu0 }
 0x2b5   : > { %v3684_v41 = vpop.f32.mrf.mxu3  ;;  %v2748_v46 = vpop.f32.mrf.mxu1 }
 0x2b6   : > { %v4352_v34 = vmul.f32 0.125, %v4320_v30  ;;  %v4225_v18 = vmin.f32 %v4193_v5, 1.0  ;;  %v3728_v12 = vadd.f32 %v3684_v41, %v3074_v44  ;;  %v2789_v11 = vadd.f32 %v2748_v46, %v6243_v50 }
 0x2b8   : > { %4384 = vst [vmem:[%s6399_s19 + $0xb0] sm:$0xff] %v4352_v34  ;;  %v4257_v2 = vmul.f32 8.0, %v4225_v18  ;;  %v4126_v14 = vadd.f32 %v4082_v17, %v3728_v12  ;;  %v3032_v63 = vpop.f32.mrf.mxu2 }
 0x2b9   : > { %v3075_v24 = vadd.f32 %v3032_v63, %v2788_v57 }
 0x2ba   : > { %v4289_v58 = vadd.f32 0.5, %v4257_v2  ;;  %v4162_v47 = vadd.f32 %v6638_v31, %v4126_v14 }
 0x2bc   : > { %v4321_v26 = vfloor.f32 %v4289_v58  ;;  %v4194_v52 = vmax.f32 %v4162_v47, 0.0  ;;  %v4084_v20 = vpop.f32.mrf.mxu0 }
 0x2bd   : > { %v3686_v22 = vpop.f32.mrf.mxu3  ;;  %v2750_v55 = vpop.f32.mrf.mxu1 }
 0x2be   : > { %v4353_v29 = vmul.f32 0.125, %v4321_v26  ;;  %v4226_v59 = vmin.f32 %v4194_v52, 1.0  ;;  %v3729_v25 = vadd.f32 %v3686_v22, %v3075_v24  ;;  %v2790_v8 = vadd.f32 %v2750_v55, %v6267_v3 }
 0x2c0   : > { %4385 = vst [vmem:[%s6399_s19 + $0xb8] sm:$0xff] %v4353_v29  ;;  %v4258_v6 = vmul.f32 8.0, %v4226_v59  ;;  %v4127_v40 = vadd.f32 %v4084_v20, %v3729_v25  ;;  %v3035_v39 = vpop.f32.mrf.mxu2  ;;  %v6716_v25 = vld [vmem:[#allocation4_spill] sm:$0xff] }
 0x2c1   : > { %v3076_v62 = vadd.f32 %v3035_v39, %v2789_v11 }
 0x2c2   : > { %v4290_v7 = vadd.f32 0.5, %v4258_v6  ;;  %v4163_v32 = vadd.f32 %v6638_v31, %v4127_v40 }
 0x2c4   : > { %v4322_v1 = vfloor.f32 %v4290_v7  ;;  %v4195_v33 = vmax.f32 %v4163_v32, 0.0  ;;  %v4087_v13 = vpop.f32.mrf.mxu0 }
 0x2c5   : > { %v3689_v16 = vpop.f32.mrf.mxu3  ;;  %v2753_v15 = vpop.f32.mrf.mxu1 }
 0x2c6   : > { %v4354_v45 = vmul.f32 0.125, %v4322_v1  ;;  %v4227_v19 = vmin.f32 %v4195_v33, 1.0  ;;  %v3730_v10 = vadd.f32 %v3689_v16, %v3076_v62  ;;  %v2791_v38 = vadd.f32 %v2753_v15, %v6284_v23  ;;  %v6717_v15 = vld [vmem:[#allocation5_spill] sm:$0xff] }
 0x2c8   : > { %4386 = vst [vmem:[%s6399_s19 + $0xc0] sm:$0xff] %v4354_v45  ;;  %v4259_v60 = vmul.f32 8.0, %v4227_v19  ;;  %v4128_v28 = vadd.f32 %v4087_v13, %v3730_v10  ;;  %v3037_v50 = vpop.f32.mrf.mxu2 }
 0x2c9   : > { %v3077_v36 = vadd.f32 %v3037_v50, %v2790_v8 }
 0x2ca   : > { %v4291_v0 = vadd.f32 0.5, %v4259_v60  ;;  %v4164_v35 = vadd.f32 %v6638_v31, %v4128_v28 }
 0x2cc   : > { %v4323_v61 = vfloor.f32 %v4291_v0  ;;  %v4196_v9 = vmax.f32 %v4164_v35, 0.0  ;;  %v4089_v37 = vpop.f32.mrf.mxu0 }
 0x2cd   : > { %v3691_v43 = vpop.f32.mrf.mxu3  ;;  %v2755_v3 = vpop.f32.mrf.mxu1 }
 0x2ce   : > { %v4355_v21 = vmul.f32 0.125, %v4323_v61  ;;  %v4228_v51 = vmin.f32 %v4196_v9, 1.0  ;;  %v3731_v48 = vadd.f32 %v3691_v43, %v3077_v36  ;;  %v2792_v2 = vadd.f32 %v2755_v3, %v6304_v4 }
 0x2d0   : > { %4387 = vst [vmem:[%s6399_s19 + $0xc8] sm:$0xff] %v4355_v21  ;;  %v4260_v53 = vmul.f32 8.0, %v4228_v51  ;;  %v4129_v49 = vadd.f32 %v4089_v37, %v3731_v48  ;;  %v3040_v42 = vpop.f32.mrf.mxu2 }
 0x2d1   : > { %v3078_v56 = vadd.f32 %v3040_v42, %v2791_v38 }
 0x2d2   : > { %v4292_v27 = vadd.f32 0.5, %v4260_v53  ;;  %v4165_v54 = vadd.f32 %v6638_v31, %v4129_v49 }
 0x2d4   : > { %v4324_v44 = vfloor.f32 %v4292_v27  ;;  %v4197_v30 = vmax.f32 %v4165_v54, 0.0  ;;  %v4092_v5 = vpop.f32.mrf.mxu0 }
 0x2d5   : > { %v3694_v17 = vpop.f32.mrf.mxu3  ;;  %v2758_v58 = vpop.f32.mrf.mxu1 }
 0x2d6   : > { %v4356_v41 = vmul.f32 0.125, %v4324_v44  ;;  %v4229_v46 = vmin.f32 %v4197_v30, 1.0  ;;  %v3732_v34 = vadd.f32 %v3694_v17, %v3078_v56  ;;  %v2793_v6 = vadd.f32 %v2758_v58, %v6716_v25 }
 0x2d8   : > { %4388 = vst [vmem:[%s6399_s19 + $0xd0] sm:$0xff] %v4356_v41  ;;  %v4261_v18 = vmul.f32 8.0, %v4229_v46  ;;  %v4130_v12 = vadd.f32 %v4092_v5, %v3732_v34  ;;  %v3042_v23 = vpop.f32.mrf.mxu2 }
 0x2d9   : > { %v3079_v63 = vadd.f32 %v3042_v23, %v2792_v2 }
 0x2da   : > { %v4293_v14 = vadd.f32 0.5, %v4261_v18  ;;  %v4166_v57 = vadd.f32 %v6638_v31, %v4130_v12 }
 0x2dc   : > { %v4325_v47 = vfloor.f32 %v4293_v14  ;;  %v4198_v24 = vmax.f32 %v4166_v57, 0.0  ;;  %v4094_v26 = vpop.f32.mrf.mxu0 }
 0x2dd   : > { %v3696_v52 = vpop.f32.mrf.mxu3  ;;  %v2760_v62 = vpop.f32.mrf.mxu1 }
 0x2de   : > { %v4357_v20 = vmul.f32 0.125, %v4325_v47  ;;  %v4230_v22 = vmin.f32 %v4198_v24, 1.0  ;;  %v3733_v55 = vadd.f32 %v3696_v52, %v3079_v63  ;;  %v2794_v60 = vadd.f32 %v2760_v62, %v6717_v15 }
 0x2e0   : > { %4389 = vst [vmem:[%s6399_s19 + $0xd8] sm:$0xff] %v4357_v20  ;;  %v4262_v29 = vmul.f32 8.0, %v4230_v22  ;;  %v4131_v59 = vadd.f32 %v4094_v26, %v3733_v55  ;;  %v3045_v4 = vpop.f32.mrf.mxu2 }
 0x2e1   : > { %v3080_v39 = vadd.f32 %v3045_v4, %v2793_v6 }
 0x2e2   : > { %v4294_v40 = vadd.f32 0.5, %v4262_v29  ;;  %v4167_v11 = vadd.f32 %v6638_v31, %v4131_v59 }
 0x2e4   : > { %v4326_v7 = vfloor.f32 %v4294_v40  ;;  %v4199_v32 = vmax.f32 %v4167_v11, 0.0  ;;  %v4097_v1 = vpop.f32.mrf.mxu0 }
 0x2e5   : > { %v3699_v33 = vpop.f32.mrf.mxu3 }
 0x2e6   : > { %v4358_v13 = vmul.f32 0.125, %v4326_v7  ;;  %v4231_v16 = vmin.f32 %v4199_v32, 1.0  ;;  %v3734_v45 = vadd.f32 %v3699_v33, %v3080_v39 }
 0x2e8   : > { %4390 = vst [vmem:[%s6399_s19 + $0xe0] sm:$0xff] %v4358_v13  ;;  %v4263_v19 = vmul.f32 8.0, %v4231_v16  ;;  %v4132_v10 = vadd.f32 %v4097_v1, %v3734_v45  ;;  %v3047_v28 = vpop.f32.mrf.mxu2 }
 0x2e9   : > { %v3081_v0 = vadd.f32 %v3047_v28, %v2794_v60 }
 0x2ea   : > { %v4295_v8 = vadd.f32 0.5, %v4263_v19  ;;  %v4168_v50 = vadd.f32 %v6638_v31, %v4132_v10 }
 0x2ec   : > { %v4327_v35 = vfloor.f32 %v4295_v8  ;;  %v4200_v36 = vmax.f32 %v4168_v50, 0.0  ;;  %v4099_v21 = vpop.f32.mrf.mxu0 }
 0x2ed   : > { %v3701_v61 = vpop.f32.mrf.mxu3 }
 0x2ee   : > { %v4359_v9 = vmul.f32 0.125, %v4327_v35  ;;  %v4232_v37 = vmin.f32 %v4200_v36, 1.0  ;;  %v3735_v43 = vadd.f32 %v3701_v61, %v3081_v0 }
 0x2f0   : > { %4391 = vst [vmem:[%s6399_s19 + $0xe8] sm:$0xff] %v4359_v9  ;;  %v4264_v51 = vmul.f32 8.0, %v4232_v37  ;;  %v4133_v48 = vadd.f32 %v4099_v21, %v3735_v43 }
 0x2f2   : > { %v4296_v53 = vadd.f32 0.5, %v4264_v51  ;;  %v4169_v49 = vadd.f32 %v6638_v31, %v4133_v48 }
 0x2f4   : > { %v4328_v38 = vfloor.f32 %v4296_v53  ;;  %v4201_v42 = vmax.f32 %v4169_v49, 0.0 }
 0x2f6   : > { %v4360_v3 = vmul.f32 0.125, %v4328_v38  ;;  %v4233_v27 = vmin.f32 %v4201_v42, 1.0 }
 0x2f8   : > { %4392 = vst [vmem:[%s6399_s19 + $0xf0] sm:$0xff] %v4360_v3  ;;  %v4265_v54 = vmul.f32 8.0, %v4233_v27 }
 0x2fa   : > { %v4297_v56 = vadd.f32 0.5, %v4265_v54 }
 0x2fc   : > { %v4329_v44 = vfloor.f32 %v4297_v56 }
 0x2fe   : > { %v4361_v30 = vmul.f32 0.125, %v4329_v44 }
 0x300   : > { %4393 = vst [vmem:[%s6399_s19 + $0xf8] sm:$0xff] %v4361_v30 }
 0x301 PF: > { %s13_s14 = sadd.s32 1, %s5246_s14   ;;  %s6718_s12 = smov %s5242_s13 }
 0x302   : > { %p10_p5 = scmp.ge.s32.totalorder %s13_s14, 4   ;;  %s6719_s13 = smov %s6721_s15 }
 0x304   :  { %12 = sbr.rel (!%p10_p5) target bundleno = 2 (0x2), region = 78 }

</bundles_post_ra>
